<compile_context>
chip_gen: v7x
topology: tpu7x:2x2x1
jax: 0.10.0
libtpu: 0.0.40
codegen_flags: <defaults>
</compile_context>

<pallas_src>
import jax
import jax.numpy as jnp
from jax.experimental import pallas as pl
from jax.experimental.pallas import tpu as pltpu

LANE = 128
SUBLANE = 8
MAX_BATCH_TILE = 128


def _round_up(n, m):
    return (n + m - 1) // m * m


def _actor_kernel(x_ref,
                  w1_ref, b1_ref,
                  w2_ref, b2_ref,
                  w3_ref, b3_ref,
                  w4_ref, b4_ref,
                  w5_ref, b5_ref,
                  out_ref):
    # fc1..fc4 + ReLU (dropout1..4 == identity in eval mode).
    # bf16 operands on the MXU, f32 accumulation; bias + ReLU in f32, then
    # recast to bf16 for the next matmul.
    h = x_ref[...]
    for w_ref, b_ref in ((w1_ref, b1_ref), (w2_ref, b2_ref),
                         (w3_ref, b3_ref), (w4_ref, b4_ref)):
        acc = jnp.dot(h, w_ref[...], preferred_element_type=jnp.float32)
        h = jnp.maximum(acc + b_ref[...], 0.0).astype(jnp.bfloat16)

    # fc5 logits (padded to LANE columns; padded columns carry bias -1e30,
    # kept in f32 so the sentinel survives).
    logits = jnp.dot(h, w5_ref[...], preferred_element_type=jnp.float32)
    logits = logits + b5_ref[...]

    # Softmax over the last dim, f32 throughout; approx reciprocal -> EUP.
    m = jnp.max(logits, axis=-1, keepdims=True)
    e = jnp.exp(logits - m)
    denom = jnp.sum(e, axis=-1, keepdims=True)
    out_ref[...] = e * pl.reciprocal(denom, approx=True)


def actor_forward(x, params, n_actions):
    """x: (batch, input_dims) float; returns (batch, n_actions) f32 probs."""
    batch, in_dims = x.shape
    k_pad = params["w1"].shape[0]          # input dims padded to a lane multiple
    assert in_dims <= k_pad

    # Lane-pad the feature dim (matches zero-padded w1 rows) and cast to bf16.
    x = jnp.pad(x, ((0, 0), (0, k_pad - in_dims))).astype(jnp.bfloat16)

    # Batch tile: up to 128 rows per grid step, batch padded so grid divides.
    tb = min(MAX_BATCH_TILE, _round_up(batch, SUBLANE))
    padded_batch = _round_up(batch, tb)
    if padded_batch != batch:
        x = jnp.pad(x, ((0, padded_batch - batch), (0, 0)))
    grid = (padded_batch // tb,)

    vmem = pltpu.MemorySpace.VMEM

    def _const_map(i):            # weights: same block every grid step -> VMEM-resident
        return (0, 0)

    weight_order = ("w1", "b1", "w2", "b2", "w3", "b3", "w4", "b4", "w5", "b5")
    weight_specs = [
        pl.BlockSpec(params[name].shape, _const_map, memory_space=vmem)
        for name in weight_order
    ]

    out_padded = pl.pallas_call(
        _actor_kernel,
        out_shape=jax.ShapeDtypeStruct((padded_batch, LANE), jnp.float32),
        grid=grid,
        in_specs=[pl.BlockSpec((tb, k_pad), lambda i: (i, 0),
                               memory_space=vmem)] + weight_specs,
        out_specs=pl.BlockSpec((tb, LANE), lambda i: (i, 0),
                               memory_space=vmem),
        compiler_params=pltpu.CompilerParams(
            dimension_semantics=("parallel",),        # megacore shard on v7x
            vmem_limit_bytes=32 * 1024 * 1024,        # explicit budget (fits v7x 64 MiB)
        ),
    )(x, *(params[name] for name in weight_order))

    return out_padded[:batch, :n_actions]


def init_params(key, input_dims, n_actions):
    """PyTorch nn.Linear-style init (U[-1/sqrt(fan_in), +]), stored (in, out).

    Weights are cast to bf16; biases stay f32. w1 rows are zero-padded to a
    lane multiple, fc5 columns are padded to LANE (bias -1e30 on padded cols).
    """
    assert n_actions <= LANE
    dims = [(input_dims, 1024), (1024, 512), (512, 256), (256, 128),
            (128, n_actions)]
    params = {}
    keys = jax.random.split(key, 2 * len(dims))
    for i, (fan_in, fan_out) in enumerate(dims):
        bound = float(fan_in) ** -0.5
        w = jax.random.uniform(keys[2 * i], (fan_in, fan_out),
                               minval=-bound, maxval=bound, dtype=jnp.float32)
        b = jax.random.uniform(keys[2 * i + 1], (1, fan_out),
                               minval=-bound, maxval=bound, dtype=jnp.float32)
        params[f"w{i + 1}"] = w
        params[f"b{i + 1}"] = b

    # Pad fc1 input rows to a lane multiple (zero rows match zero-padded x cols).
    k_pad = _round_up(max(input_dims, 1), LANE)
    params["w1"] = jnp.pad(params["w1"], ((0, k_pad - input_dims), (0, 0)))

    # Pad fc5 output to LANE columns so the kernel output is lane-dense.
    pad = LANE - n_actions
    if pad > 0:
        params["w5"] = jnp.pad(params["w5"], ((0, 0), (0, pad)))
        params["b5"] = jnp.pad(params["b5"], ((0, 0), (0, pad)),
                               constant_values=-1e30)

    # bf16 weights (native MXU dtype, halves weight DMA); biases stay f32.
    for i in range(1, 6):
        params[f"w{i}"] = params[f"w{i}"].astype(jnp.bfloat16)
    return params


def reference_forward(x, params, n_actions):
    """Pure-JAX reference matching the kernel's bf16-in / f32-accumulate math."""
    k_pad = params["w1"].shape[0]
    h = jnp.pad(x, ((0, 0), (0, k_pad - x.shape[1]))).astype(jnp.bfloat16)
    for i in range(1, 5):
        acc = jnp.dot(h, params[f"w{i}"], preferred_element_type=jnp.float32)
        h = jnp.maximum(acc + params[f"b{i}"], 0.0).astype(jnp.bfloat16)
    logits = jnp.dot(h, params["w5"], preferred_element_type=jnp.float32)
    logits = (logits + params["b5"])[:, :n_actions]
    return jax.nn.softmax(logits, axis=-1)


if __name__ == "__main__":
    key = jax.random.PRNGKey(0)
    k_param, k_x = jax.random.split(key)

    input_dims = 64
    n_actions = 6
    batch = 256   # 2 grid steps of 128 rows -> exercises weight residency + grid

    params = init_params(k_param, input_dims, n_actions)
    x = jax.random.normal(k_x, (batch, input_dims), dtype=jnp.float32)

    out = jax.block_until_ready(actor_forward(x, params, n_actions))
    ref = reference_forward(x, params, n_actions)

    assert out.shape == (batch, n_actions)
    assert bool(jnp.all(jnp.isfinite(out)))
    # approx reciprocal + bf16 path -> slightly relaxed tolerances vs the f32 check
    assert bool(jnp.allclose(jnp.sum(out, axis=-1), 1.0, atol=5e-3))
    assert bool(jnp.allclose(out, ref, atol=3e-3, rtol=3e-3))

    # TODO(synk): nn.Dropout (train-mode stochastic masking) is treated as
    # identity (eval semantics); a pltpu.prng_* masked variant is not implemented.

    print("KERNEL_OK")
</pallas_src>

<mosaic_0001>
module attributes {stable_mosaic.version = 11 : i64} {
  func.func @_actor_kernel(%arg0: i32, %arg1: memref<128x128xbf16, #tpu.memory_space<vmem>>, %arg2: memref<128x1024xbf16, #tpu.memory_space<vmem>>, %arg3: memref<1x1024xf32, #tpu.memory_space<vmem>>, %arg4: memref<1024x512xbf16, #tpu.memory_space<vmem>>, %arg5: memref<1x512xf32, #tpu.memory_space<vmem>>, %arg6: memref<512x256xbf16, #tpu.memory_space<vmem>>, %arg7: memref<1x256xf32, #tpu.memory_space<vmem>>, %arg8: memref<256x128xbf16, #tpu.memory_space<vmem>>, %arg9: memref<1x128xf32, #tpu.memory_space<vmem>>, %arg10: memref<128x128xbf16, #tpu.memory_space<vmem>>, %arg11: memref<1x128xf32, #tpu.memory_space<vmem>>, %arg12: memref<128x128xf32, #tpu.memory_space<vmem>>) attributes {dimension_semantics = [#tpu.dimension_semantics<parallel>], iteration_bounds = array<i64: 2>, scalar_prefetch = 0 : i64, scratch_operands = 0 : i64, tpu.core_type = #tpu.core_type<tc>, window_params = [{transform_indices = @transform_0, window_bounds = array<i64: 128, 128>}, {pipeline_mode = #tpu.pipeline_mode<synchronous>, transform_indices = @transform_1, window_bounds = array<i64: 128, 1024>}, {pipeline_mode = #tpu.pipeline_mode<synchronous>, transform_indices = @transform_2, window_bounds = array<i64: 1, 1024>}, {pipeline_mode = #tpu.pipeline_mode<synchronous>, transform_indices = @transform_3, window_bounds = array<i64: 1024, 512>}, {pipeline_mode = #tpu.pipeline_mode<synchronous>, transform_indices = @transform_4, window_bounds = array<i64: 1, 512>}, {pipeline_mode = #tpu.pipeline_mode<synchronous>, transform_indices = @transform_5, window_bounds = array<i64: 512, 256>}, {pipeline_mode = #tpu.pipeline_mode<synchronous>, transform_indices = @transform_6, window_bounds = array<i64: 1, 256>}, {pipeline_mode = #tpu.pipeline_mode<synchronous>, transform_indices = @transform_7, window_bounds = array<i64: 256, 128>}, {pipeline_mode = #tpu.pipeline_mode<synchronous>, transform_indices = @transform_8, window_bounds = array<i64: 1, 128>}, {pipeline_mode = #tpu.pipeline_mode<synchronous>, transform_indices = @transform_9, window_bounds = array<i64: 128, 128>}, {pipeline_mode = #tpu.pipeline_mode<synchronous>, transform_indices = @transform_10, window_bounds = array<i64: 1, 128>}, {transform_indices = @transform_11, window_bounds = array<i64: 128, 128>}]} {
    %c0 = arith.constant 0 : index
    %c0_0 = arith.constant 0 : index
    %0 = vector.load %arg1[%c0, %c0_0] : memref<128x128xbf16, #tpu.memory_space<vmem>>, vector<128x128xbf16>
    %c0_1 = arith.constant 0 : index
    %c0_2 = arith.constant 0 : index
    %1 = vector.load %arg2[%c0_1, %c0_2] : memref<128x1024xbf16, #tpu.memory_space<vmem>>, vector<128x1024xbf16>
    %cst = arith.constant dense<0.000000e+00> : vector<128x1024xf32>
    %2 = tpu.matmul %0, %1, %cst {dimension_numbers = #tpu.dot_dimension_numbers<[1], [0], [0], [1], [0, 0, 1, 1], [], []>} : vector<128x128xbf16>, vector<128x1024xbf16>, vector<128x1024xf32> -> vector<128x1024xf32>
    %c0_3 = arith.constant 0 : index
    %c0_4 = arith.constant 0 : index
    %3 = vector.load %arg3[%c0_3, %c0_4] : memref<1x1024xf32, #tpu.memory_space<vmem>>, vector<1x1024xf32>
    %4 = vector.broadcast %3 : vector<1x1024xf32> to vector<128x1024xf32>
    %5 = arith.addf %2, %4 : vector<128x1024xf32>
    %cst_5 = arith.constant 0.000000e+00 : f32
    %6 = vector.broadcast %cst_5 : f32 to vector<128x1024xf32>
    %7 = arith.maximumf %5, %6 : vector<128x1024xf32>
    %8 = arith.truncf %7 : vector<128x1024xf32> to vector<128x1024xbf16>
    %c0_6 = arith.constant 0 : index
    %c0_7 = arith.constant 0 : index
    %9 = vector.load %arg4[%c0_6, %c0_7] : memref<1024x512xbf16, #tpu.memory_space<vmem>>, vector<1024x512xbf16>
    %cst_8 = arith.constant dense<0.000000e+00> : vector<128x512xf32>
    %10 = tpu.matmul %8, %9, %cst_8 {dimension_numbers = #tpu.dot_dimension_numbers<[1], [0], [0], [1], [0, 0, 1, 1], [], []>} : vector<128x1024xbf16>, vector<1024x512xbf16>, vector<128x512xf32> -> vector<128x512xf32>
    %c0_9 = arith.constant 0 : index
    %c0_10 = arith.constant 0 : index
    %11 = vector.load %arg5[%c0_9, %c0_10] : memref<1x512xf32, #tpu.memory_space<vmem>>, vector<1x512xf32>
    %12 = vector.broadcast %11 : vector<1x512xf32> to vector<128x512xf32>
    %13 = arith.addf %10, %12 : vector<128x512xf32>
    %cst_11 = arith.constant 0.000000e+00 : f32
    %14 = vector.broadcast %cst_11 : f32 to vector<128x512xf32>
    %15 = arith.maximumf %13, %14 : vector<128x512xf32>
    %16 = arith.truncf %15 : vector<128x512xf32> to vector<128x512xbf16>
    %c0_12 = arith.constant 0 : index
    %c0_13 = arith.constant 0 : index
    %17 = vector.load %arg6[%c0_12, %c0_13] : memref<512x256xbf16, #tpu.memory_space<vmem>>, vector<512x256xbf16>
    %cst_14 = arith.constant dense<0.000000e+00> : vector<128x256xf32>
    %18 = tpu.matmul %16, %17, %cst_14 {dimension_numbers = #tpu.dot_dimension_numbers<[1], [0], [0], [1], [0, 0, 1, 1], [], []>} : vector<128x512xbf16>, vector<512x256xbf16>, vector<128x256xf32> -> vector<128x256xf32>
    %c0_15 = arith.constant 0 : index
    %c0_16 = arith.constant 0 : index
    %19 = vector.load %arg7[%c0_15, %c0_16] : memref<1x256xf32, #tpu.memory_space<vmem>>, vector<1x256xf32>
    %20 = vector.broadcast %19 : vector<1x256xf32> to vector<128x256xf32>
    %21 = arith.addf %18, %20 : vector<128x256xf32>
    %cst_17 = arith.constant 0.000000e+00 : f32
    %22 = vector.broadcast %cst_17 : f32 to vector<128x256xf32>
    %23 = arith.maximumf %21, %22 : vector<128x256xf32>
    %24 = arith.truncf %23 : vector<128x256xf32> to vector<128x256xbf16>
    %c0_18 = arith.constant 0 : index
    %c0_19 = arith.constant 0 : index
    %25 = vector.load %arg8[%c0_18, %c0_19] : memref<256x128xbf16, #tpu.memory_space<vmem>>, vector<256x128xbf16>
    %cst_20 = arith.constant dense<0.000000e+00> : vector<128x128xf32>
    %26 = tpu.matmul %24, %25, %cst_20 {dimension_numbers = #tpu.dot_dimension_numbers<[1], [0], [0], [1], [0, 0, 1, 1], [], []>} : vector<128x256xbf16>, vector<256x128xbf16>, vector<128x128xf32> -> vector<128x128xf32>
    %c0_21 = arith.constant 0 : index
    %c0_22 = arith.constant 0 : index
    %27 = vector.load %arg9[%c0_21, %c0_22] : memref<1x128xf32, #tpu.memory_space<vmem>>, vector<1x128xf32>
    %28 = vector.broadcast %27 : vector<1x128xf32> to vector<128x128xf32>
    %29 = arith.addf %26, %28 : vector<128x128xf32>
    %cst_23 = arith.constant 0.000000e+00 : f32
    %30 = vector.broadcast %cst_23 : f32 to vector<128x128xf32>
    %31 = arith.maximumf %29, %30 : vector<128x128xf32>
    %32 = arith.truncf %31 : vector<128x128xf32> to vector<128x128xbf16>
    %c0_24 = arith.constant 0 : index
    %c0_25 = arith.constant 0 : index
    %33 = vector.load %arg10[%c0_24, %c0_25] : memref<128x128xbf16, #tpu.memory_space<vmem>>, vector<128x128xbf16>
    %cst_26 = arith.constant dense<0.000000e+00> : vector<128x128xf32>
    %34 = tpu.matmul %32, %33, %cst_26 {dimension_numbers = #tpu.dot_dimension_numbers<[1], [0], [0], [1], [0, 0, 1, 1], [], []>} : vector<128x128xbf16>, vector<128x128xbf16>, vector<128x128xf32> -> vector<128x128xf32>
    %c0_27 = arith.constant 0 : index
    %c0_28 = arith.constant 0 : index
    %35 = vector.load %arg11[%c0_27, %c0_28] : memref<1x128xf32, #tpu.memory_space<vmem>>, vector<1x128xf32>
    %36 = vector.broadcast %35 : vector<1x128xf32> to vector<128x128xf32>
    %37 = arith.addf %34, %36 : vector<128x128xf32>
    %cst_29 = arith.constant dense<0xFF800000> : vector<128xf32>
    %38 = vector.multi_reduction <maximumf>, %37, %cst_29 [1] : vector<128x128xf32> to vector<128xf32>
    %39 = vector.shape_cast %38 : vector<128xf32> to vector<128x1xf32>
    %40 = vector.broadcast %39 : vector<128x1xf32> to vector<128x128xf32>
    %41 = arith.subf %37, %40 : vector<128x128xf32>
    %42 = math.exp %41 : vector<128x128xf32>
    %cst_30 = arith.constant dense<0.000000e+00> : vector<128xf32>
    %43 = vector.multi_reduction <add>, %42, %cst_30 [1] : vector<128x128xf32> to vector<128xf32>
    %44 = vector.shape_cast %43 : vector<128xf32> to vector<128x1xf32>
    %45 = tpu.reciprocal %44 {approx = true} : vector<128x1xf32> -> vector<128x1xf32>
    %46 = vector.broadcast %45 : vector<128x1xf32> to vector<128x128xf32>
    %47 = arith.mulf %42, %46 : vector<128x128xf32>
    %c0_31 = arith.constant 0 : index
    %c0_32 = arith.constant 0 : index
    %48 = vector.load %arg12[%c0_31, %c0_32] : memref<128x128xf32, #tpu.memory_space<vmem>>, vector<128x128xf32>
    tpu.vector_store %arg12[%c0_31, %c0_32], %47 {strides = array<i32>} : memref<128x128xf32, #tpu.memory_space<vmem>>, vector<128x128xf32>,
    return
  }
  func.func @transform_0(%arg0: i32) -> (i32, i32) {
    %c0_i32 = arith.constant 0 : i32
    %c0_i32_0 = arith.constant 0 : i32
    return %arg0, %c0_i32 : i32, i32
  }
  func.func @transform_1(%arg0: i32) -> (i32, i32) {
    %c0_i32 = arith.constant 0 : i32
    %c0_i32_0 = arith.constant 0 : i32
    %c0_i32_1 = arith.constant 0 : i32
    return %c0_i32, %c0_i32_0 : i32, i32
  }
  func.func @transform_2(%arg0: i32) -> (i32, i32) {
    %c0_i32 = arith.constant 0 : i32
    %c0_i32_0 = arith.constant 0 : i32
    %c0_i32_1 = arith.constant 0 : i32
    return %c0_i32, %c0_i32_0 : i32, i32
  }
  func.func @transform_3(%arg0: i32) -> (i32, i32) {
    %c0_i32 = arith.constant 0 : i32
    %c0_i32_0 = arith.constant 0 : i32
    %c0_i32_1 = arith.constant 0 : i32
    return %c0_i32, %c0_i32_0 : i32, i32
  }
  func.func @transform_4(%arg0: i32) -> (i32, i32) {
    %c0_i32 = arith.constant 0 : i32
    %c0_i32_0 = arith.constant 0 : i32
    %c0_i32_1 = arith.constant 0 : i32
    return %c0_i32, %c0_i32_0 : i32, i32
  }
  func.func @transform_5(%arg0: i32) -> (i32, i32) {
    %c0_i32 = arith.constant 0 : i32
    %c0_i32_0 = arith.constant 0 : i32
    %c0_i32_1 = arith.constant 0 : i32
    return %c0_i32, %c0_i32_0 : i32, i32
  }
  func.func @transform_6(%arg0: i32) -> (i32, i32) {
    %c0_i32 = arith.constant 0 : i32
    %c0_i32_0 = arith.constant 0 : i32
    %c0_i32_1 = arith.constant 0 : i32
    return %c0_i32, %c0_i32_0 : i32, i32
  }
  func.func @transform_7(%arg0: i32) -> (i32, i32) {
    %c0_i32 = arith.constant 0 : i32
    %c0_i32_0 = arith.constant 0 : i32
    %c0_i32_1 = arith.constant 0 : i32
    return %c0_i32, %c0_i32_0 : i32, i32
  }
  func.func @transform_8(%arg0: i32) -> (i32, i32) {
    %c0_i32 = arith.constant 0 : i32
    %c0_i32_0 = arith.constant 0 : i32
    %c0_i32_1 = arith.constant 0 : i32
    return %c0_i32, %c0_i32_0 : i32, i32
  }
  func.func @transform_9(%arg0: i32) -> (i32, i32) {
    %c0_i32 = arith.constant 0 : i32
    %c0_i32_0 = arith.constant 0 : i32
    %c0_i32_1 = arith.constant 0 : i32
    return %c0_i32, %c0_i32_0 : i32, i32
  }
  func.func @transform_10(%arg0: i32) -> (i32, i32) {
    %c0_i32 = arith.constant 0 : i32
    %c0_i32_0 = arith.constant 0 : i32
    %c0_i32_1 = arith.constant 0 : i32
    return %c0_i32, %c0_i32_0 : i32, i32
  }
  func.func @transform_11(%arg0: i32) -> (i32, i32) {
    %c0_i32 = arith.constant 0 : i32
    %c0_i32_0 = arith.constant 0 : i32
    return %arg0, %c0_i32 : i32, i32
  }
}

</mosaic_0001>

<bundles_post_ra>
// kernel: tpu_custom_call.1
= control target key start
LH: loop header
LB: loop body
LE: loop exit
PB: predicated region body
PF: predicated region fallthrough
CT: control target
= control target key end

     0   :  { %s8607_s0 = inlined_call_operand.hbm [shape: bf16[256,128], index: 0, kind: input, shape index: {}]   ;;  %s8608_s1 = inlined_call_operand.hbm [shape: bf16[128,1024], index: 1, kind: input, shape index: {}]   ;;  %s8609_s2 = inlined_call_operand.hbm [shape: f32[1,1024], index: 2, kind: input, shape index: {}]   ;;  %s8610_s3 = inlined_call_operand.hbm [shape: bf16[1024,512], index: 3, kind: input, shape index: {}]   ;;  %s8611_s4 = inlined_call_operand.vmem [shape: f32[1,512], index: 4, kind: input, shape index: {}]   ;;  %s8612_s5 = inlined_call_operand.hbm [shape: bf16[512,256], index: 5, kind: input, shape index: {}]   ;;  %s8613_s6 = inlined_call_operand.vmem [shape: f32[1,256], index: 6, kind: input, shape index: {}]   ;;  %s8614_s7 = inlined_call_operand.hbm [shape: bf16[256,128], index: 7, kind: input, shape index: {}]   ;;  %s8615_s8 = inlined_call_operand.vmem [shape: f32[1,128], index: 8, kind: input, shape index: {}]   ;;  %s8616_s9 = inlined_call_operand.hbm [shape: bf16[128,128], index: 9, kind: input, shape index: {}]   ;;  %s8617_s10 = inlined_call_operand.vmem [shape: f32[1,128], index: 10, kind: input, shape index: {}]   ;;  %s8618_s11 = inlined_call_operand.hbm [shape: f32[256,128], index: 11, kind: output, shape index: {}]  }
   0x1   :  { %8623 = sst [smem:[#allocation20_spill]] %s8608_s1 }
   0x2   :  { %8624 = sst [smem:[#allocation21_spill]] %s8610_s3 }
   0x3   :  { %8625 = sst [smem:[#allocation22_spill]] %s8615_s8 }
   0x4   :  { %8626 = sst [smem:[#allocation23_spill]] %s8617_s10 }
   0x5   :  { %8627 = sst [smem:[#allocation24_spill]] %s8618_s11 }
   0x6   :  { %16 = vsyncpa [#allocation3], 0 }
   0x7   :  { %18 = vsyncpa [#allocation3 + $0x1], 0 }
   0x8   :  { %19 = vsyncpa [#allocation6], 0 }
   0x9   :  { %20 = vsyncpa [#allocation9], 0 }
   0xa   :  { %21 = vsyncpa [#allocation12], 0 }
   0xb   :  { %22 = vsyncpa [#allocation4], 0 }
   0xc   :  { %24 = vsyncpa [#allocation4 + $0x1], 0  ;;  %s7512_s17 = smov 0   ;;  %s7514_s18 = smov 0  }
   0xd   :  { %s7516_s19 = smov 0   ;;  %s7518_s20 = smov 0  }
   0xe LB: > { %s7433_s21 = smov [#allocation5]   ;;  %s7533_s23 = sadd.s32 4294967295, %s7431_s20   ;;  %s7431_s20 = sphi %s7518_s20, %s8655_s20   ;;  %s7427_s19 = sphi %s7516_s19, %s8654_s19   ;;  %s7423_s18 = sphi %s7514_s18, %s8653_s18   ;;  %s7419_s17 = sphi %s7512_s17, %s8652_s17  }
   0xf   : > { %s309_s22 = sshll.u32 %s7433_s21, 4  ;;  %p5584_p0 = scmp.ge.s32.totalorder %s7431_s20, 1  ;;  %s7538_s22 = int_to_ptr.vmem [resolvable:$true] %s309_s22 }
  0x10   : > { %p8620_p1 = scmp.eq.s32.totalorder %s7533_s23, 0  ;;  %p297_p2 = scmp.lt.s32.totalorder %s7431_s20, 3 }
  0x11   : > { %s7434_s25 = smov [#allocation8]   ;;  %s7435_s28 = smov [#allocation11]  }
  0x12   : > { %p7540_p3 = pnand %p5584_p0, %p297_p2  ;;  %s333_s26 = sshll.u32 %s7434_s25, 4  ;;  %s7553_s26 = int_to_ptr.vmem [resolvable:$true] %s333_s26 }
  0x13   : > { %s7555_s29 = sshll.u32 %s7435_s28, 4  ;;  %s8630_s1 = sld [smem:[#allocation20_spill]]  ;;  %s366_s29 = int_to_ptr.vmem [resolvable:$true] %s7555_s29 }
  0x14   : > { %s8628_s24 = scalar_select %p7540_p3, 1, 0 }
  0x15   : > { %p6489_p5 = pneg %p7540_p3 }
  0x17   : > { %p7549_p6 = pnand %p6489_p5, %p8620_p1 }
  0x19   : > { %s7155_s13 = scalar_lea.hbm %s8630_s1, 8192  ;;  %p7565_p8 = pneg %p7549_p6 }
  0x1a   : > { %p7156_p7 = scmp.ne.s32.totalorder %s8630_s1, %s7155_s13  ;;  %p7162_p11 = scmp.lt.u32.totalorder %s7155_s13, %s8630_s1 }
  0x1c   : > { %p7158_p9 = pnand %p7565_p8, %p7156_p7 }
  0x1e   : > { %p7159_p10 = pneg %p7158_p9 }
  0x20   : > { %p7164_p12 = pnand %p7162_p11, %p7159_p10 }
  0x22   : > { %7167 = shalt.err (!%p7164_p12)
}
  0x23   : > { %s7168_s28 = scalar_lea.vmem %s7538_s22, 8192  ;;  %p7176_p5 = scmp.lt.s32.totalorder %s7538_s22, %s7538_s22 }
  0x24   : > { %p7169_p13 = scmp.ne.s32.totalorder %s7538_s22, %s7168_s28  ;;  %p7177_p4 = scmp.lt.s32.totalorder %s7168_s28, %s7168_s28 }
  0x26   : > { %p7171_p0 = pnand %p7169_p13, %p7565_p8  ;;  %p7178_p7 = por %p7177_p4, %p7176_p5 }
  0x28   : > { %p7172_p2 = pneg %p7171_p0 }
  0x2a   : > { %p7179_p9 = pnand %p7178_p7, %p7172_p2 }
  0x2c   : > { %7182 = shalt.err (!%p7179_p9)
}
  0x2d   : > { %s7436_s30 = smov 512   ;;  %s7437_s12 = smov 32  }
  0x2e   : > { %6492 = dma.hbm_to_vmem [thread:$0]  (!%p7549_p6), %s8630_s1, 8192, %s7538_s22, [#allocation6], %s7436_s30, %s7436_s30, %s7437_s12  }
  0x2f   : > { %s8632_s3 = sld [smem:[#allocation21_spill]] }
  0x35   : > { %s7183_s25 = scalar_lea.hbm %s8632_s3, 32768 }
  0x36   : > { %p7184_p4 = scmp.ne.s32.totalorder %s8632_s3, %s7183_s25  ;;  %p7190_p12 = scmp.lt.u32.totalorder %s7183_s25, %s8632_s3 }
  0x38   : > { %p7186_p10 = pnand %p7184_p4, %p7565_p8 }
  0x3a   : > { %p7187_p11 = pneg %p7186_p10 }
  0x3c   : > { %p7192_p13 = pnand %p7190_p12, %p7187_p11 }
  0x3e   : > { %7195 = shalt.err (!%p7192_p13)
}
  0x3f   : > { %s7196_s22 = scalar_lea.vmem %s7553_s26, 32768  ;;  %p7204_p7 = scmp.lt.s32.totalorder %s7553_s26, %s7553_s26 }
  0x40   : > { %p7197_p0 = scmp.ne.s32.totalorder %s7553_s26, %s7196_s22  ;;  %p7205_p9 = scmp.lt.s32.totalorder %s7196_s22, %s7196_s22 }
  0x42   : > { %p7199_p2 = pnand %p7197_p0, %p7565_p8  ;;  %p7206_p4 = por %p7205_p9, %p7204_p7 }
  0x44   : > { %p7200_p5 = pneg %p7199_p2 }
  0x46   : > { %p7207_p10 = pnand %p7206_p4, %p7200_p5 }
  0x48   : > { %7210 = shalt.err (!%p7207_p10)
}
  0x49   : > { %s7438_s10 = smov 256   ;;  %s7439_s8 = smov 16  }
  0x4a   : > { %6498 = dma.hbm_to_vmem [thread:$0]  (!%p7549_p6), %s8632_s3, 32768, %s7553_s26, [#allocation9], %s7438_s10, %s7438_s10, %s7439_s8  }
  0x4b   : > { %s7211_s14 = scalar_lea.hbm %s8614_s7, 2048 }
  0x4c   : > { %p7212_p11 = scmp.ne.s32.totalorder %s8614_s7, %s7211_s14  ;;  %p7218_p0 = scmp.lt.u32.totalorder %s7211_s14, %s8614_s7 }
  0x4e   : > { %p7214_p12 = pnand %p7212_p11, %p7565_p8 }
  0x50   : > { %p7215_p13 = pneg %p7214_p12 }
  0x52   : > { %p7220_p2 = pnand %p7218_p0, %p7215_p13 }
  0x54   : > { %7223 = shalt.err (!%p7220_p2)
}
  0x55   : > { %s7224_s22 = scalar_lea.vmem %s366_s29, 2048  ;;  %p7232_p4 = scmp.lt.s32.totalorder %s366_s29, %s366_s29 }
  0x56   : > { %p7225_p5 = scmp.ne.s32.totalorder %s366_s29, %s7224_s22  ;;  %p7233_p10 = scmp.lt.s32.totalorder %s7224_s22, %s7224_s22 }
  0x58   : > { %p7227_p7 = pnand %p7225_p5, %p7565_p8  ;;  %p7234_p1 = por %p7233_p10, %p7232_p4 }
  0x5a   : > { %p7228_p9 = pneg %p7227_p7 }
  0x5c   : > { %p7235_p3 = pnand %p7234_p1, %p7228_p9 }
  0x5e   : > { %7238 = shalt.err (!%p7235_p3)
}
  0x5f   : > { %s7440_s26 = smov 64   ;;  %s7441_s10 = smov 4  }
  0x60   : > { %6504 = dma.hbm_to_vmem [thread:$0]  (!%p7549_p6), %s8614_s7, 2048, %s366_s29, [#allocation12], %s7440_s26, %s7440_s26, %s7441_s10  }
  0x61   : > { %s7442_s30 = smov [#allocation7]   ;;  %s7443_s13 = smov [#allocation10]  }
  0x62   : > { %s323_s12 = sshll.u32 %s7442_s30, 4  ;;  %s349_s14 = sshll.u32 %s7443_s13, 4  ;;  %s324_s12 = int_to_ptr.vmem [resolvable:$true] %s323_s12  ;;  %s350_s14 = int_to_ptr.vmem [resolvable:$true] %s349_s14 }
  0x63   : > { %s7239_s25 = scalar_lea.hbm %s8609_s2, 128 }
  0x64   : > { %p7240_p1 = scmp.ne.s32.totalorder %s8609_s2, %s7239_s25  ;;  %p7246_p12 = scmp.lt.u32.totalorder %s7239_s25, %s8609_s2 }
  0x66   : > { %p7242_p3 = pnand %p7240_p1, %p7565_p8 }
  0x68   : > { %p7243_p11 = pneg %p7242_p3 }
  0x6a   : > { %p7248_p13 = pnand %p7246_p12, %p7243_p11 }
  0x6c   : > { %7251 = shalt.err (!%p7248_p13)
}
  0x6d   : > { %s7252_s29 = scalar_lea.vmem %s324_s12, 128  ;;  %p7260_p7 = scmp.lt.s32.totalorder %s324_s12, %s324_s12 }
  0x6e   : > { %p7253_p0 = scmp.ne.s32.totalorder %s324_s12, %s7252_s29  ;;  %p7261_p9 = scmp.lt.s32.totalorder %s7252_s29, %s7252_s29 }
  0x70   : > { %p7255_p2 = pnand %p7253_p0, %p7565_p8  ;;  %p7262_p4 = por %p7261_p9, %p7260_p7 }
  0x72   : > { %p7256_p5 = pneg %p7255_p2 }
  0x74   : > { %p7263_p10 = pnand %p7262_p4, %p7256_p5 }
  0x76   : > { %7266 = shalt.err (!%p7263_p10)
}
  0x77   : > { %6495 = dma.hbm_to_vmem [thread:$0]  (!%p7549_p6), %s8609_s2, 128, %s324_s12, [#allocation6]  }
  0x78   : > { %s7267_s30 = scalar_lea.hbm %s8612_s5, 8192 }
  0x79   : > { %p7268_p1 = scmp.ne.s32.totalorder %s8612_s5, %s7267_s30  ;;  %p7274_p12 = scmp.lt.u32.totalorder %s7267_s30, %s8612_s5 }
  0x7b   : > { %p7270_p3 = pnand %p7268_p1, %p7565_p8 }
  0x7d   : > { %p7271_p11 = pneg %p7270_p3 }
  0x7f   : > { %p7276_p13 = pnand %p7274_p12, %p7271_p11 }
  0x81   : > { %7279 = shalt.err (!%p7276_p13)
}
  0x82   : > { %s7280_s28 = scalar_lea.vmem %s350_s14, 8192  ;;  %p7288_p7 = scmp.lt.s32.totalorder %s350_s14, %s350_s14 }
  0x83   : > { %p7281_p0 = scmp.ne.s32.totalorder %s350_s14, %s7280_s28  ;;  %p7289_p9 = scmp.lt.s32.totalorder %s7280_s28, %s7280_s28 }
  0x85   : > { %p7283_p2 = pnand %p7281_p0, %p7565_p8  ;;  %p7290_p4 = por %p7289_p9, %p7288_p7 }
  0x87   : > { %p7284_p5 = pneg %p7283_p2 }
  0x89   : > { %p7291_p10 = pnand %p7290_p4, %p7284_p5 }
  0x8b   : > { %7294 = shalt.err (!%p7291_p10)
}
  0x8c   : > { %s7444_s12 = smov 128   ;;  %s7445_s22 = smov 8  }
  0x8d   : > { %6501 = dma.hbm_to_vmem [thread:$0]  (!%p7549_p6), %s8612_s5, 8192, %s350_s14, [#allocation9], %s7444_s12, %s7444_s12, %s7445_s22  }
  0x8e   : > { %s7446_s11 = smov [#allocation13]   ;;  %s7295_s13 = scalar_lea.hbm %s8616_s9, 1024 }
  0x8f   : > { %s381_s1 = sshll.u32 %s7446_s11, 4  ;;  %p7296_p1 = scmp.ne.s32.totalorder %s8616_s9, %s7295_s13  ;;  %s382_s1 = int_to_ptr.vmem [resolvable:$true] %s381_s1 }
  0x90   : > { %p7302_p12 = scmp.lt.u32.totalorder %s7295_s13, %s8616_s9 }
  0x91   : > { %p7298_p3 = pnand %p7296_p1, %p7565_p8 }
  0x93   : > { %p7299_p11 = pneg %p7298_p3 }
  0x95   : > { %p7304_p13 = pnand %p7302_p12, %p7299_p11 }
  0x97   : > { %7307 = shalt.err (!%p7304_p13)
}
  0x98   : > { %s7308_s14 = scalar_lea.vmem %s382_s1, 1024  ;;  %p7316_p7 = scmp.lt.s32.totalorder %s382_s1, %s382_s1 }
  0x99   : > { %p7309_p0 = scmp.ne.s32.totalorder %s382_s1, %s7308_s14  ;;  %p7317_p9 = scmp.lt.s32.totalorder %s7308_s14, %s7308_s14 }
  0x9b   : > { %p7311_p2 = pnand %p7309_p0, %p7565_p8  ;;  %p7318_p4 = por %p7317_p9, %p7316_p7 }
  0x9d   : > { %p7312_p5 = pneg %p7311_p2 }
  0x9f   : > { %p7319_p10 = pnand %p7318_p4, %p7312_p5 }
  0xa1   : > { %7322 = shalt.err (!%p7319_p10)
}
  0xa2   : > { %6507 = dma.hbm_to_vmem [thread:$0]  (!%p7549_p6), %s8616_s9, 1024, %s382_s1, [#allocation12], %s7440_s26, %s7440_s26, %s7441_s10  }
  0xa3   : > { %s5583_s27 = sadd.s32 4294967294, %s7431_s20   ;;  %s7690_s16 = sadd.s32 1, %s7431_s20  }
  0xa4   : > { %s34_s29 = ssub.s32 %s7431_s20, %s7690_s16  ;;  %s37_s8 = sadd.s32 1, %s7427_s19 }
  0xa5   : > { %p35_p8 = scmp.eq.s32.totalorder %s34_s29, 0  ;;  %p44_p1 = scmp.ne.s32.totalorder %s7427_s19, %s7423_s18 }
  0xa6   : > { %p45_p3 = scmp.eq.s32.totalorder %s7431_s20, 0  ;;  %p50_p11 = scmp.ne.s32.totalorder %s7423_s18, %s7419_s17 }
  0xa7   : > { %s7701_s11 = scalar_select %p35_p8, %s7427_s19, %s37_s8  }
  0xa8   : > { %p7703_p12 = por %p45_p3, %p44_p1  ;;  %p8634_p13 = scmp.eq.s32.totalorder %s7533_s23, 0 }
  0xa9   : > { %p284_p0 = scmp.eq.s32.totalorder %s7533_s23, 1  ;;  %p290_p2 = scmp.eq.s32.totalorder %s5583_s27, 1 }
  0xaa   : > { %p7709_p6 = por %p8634_p13, %p50_p11  ;;  %p6522_p5 = scmp.lt.s32.totalorder %s7431_s20, 2 }
  0xab   : > { %s398_s30 = sand.u32 1, %s7427_s19   ;;  %p7716_p7 = por %p284_p0, %p44_p1 }
  0xac   : > { %p7720_p9 = por %p290_p2, %p50_p11  ;;  %s5592_s21 = sshll.u32 %s398_s30, 6 }
  0xad   : > { %s8636_s13 = scalar_select %p7716_p7, 1, 0 }
  0xae   : > { %s8637_s15 = scalar_select %p7720_p9, 1, 0 }
  0xaf   : > { %s6027_s25 = sshll.u32 %s7431_s20, 10  ;;  %s402_s22 = scalar_lea.vmem [#allocation2], %s5592_s21 }
  0xb0   : > { %s7728_s12 = scalar_lea.hbm %s8607_s0, %s6027_s25  ;;  %s409_s27 = sshll.u32 %s402_s22, 4  ;;  %s7730_s27 = int_to_ptr.vmem [resolvable:$true] %s409_s27 }
  0xb1   : > { %p7734_p4 = pnand %p6522_p5, %p7703_p12  ;;  %s7738_s8 = scalar_lea.sflag [#allocation3], %s398_s30 }
  0xb2   : > { %s7323_s28 = scalar_lea.hbm %s7728_s12, 1024  ;;  %s7328_s3 = scalar_lea.hbm %s8607_s0, 2048 }
  0xb3   : > { %p7324_p10 = scmp.ne.s32.totalorder %s7728_s12, %s7323_s28  ;;  %p7325_p8 = pneg %p7734_p4 }
  0xb4   : > { %p7329_p11 = scmp.lt.u32.totalorder %s7728_s12, %s8607_s0  ;;  %p7330_p12 = scmp.lt.u32.totalorder %s7328_s3, %s7323_s28 }
  0xb5   : > { %p7326_p1 = pnand %p7325_p8, %p7324_p10  ;;  %p7332_p0 = scmp.lt.u32.totalorder %s7323_s28, %s7728_s12 }
  0xb6   : > { %p7331_p13 = por %p7330_p12, %p7329_p11 }
  0xb7   : > { %p7327_p3 = pneg %p7326_p1 }
  0xb8   : > { %p7333_p2 = por %p7332_p0, %p7331_p13 }
  0xba   : > { %p7334_p5 = pnand %p7333_p2, %p7327_p3 }
  0xbc   : > { %7337 = shalt.err (!%p7334_p5)
}
  0xbd   : > { %s7338_s30 = scalar_lea.vmem %s7730_s27, 1024  ;;  %s7447_s21 = smov [#allocation2]  }
  0xbe   : > { %p7339_p10 = scmp.ne.s32.totalorder %s7730_s27, %s7338_s30  ;;  %s7343_s25 = sshll.u32 %s7447_s21, 4  ;;  %s7344_s25 = int_to_ptr.vmem [resolvable:$false] %s7343_s25 }
  0xbf   : > { %s7345_s14 = scalar_lea.vmem %s7344_s25, 2048  ;;  %p7346_p7 = scmp.lt.s32.totalorder %s7730_s27, %s7344_s25 }
  0xc0   : > { %p7341_p1 = pnand %p7339_p10, %p7325_p8  ;;  %p7347_p11 = scmp.lt.s32.totalorder %s7345_s14, %s7338_s30 }
  0xc2   : > { %p7342_p9 = pneg %p7341_p1  ;;  %p7348_p12 = por %p7347_p11, %p7346_p7 }
  0xc4   : > { %p7349_p13 = pnand %p7348_p12, %p7342_p9 }
  0xc6   : > { %7352 = shalt.err (!%p7349_p13)
}
  0xc7   : > { %6511 = dma.hbm_to_vmem [thread:$0]  (!%p7734_p4), %s7728_s12, 1024, %s7730_s27, %s7738_s8, %s7440_s26, %s7440_s26, %s7441_s10  }
  0xc8   : > { %p8639_p8 = scmp.ne.s32.totalorder %s8628_s24, 0 }
  0xc9   : > { %s7772_s28 = sand.u32 (!%p8639_p8), 1, %s7423_s18  }
  0xca   : > { %421 = sbr.rel (%p8639_p8) target bundleno = 2005 (0x7d5), region = 64  ;;  %s5596_s3 = sshll.u32 (!%p8639_p8), %s7772_s28, 6 }
  0xcb   : > { %s424_s22 = scalar_lea.sflag (!%p8639_p8), [#allocation3], %s7772_s28  ;;  %s7776_s30 = scalar_lea.vmem (!%p8639_p8), [#allocation2], %s5596_s3 }
  0xd1   : > { %7398 = dma.done.wait (%p7709_p6), %s424_s22, 1024  }
  0xd2   : > { %7400 = vsyncadd (%p7709_p6), %s424_s22, 4294966272  ;;  %p8640_p7 = scmp.eq.s32.totalorder %s7533_s23, 0 }
  0xd4   : > { %7402 = dma.done.wait (%p8640_p7), [#allocation6], 8320   ;;  %p8641_p9 = pmov %p8640_p7 }
  0xd5   : > { %p8642_p4 = pmov %p8640_p7 }
  0xd6   : > { %7404 = vsyncadd (%p8641_p9), [#allocation6], 4294958976 }
  0xd7   : > { %7406 = dma.done.wait (%p8642_p4), [#allocation9], 40960   ;;  %p8643_p3 = pmov %p8642_p4 }
  0xd9   : > { %7408 = vsyncadd (%p8643_p3), [#allocation9], 4294926336  ;;  %p8644_p0 = pmov %p8643_p3 }
  0xdb   : > { %7410 = dma.done.wait (%p8644_p0), [#allocation12], 3072   ;;  %p8645_p2 = pmov %p8644_p0 }
  0xdc   : > { %v7448_v0 = vmov 0   ;;  %v509_v1 = vld [vmem:[#allocation5] sm:$0xff]  ;;  %v510_v17 = vld [vmem:[#allocation5 + $0x8] sm:$0xff]  ;;  %v511_v55 = vld [vmem:[#allocation5 + $0x10] sm:$0xff]  ;;  %s8646_s29 = sld [smem:[#allocation22_spill]]  ;;  %s8647_s25 = sld [smem:[#allocation23_spill]] }
  0xdd   : > { %7412 = vsyncadd (%p8645_p2), [#allocation12], 4294964224  ;;  %1015 = vmatprep.mubr.bf16.mxu0 %v7448_v0  ;;  %1128 = vmatprep.mubr.bf16.mxu1 %v7448_v0  ;;  %v513_v2 = vld [vmem:[#allocation5 + $0x20] sm:$0xff]  ;;  %v514_v18 = vld [vmem:[#allocation5 + $0x28] sm:$0xff]  ;;  %s5603_s14 = sshll.u32 %s7772_s28, 7  ;;  %s6028_s22 = sshll.u32 %s7533_s23, 11 }
  0xde   : > { %v517_v3 = vld [vmem:[#allocation5 + $0x40] sm:$0xff]  ;;  %v5613_v4 = vcombine.high %v509_v1, %v513_v2  ;;  %v5612_v5 = vcombine.low %v509_v1, %v513_v2  ;;  %v5615_v20 = vcombine.high %v510_v17, %v514_v18  ;;  %v5614_v21 = vcombine.low %v510_v17, %v514_v18  ;;  %v518_v22 = vld [vmem:[#allocation5 + $0x48] sm:$0xff]  ;;  %v515_v56 = vld [vmem:[#allocation5 + $0x30] sm:$0xff]  ;;  %s8523_s3 = scalar_lea.vmem [#allocation14], %s5603_s14  ;;  %s8648_s10 = sld [smem:[#allocation24_spill]] }
  0xdf   : > { %v521_v6 = vld [vmem:[#allocation5 + $0x60] sm:$0xff]  ;;  %v522_v23 = vld [vmem:[#allocation5 + $0x68] sm:$0xff]  ;;  %v5617_v62 = vcombine.high %v511_v55, %v515_v56  ;;  %v519_v1 = vld [vmem:[#allocation5 + $0x50] sm:$0xff]  ;;  %s5440_s23 = scalar_lea.sflag [#allocation4], %s7772_s28  ;;  %p8649_p5 = scmp.ne.s32.totalorder %s8636_s13, 0 }
  0xe0   : > { %v5621_v7 = vcombine.high %v517_v3, %v521_v6  ;;  %v525_v8 = vld [vmem:[#allocation5 + $0x80] sm:$0xff]  ;;  %983 = vmatprep.subr.bf16.mxu0 %v5613_v4  ;;  %v5620_v10 = vcombine.low %v517_v3, %v521_v6  ;;  %v526_v24 = vld [vmem:[#allocation5 + $0x88] sm:$0xff]  ;;  %1096 = vmatprep.subr.bf16.mxu1 %v5615_v20  ;;  %v5623_v26 = vcombine.high %v518_v22, %v522_v23  ;;  %v523_v2 = vld [vmem:[#allocation5 + $0x70] sm:$0xff]  ;;  %s7449_s27 = smov [#allocation14]  }
  0xe1   : > { %v529_v9 = vld [vmem:[#allocation5 + $0xa0] sm:$0xff]  ;;  %984 = vmatpush1.bf16.msra.mxu0 %v5612_v5  ;;  %v530_v27 = vld [vmem:[#allocation5 + $0xa8] sm:$0xff]  ;;  %1097 = vmatpush1.bf16.msra.mxu1 %v5614_v21  ;;  %v5622_v29 = vcombine.low %v518_v22, %v522_v23  ;;  %v5616_v5 = vcombine.low %v511_v55, %v515_v56  ;;  %v535_v17 = vld [vmem:[#allocation5 + $0xd0] sm:$0xff] }
  0xe2   : > { %985 = vmatprep.subr.bf16.mxu0 %v5621_v7  ;;  %v5629_v11 = vcombine.high %v525_v8, %v529_v9  ;;  %v533_v12 = vld [vmem:[#allocation5 + $0xc0] sm:$0xff]  ;;  %v5628_v14 = vcombine.low %v525_v8, %v529_v9  ;;  %1098 = vmatprep.subr.bf16.mxu1 %v5623_v26  ;;  %v5631_v32 = vcombine.high %v526_v24, %v530_v27  ;;  %v534_v33 = vld [vmem:[#allocation5 + $0xc8] sm:$0xff]  ;;  %v527_v9 = vld [vmem:[#allocation5 + $0x90] sm:$0xff] }
  0xe3   : > { %v537_v13 = vld [vmem:[#allocation5 + $0xe0] sm:$0xff]  ;;  %v538_v34 = vld [vmem:[#allocation5 + $0xe8] sm:$0xff]  ;;  %v5630_v37 = vcombine.low %v526_v24, %v530_v27  ;;  %v5625_v7 = vcombine.high %v519_v1, %v523_v2  ;;  %v520_v20 = vld [vmem:[#allocation5 + $0x58] sm:$0xff] }
  0xe4   : > { %v5637_v15 = vcombine.high %v533_v12, %v537_v13  ;;  %v541_v16 = vld [vmem:[#allocation5 + $0x100] sm:$0xff]  ;;  %v5636_v25 = vcombine.low %v533_v12, %v537_v13  ;;  %v5639_v40 = vcombine.high %v534_v33, %v538_v34  ;;  %v542_v41 = vld [vmem:[#allocation5 + $0x108] sm:$0xff]  ;;  %v5638_v45 = vcombine.low %v534_v33, %v538_v34  ;;  %v516_v12 = vld [vmem:[#allocation5 + $0x38] sm:$0xff]  ;;  %s8558_s1 = scalar_lea.hbm %s8648_s10, %s6028_s22 }
  0xe5   : > { %986 = vmatpush1.bf16.msra.mxu0 %v5620_v10  ;;  %v545_v19 = vld [vmem:[#allocation5 + $0x120] sm:$0xff]  ;;  %1099 = vmatpush1.bf16.msra.mxu1 %v5622_v29  ;;  %v546_v42 = vld [vmem:[#allocation5 + $0x128] sm:$0xff]  ;;  %v531_v10 = vld [vmem:[#allocation5 + $0xb0] sm:$0xff]  ;;  %v5624_v13 = vcombine.low %v519_v1, %v523_v2 }
  0xe6   : > { %987 = vmatprep.subr.bf16.mxu0 %v5629_v11  ;;  %v5645_v28 = vcombine.high %v541_v16, %v545_v19  ;;  %v549_v30 = vld [vmem:[#allocation5 + $0x140] sm:$0xff]  ;;  %v5644_v35 = vcombine.low %v541_v16, %v545_v19  ;;  %1100 = vmatprep.subr.bf16.mxu1 %v5631_v32  ;;  %v5647_v48 = vcombine.high %v542_v41, %v546_v42  ;;  %v550_v49 = vld [vmem:[#allocation5 + $0x148] sm:$0xff]  ;;  %v512_v11 = vld [vmem:[#allocation5 + $0x18] sm:$0xff] }
  0xe7   : > { %v553_v31 = vld [vmem:[#allocation5 + $0x160] sm:$0xff]  ;;  %v554_v50 = vld [vmem:[#allocation5 + $0x168] sm:$0xff]  ;;  %v5646_v53 = vcombine.low %v542_v41, %v546_v42  ;;  %v5619_v18 = vcombine.high %v512_v11, %v516_v12  ;;  %v539_v19 = vld [vmem:[#allocation5 + $0xf0] sm:$0xff]  ;;  %v5632_v22 = vcombine.low %v527_v9, %v531_v10 }
  0xe8   : > { %v5653_v36 = vcombine.high %v549_v30, %v553_v31  ;;  %v557_v38 = vld [vmem:[#allocation5 + $0x180] sm:$0xff]  ;;  %v5652_v43 = vcombine.low %v549_v30, %v553_v31  ;;  %v5655_v54 = vcombine.high %v550_v49, %v554_v50  ;;  %v558_v57 = vld [vmem:[#allocation5 + $0x188] sm:$0xff]  ;;  %v5654_v61 = vcombine.low %v550_v49, %v554_v50  ;;  %v524_v21 = vld [vmem:[#allocation5 + $0x78] sm:$0xff] }
  0xe9   : > { %988 = vmatpush1.bf16.msra.mxu0 %v5628_v14  ;;  %v561_v39 = vld [vmem:[#allocation5 + $0x1a0] sm:$0xff]  ;;  %1101 = vmatpush1.bf16.msra.mxu1 %v5630_v37  ;;  %v562_v58 = vld [vmem:[#allocation5 + $0x1a8] sm:$0xff]  ;;  %v5641_v23 = vcombine.high %v535_v17, %v539_v19  ;;  %v543_v24 = vld [vmem:[#allocation5 + $0x110] sm:$0xff]  ;;  %v5627_v27 = vcombine.high %v520_v20, %v524_v21  ;;  %v5640_v30 = vcombine.low %v535_v17, %v539_v19 }
  0xea   : > { %989 = vmatprep.subr.bf16.mxu0 %v5637_v15  ;;  %v5661_v44 = vcombine.high %v557_v38, %v561_v39  ;;  %v565_v46 = vld [vmem:[#allocation5 + $0x1c0] sm:$0xff]  ;;  %1102 = vmatprep.subr.bf16.mxu1 %v5639_v40  ;;  %v5660_v51 = vcombine.low %v557_v38, %v561_v39  ;;  %v5663_v63 = vcombine.high %v558_v57, %v562_v58  ;;  %v566_v3 = vld [vmem:[#allocation5 + $0x1c8] sm:$0xff]  ;;  %v547_v26 = vld [vmem:[#allocation5 + $0x130] sm:$0xff] }
  0xeb   : > { %v569_v47 = vld [vmem:[#allocation5 + $0x1e0] sm:$0xff]  ;;  %v570_v4 = vld [vmem:[#allocation5 + $0x1e8] sm:$0xff]  ;;  %v5662_v6 = vcombine.low %v558_v57, %v562_v58  ;;  %v5633_v15 = vcombine.high %v527_v9, %v531_v10  ;;  %v532_v29 = vld [vmem:[#allocation5 + $0xb8] sm:$0xff]  ;;  %v5649_v32 = vcombine.high %v543_v24, %v547_v26  ;;  %v5626_v34 = vcombine.low %v520_v20, %v524_v21 }
  0xec   : > { %v5669_v52 = vcombine.high %v565_v46, %v569_v47  ;;  %v5668_v59 = vcombine.low %v565_v46, %v569_v47  ;;  %v7797_v60 = vld [vmem:[%s7776_s30] sm:$0xff]   ;;  %v5671_v8 = vcombine.high %v566_v3, %v570_v4  ;;  %v5670_v14 = vcombine.low %v566_v3, %v570_v4  ;;  %v7802_v16 = vld [vmem:[%s7776_s30 + $0x8] sm:$0xff]   ;;  %v7809_v31 = vld [vmem:[%s7776_s30 + $0x10] sm:$0xff]  }
  0xed   : > { %990 = vmatpush1.bf16.msra.mxu0 %v5636_v25  ;;  %1103 = vmatpush1.bf16.msra.mxu1 %v5638_v45  ;;  %v5618_v25 = vcombine.low %v512_v11, %v516_v12  ;;  %v551_v33 = vld [vmem:[#allocation5 + $0x150] sm:$0xff]  ;;  %v536_v37 = vld [vmem:[#allocation5 + $0xd8] sm:$0xff]  ;;  %v5648_v39 = vcombine.low %v543_v24, %v547_v26  ;;  %v7823_v3 = vld [vmem:[%s7776_s30 + $0x20] sm:$0xff]  }
  0xee   : > { %991 = vmatprep.subr.bf16.mxu0 %v5645_v28  ;;  %1104 = vmatprep.subr.bf16.mxu1 %v5647_v48  ;;  %v528_v28 = vld [vmem:[#allocation5 + $0x98] sm:$0xff]  ;;  %v559_v41 = vld [vmem:[#allocation5 + $0x190] sm:$0xff]  ;;  %v7829_v9 = vld [vmem:[%s7776_s30 + $0x28] sm:$0xff]  }
  0xef   : > { %v540_v38 = vld [vmem:[#allocation5 + $0xf8] sm:$0xff]  ;;  %v5634_v42 = vcombine.low %v528_v28, %v532_v29  ;;  %v567_v50 = vld [vmem:[#allocation5 + $0x1d0] sm:$0xff] }
  0xf0   : > { %v544_v45 = vld [vmem:[#allocation5 + $0x118] sm:$0xff]  ;;  %v6592_v10 = vld [vmem:[#allocation8 + $0xc] ss:$16 sps:$4 sm:$0xff]   ;;  %v6590_v19 = vld [vmem:[#allocation8 + $0x8] ss:$16 sps:$4 sm:$0xff]  }
  0xf1   : > { %992 = vmatpush1.bf16.msra.mxu0 %v5644_v35  ;;  %1105 = vmatpush1.bf16.msra.mxu1 %v5646_v53  ;;  %v555_v35 = vld [vmem:[#allocation5 + $0x170] sm:$0xff]  ;;  %v548_v46 = vld [vmem:[#allocation5 + $0x138] sm:$0xff] }
  0xf2   : > { %993 = vmatprep.subr.bf16.mxu0 %v5653_v36  ;;  %1106 = vmatprep.subr.bf16.mxu1 %v5655_v54  ;;  %v5635_v36 = vcombine.high %v528_v28, %v532_v29  ;;  %v5657_v40 = vcombine.high %v551_v33, %v555_v35  ;;  %v5656_v47 = vcombine.low %v551_v33, %v555_v35  ;;  %v7816_v48 = vld [vmem:[%s7776_s30 + $0x18] sm:$0xff]   ;;  %v7836_v12 = vld [vmem:[%s7776_s30 + $0x30] sm:$0xff]  }
  0xf3   : > { %v5651_v53 = vcombine.high %v544_v45, %v548_v46  ;;  %v552_v54 = vld [vmem:[#allocation5 + $0x158] sm:$0xff]  ;;  %v5650_v58 = vcombine.low %v544_v45, %v548_v46  ;;  %v6598_v20 = vld [vmem:[#allocation8 + $0x2c] ss:$16 sps:$4 sm:$0xff]   ;;  %v6632_v45 = vld [vmem:[#allocation8 + $0xe8] ss:$16 sps:$4 sm:$0xff]  }
  0xf4   : > { %v556_v55 = vld [vmem:[#allocation5 + $0x178] sm:$0xff]  ;;  %v6604_v24 = vld [vmem:[#allocation8 + $0x4c] ss:$16 sps:$4 sm:$0xff]  }
  0xf5   : > { %994 = vmatpush1.bf16.msra.mxu0 %v5652_v43  ;;  %1107 = vmatpush1.bf16.msra.mxu1 %v5654_v61  ;;  %v563_v43 = vld [vmem:[#allocation5 + $0x1b0] sm:$0xff]  ;;  %v560_v61 = vld [vmem:[#allocation5 + $0x198] sm:$0xff]  ;;  %v5658_v1 = vcombine.low %v552_v54, %v556_v55 }
  0xf6   : > { %995 = vmatprep.subr.bf16.mxu0 %v5661_v44  ;;  %1108 = vmatprep.subr.bf16.mxu1 %v5663_v63  ;;  %v5643_v44 = vcombine.high %v536_v37, %v540_v38  ;;  %v5665_v49 = vcombine.high %v559_v41, %v563_v43  ;;  %v5664_v56 = vcombine.low %v559_v41, %v563_v43  ;;  %v6589_v2 = vld [vmem:[#allocation8 + $0x4] ss:$16 sps:$4 sm:$0xff]   ;;  %v6593_v17 = vld [vmem:[#allocation8 + $0x20] ss:$16 sps:$4 sm:$0xff]   ;;  %v6610_v28 = vld [vmem:[#allocation8 + $0x6c] ss:$16 sps:$4 sm:$0xff]  }
  0xf7   : > { %v6599_v21 = vld [vmem:[#allocation8 + $0x40] ss:$16 sps:$4 sm:$0xff]   ;;  %v6613_v26 = vld [vmem:[#allocation8 + $0x84] ss:$16 sps:$4 sm:$0xff]   ;;  %v6626_v41 = vld [vmem:[#allocation8 + $0xc8] ss:$16 sps:$4 sm:$0xff]  }
  0xf8   : > { %v6611_v29 = vld [vmem:[#allocation8 + $0x80] ss:$16 sps:$4 sm:$0xff]   ;;  %v6625_v35 = vld [vmem:[#allocation8 + $0xc4] ss:$16 sps:$4 sm:$0xff]   ;;  %v6634_v43 = vld [vmem:[#allocation8 + $0xec] ss:$16 sps:$4 sm:$0xff]  }
  0xf9   : > { %996 = vmatpush1.bf16.msra.mxu0 %v5660_v51  ;;  %1109 = vmatpush1.bf16.msra.mxu1 %v5662_v6  ;;  %v5642_v51 = vcombine.low %v536_v37, %v540_v38  ;;  %v572_v6 = vld [vmem:[#allocation5 + $0x1f8] sm:$0xff]  ;;  %v6620_v38 = vld [vmem:[#allocation8 + $0xa8] ss:$16 sps:$4 sm:$0xff]   ;;  %v6640_v46 = vld [vmem:[#allocation8 + $0x10c] ss:$16 sps:$4 sm:$0xff]  }
  0xfa   : > { %997 = vmatprep.subr.bf16.mxu0 %v5669_v52  ;;  %1110 = vmatprep.subr.bf16.mxu1 %v5671_v8  ;;  %v571_v52 = vld [vmem:[#allocation5 + $0x1f0] sm:$0xff]  ;;  %v6617_v33 = vld [vmem:[#allocation8 + $0xa0] ss:$16 sps:$4 sm:$0xff]  }
  0xfb   : > { %v5673_v57 = vcombine.high %v567_v50, %v571_v52  ;;  %v5672_v63 = vcombine.low %v567_v50, %v571_v52  ;;  %v6623_v37 = vld [vmem:[#allocation8 + $0xc0] ss:$16 sps:$4 sm:$0xff]   ;;  %v6649_v50 = vld [vmem:[#allocation8 + $0x144] ss:$16 sps:$4 sm:$0xff]  }
  0xfc   : > { %v6647_v52 = vld [vmem:[#allocation8 + $0x140] ss:$16 sps:$4 sm:$0xff]  }
  0xfd   : > { %998 = vmatpush1.bf16.msra.mxu0 %v5668_v59  ;;  %1111 = vmatpush1.bf16.msra.mxu1 %v5670_v14  ;;  %v5659_v59 = vcombine.high %v552_v54, %v556_v55  ;;  %v6587_v14 = vld [vmem:[#allocation8] ss:$16 sps:$4 sm:$0xff]   ;;  %v6652_v54 = vld [vmem:[#allocation8 + $0x14c] ss:$16 sps:$4 sm:$0xff]  }
  0xfe   : > { %1209 = vmatprep.subr.bf16.mxu0 %v5617_v62  ;;  %1322 = vmatprep.subr.bf16.mxu1 %v5619_v18  ;;  %v564_v62 = vld [vmem:[#allocation5 + $0x1b8] sm:$0xff] }
  0xff   : > { %v5667_v4 = vcombine.high %v560_v61, %v564_v62  ;;  %v6601_v18 = vld [vmem:[#allocation8 + $0x44] ss:$16 sps:$4 sm:$0xff]   ;;  %v6653_v55 = vld [vmem:[#allocation8 + $0x160] ss:$16 sps:$4 sm:$0xff]  }
 0x100   : > { %1016 = vmatmul.mubr.bf16.vlgmr.msra.gmra.mrb[0].mxu0 %v7797_v60  ;;  %1129 = vmatmul.mubr.bf16.vlgmr.msra.gmra.mrb[0].mxu1 %v7797_v60 }
 0x101   : > { %1025 = vmatprep.mubr.bf16.mxu0 %v7448_v0  ;;  %1210 = vmatpush1.bf16.msra.mxu0 %v5616_v5  ;;  %v568_v5 = vld [vmem:[#allocation5 + $0x1d8] sm:$0xff] }
 0x102   : > { %1211 = vmatprep.subr.bf16.mxu0 %v5625_v7  ;;  %1138 = vmatprep.mubr.bf16.mxu1 %v7448_v0  ;;  %v5666_v7 = vcombine.low %v560_v61, %v564_v62  ;;  %v5675_v8 = vcombine.high %v568_v5, %v572_v6  ;;  %v5674_v11 = vcombine.low %v568_v5, %v572_v6  ;;  %v6656_v61 = vld [vmem:[#allocation8 + $0x168] ss:$16 sps:$4 sm:$0xff]   ;;  %v6667_v62 = vld [vmem:[#allocation8 + $0x1a4] ss:$16 sps:$4 sm:$0xff]   ;;  %v6671_v5 = vld [vmem:[#allocation8 + $0x1c0] ss:$16 sps:$4 sm:$0xff]  }
 0x103   : > { %1323 = vmatpush1.bf16.msra.mxu1 %v5618_v25  ;;  %v6605_v25 = vld [vmem:[#allocation8 + $0x60] ss:$16 sps:$4 sm:$0xff]   ;;  %v6668_v6 = vld [vmem:[#allocation8 + $0x1a8] ss:$16 sps:$4 sm:$0xff]  }
 0x104   : > { %1324 = vmatprep.subr.bf16.mxu1 %v5627_v27  ;;  %v6602_v27 = vld [vmem:[#allocation8 + $0x48] ss:$16 sps:$4 sm:$0xff]  }
 0x105   : > { %1212 = vmatpush1.bf16.msra.mxu0 %v5624_v13  ;;  %v7843_v13 = vld [vmem:[%s7776_s30 + $0x38] sm:$0xff]   ;;  %s5453_s30 = sshll.u32 %s8523_s3, 4  ;;  %s8560_s30 = int_to_ptr.vmem [resolvable:$true] %s5453_s30 }
 0x106   : > { %1213 = vmatprep.subr.bf16.mxu0 %v5633_v15  ;;  %v6595_v15 = vld [vmem:[#allocation8 + $0x24] ss:$16 sps:$4 sm:$0xff]   ;;  %s7353_s12 = scalar_lea.vmem %s8560_s30, 2048 }
 0x107   : > { %1325 = vmatpush1.bf16.msra.mxu1 %v5626_v34  ;;  %v6614_v34 = vld [vmem:[#allocation8 + $0x88] ss:$16 sps:$4 sm:$0xff]   ;;  %p7354_p6 = scmp.ne.s32.totalorder %s8560_s30, %s7353_s12 }
 0x108   : > { %1026 = vmatmul.mubr.bf16.gmra.mrb[4].mxu0 %v7802_v16  ;;  %1326 = vmatprep.subr.bf16.mxu1 %v5635_v36  ;;  %v6622_v36 = vld [vmem:[#allocation8 + $0xac] ss:$16 sps:$4 sm:$0xff]  }
 0x109   : > { %1035 = vmatprep.mubr.bf16.mxu0 %v7448_v0  ;;  %1214 = vmatpush1.bf16.msra.mxu0 %v5632_v22  ;;  %v6607_v22 = vld [vmem:[#allocation8 + $0x64] ss:$16 sps:$4 sm:$0xff]   ;;  %p7355_p10 = pnand %p7354_p6, %p8649_p5 }
 0x10a   : > { %1215 = vmatprep.subr.bf16.mxu0 %v5641_v23  ;;  %1139 = vmatmul.mubr.bf16.gmra.mrb[4].mxu1 %v7802_v16  ;;  %v6596_v23 = vld [vmem:[#allocation8 + $0x28] ss:$16 sps:$4 sm:$0xff]  }
 0x10b   : > { %1148 = vmatprep.mubr.bf16.mxu1 %v7448_v0  ;;  %1327 = vmatpush1.bf16.msra.mxu1 %v5634_v42  ;;  %v6637_v42 = vld [vmem:[#allocation8 + $0x104] ss:$16 sps:$4 sm:$0xff]   ;;  %p7356_p1 = pneg %p7355_p10 }
 0x10c   : > { %1328 = vmatprep.subr.bf16.mxu1 %v5643_v44  ;;  %v6635_v44 = vld [vmem:[#allocation8 + $0x100] ss:$16 sps:$4 sm:$0xff]  }
 0x10d   : > { %1216 = vmatpush1.bf16.msra.mxu0 %v5640_v30  ;;  %v6619_v30 = vld [vmem:[#allocation8 + $0xa4] ss:$16 sps:$4 sm:$0xff]  }
 0x10e   : > { %1217 = vmatprep.subr.bf16.mxu0 %v5649_v32  ;;  %v6608_v32 = vld [vmem:[#allocation8 + $0x68] ss:$16 sps:$4 sm:$0xff]  }
 0x10f   : > { %1329 = vmatpush1.bf16.msra.mxu1 %v5642_v51  ;;  %v6646_v51 = vld [vmem:[#allocation8 + $0x12c] ss:$16 sps:$4 sm:$0xff]  }
 0x110   : > { %1036 = vmatmul.mubr.bf16.gmra.mrb[8].mxu0 %v7809_v31  ;;  %1330 = vmatprep.subr.bf16.mxu1 %v5651_v53  ;;  %v6644_v53 = vld [vmem:[#allocation8 + $0x128] ss:$16 sps:$4 sm:$0xff]  }
 0x111   : > { %1045 = vmatprep.mubr.bf16.mxu0 %v7448_v0  ;;  %1218 = vmatpush1.bf16.msra.mxu0 %v5648_v39  ;;  %v6628_v39 = vld [vmem:[#allocation8 + $0xcc] ss:$16 sps:$4 sm:$0xff]  }
 0x112   : > { %1219 = vmatprep.subr.bf16.mxu0 %v5657_v40  ;;  %1149 = vmatmul.mubr.bf16.gmra.mrb[8].mxu1 %v7809_v31  ;;  %v6629_v40 = vld [vmem:[#allocation8 + $0xe0] ss:$16 sps:$4 sm:$0xff]  }
 0x113   : > { %1158 = vmatprep.mubr.bf16.mxu1 %v7448_v0  ;;  %1331 = vmatpush1.bf16.msra.mxu1 %v5650_v58  ;;  %v6658_v58 = vld [vmem:[#allocation8 + $0x16c] ss:$16 sps:$4 sm:$0xff]  }
 0x114   : > { %1332 = vmatprep.subr.bf16.mxu1 %v5659_v59  ;;  %v6659_v59 = vld [vmem:[#allocation8 + $0x180] ss:$16 sps:$4 sm:$0xff]  }
 0x115   : > { %1220 = vmatpush1.bf16.msra.mxu0 %v5656_v47  ;;  %v6641_v47 = vld [vmem:[#allocation8 + $0x120] ss:$16 sps:$4 sm:$0xff]  }
 0x116   : > { %1221 = vmatprep.subr.bf16.mxu0 %v5665_v49  ;;  %v6638_v49 = vld [vmem:[#allocation8 + $0x108] ss:$16 sps:$4 sm:$0xff]  }
 0x117   : > { %1333 = vmatpush1.bf16.msra.mxu1 %v5658_v1  ;;  %v6665_v1 = vld [vmem:[#allocation8 + $0x1a0] ss:$16 sps:$4 sm:$0xff]  }
 0x118   : > { %1046 = vmatmul.mubr.bf16.gmra.mrb[12].mxu0 %v7816_v48  ;;  %1334 = vmatprep.subr.bf16.mxu1 %v5667_v4  ;;  %v6670_v4 = vld [vmem:[#allocation8 + $0x1ac] ss:$16 sps:$4 sm:$0xff]  }
 0x119   : > { %1055 = vmatprep.mubr.bf16.mxu0 %v7448_v0  ;;  %1222 = vmatpush1.bf16.msra.mxu0 %v5664_v56  ;;  %v6650_v56 = vld [vmem:[#allocation8 + $0x148] ss:$16 sps:$4 sm:$0xff]  }
 0x11a   : > { %1223 = vmatprep.subr.bf16.mxu0 %v5673_v57  ;;  %1159 = vmatmul.mubr.bf16.gmra.mrb[12].mxu1 %v7816_v48  ;;  %v6661_v57 = vld [vmem:[#allocation8 + $0x184] ss:$16 sps:$4 sm:$0xff]  }
 0x11b   : > { %1168 = vmatprep.mubr.bf16.mxu1 %v7448_v0  ;;  %1335 = vmatpush1.bf16.msra.mxu1 %v5666_v7  ;;  %v6679_v7 = vld [vmem:[#allocation8 + $0x1e4] ss:$16 sps:$4 sm:$0xff]  }
 0x11c   : > { %1336 = vmatprep.subr.bf16.mxu1 %v5675_v8  ;;  %v6676_v8 = vld [vmem:[#allocation8 + $0x1cc] ss:$16 sps:$4 sm:$0xff]  }
 0x11d   : > { %1224 = vmatpush1.bf16.msra.mxu0 %v5672_v63  ;;  %v6664_v63 = vld [vmem:[#allocation8 + $0x18c] ss:$16 sps:$4 sm:$0xff]  }
 0x11e   : > { %3185 = vmatprep.subr.bf16.mxu0 %v6589_v2  ;;  %v6662_v2 = vld [vmem:[#allocation8 + $0x188] ss:$16 sps:$4 sm:$0xff]  }
 0x11f   : > { %1337 = vmatpush1.bf16.msra.mxu1 %v5674_v11  ;;  %v6674_v11 = vld [vmem:[#allocation8 + $0x1c8] ss:$16 sps:$4 sm:$0xff]  }
 0x120   : > { %1056 = vmatmul.mubr.bf16.gmra.mrb[16].mxu0 %v7823_v3  ;;  %3637 = vmatprep.subr.bf16.mxu1 %v6592_v10  ;;  %v6685_v10 = vld [vmem:[#allocation8 + $0x204] ss:$16 sps:$4 sm:$0xff]  }
 0x121   : > { %1065 = vmatprep.mubr.bf16.mxu0 %v7448_v0 }
 0x122   : > { %1169 = vmatmul.mubr.bf16.gmra.mrb[16].mxu1 %v7823_v3 }
 0x123   : > { %1178 = vmatprep.mubr.bf16.mxu1 %v7448_v0 }
 0x128   : > { %1066 = vmatmul.mubr.bf16.gmra.mrb[20].mxu0 %v7829_v9 }
 0x129   : > { %1075 = vmatprep.mubr.bf16.mxu0 %v7448_v0 }
 0x12a   : > { %1179 = vmatmul.mubr.bf16.gmra.mrb[20].mxu1 %v7829_v9 }
 0x12b   : > { %1188 = vmatprep.mubr.bf16.mxu1 %v7448_v0 }
 0x130   : > { %1076 = vmatmul.mubr.bf16.gmra.mrb[24].mxu0 %v7836_v12 }
 0x131   : > { %1085 = vmatprep.mubr.bf16.mxu0 %v7448_v0 }
 0x132   : > { %1189 = vmatmul.mubr.bf16.gmra.mrb[24].mxu1 %v7836_v12 }
 0x133   : > { %1198 = vmatprep.mubr.bf16.mxu1 %v7448_v0 }
 0x138   : > { %1086 = vmatmul.mubr.bf16.gmra.mrb[28].mxu0 %v7843_v13 }
 0x139   : > { %1241 = vmatprep.mubr.bf16.mxu0 %v7448_v0 }
 0x13a   : > { %1199 = vmatmul.mubr.bf16.gmra.mrb[28].mxu1 %v7843_v13 }
 0x13b   : > { %1354 = vmatprep.mubr.bf16.mxu1 %v7448_v0 }
 0x140   : > { %1242 = vmatmul.mubr.bf16.vlgmr.msra.gmra.mrb[32].mxu0 %v7797_v60 }
 0x141   : > { %1251 = vmatprep.mubr.bf16.mxu0 %v7448_v0  ;;  %3186 = vmatpush1.bf16.msra.mxu0 %v6587_v14  ;;  %v6682_v14 = vld [vmem:[#allocation8 + $0x1ec] ss:$16 sps:$4 sm:$0xff]  }
 0x142   : > { %3187 = vmatprep.subr.bf16.mxu0 %v6595_v15  ;;  %1355 = vmatmul.mubr.bf16.vlgmr.msra.gmra.mrb[32].mxu1 %v7797_v60  ;;  %v6616_v60 = vld [vmem:[#allocation8 + $0x8c] ss:$16 sps:$4 sm:$0xff]   ;;  %v6680_v15 = vld [vmem:[#allocation8 + $0x1e8] ss:$16 sps:$4 sm:$0xff]  }
 0x143   : > { %3638 = vmatpush1.bf16.msra.mxu1 %v6590_v19  ;;  %1364 = vmatprep.mubr.bf16.mxu1 %v7448_v0  ;;  %v7887_v19 = vld [vmem:[#allocation7] sm:$0xff] }
 0x144   : > { %3639 = vmatprep.subr.bf16.mxu1 %v6598_v20 }
 0x145   : > { %3188 = vmatpush1.bf16.msra.mxu0 %v6593_v17  ;;  %v6688_v17 = vld [vmem:[#allocation8 + $0x20c] ss:$16 sps:$4 sm:$0xff]  }
 0x146   : > { %3189 = vmatprep.subr.bf16.mxu0 %v6601_v18 }
 0x147   : > { %3640 = vmatpush1.bf16.msra.mxu1 %v6596_v23 }
 0x148   : > { %1252 = vmatmul.mubr.bf16.gmra.mrb[36].mxu0 %v7802_v16  ;;  %3641 = vmatprep.subr.bf16.mxu1 %v6604_v24 }
 0x149   : > { %1261 = vmatprep.mubr.bf16.mxu0 %v7448_v0  ;;  %3190 = vmatpush1.bf16.msra.mxu0 %v6599_v21 }
 0x14a   : > { %3191 = vmatprep.subr.bf16.mxu0 %v6607_v22  ;;  %1365 = vmatmul.mubr.bf16.gmra.mrb[36].mxu1 %v7802_v16  ;;  %v6631_v16 = vld [vmem:[#allocation8 + $0xe4] ss:$16 sps:$4 sm:$0xff]  }
 0x14b   : > { %3642 = vmatpush1.bf16.msra.mxu1 %v6602_v27  ;;  %1374 = vmatprep.mubr.bf16.mxu1 %v7448_v0 }
 0x14c   : > { %3643 = vmatprep.subr.bf16.mxu1 %v6610_v28 }
 0x14d   : > { %3192 = vmatpush1.bf16.msra.mxu0 %v6605_v25 }
 0x14e   : > { %3193 = vmatprep.subr.bf16.mxu0 %v6613_v26 }
 0x14f   : > { %3644 = vmatpush1.bf16.msra.mxu1 %v6608_v32 }
 0x150   : > { %1262 = vmatmul.mubr.bf16.gmra.mrb[40].mxu0 %v7809_v31  ;;  %3645 = vmatprep.subr.bf16.mxu1 %v6616_v60 }
 0x151   : > { %1271 = vmatprep.mubr.bf16.mxu0 %v7448_v0  ;;  %3194 = vmatpush1.bf16.msra.mxu0 %v6611_v29 }
 0x152   : > { %3195 = vmatprep.subr.bf16.mxu0 %v6619_v30  ;;  %1375 = vmatmul.mubr.bf16.gmra.mrb[40].mxu1 %v7809_v31  ;;  %v6643_v31 = vld [vmem:[#allocation8 + $0x124] ss:$16 sps:$4 sm:$0xff]  }
 0x153   : > { %3646 = vmatpush1.bf16.msra.mxu1 %v6614_v34  ;;  %1384 = vmatprep.mubr.bf16.mxu1 %v7448_v0 }
 0x154   : > { %3647 = vmatprep.subr.bf16.mxu1 %v6622_v36 }
 0x155   : > { %3196 = vmatpush1.bf16.msra.mxu0 %v6617_v33 }
 0x156   : > { %3197 = vmatprep.subr.bf16.mxu0 %v6625_v35 }
 0x157   : > { %3648 = vmatpush1.bf16.msra.mxu1 %v6620_v38 }
 0x158   : > { %1272 = vmatmul.mubr.bf16.gmra.mrb[44].mxu0 %v7816_v48  ;;  %3649 = vmatprep.subr.bf16.mxu1 %v6628_v39 }
 0x159   : > { %1281 = vmatprep.mubr.bf16.mxu0 %v7448_v0  ;;  %3198 = vmatpush1.bf16.msra.mxu0 %v6623_v37 }
 0x15a   : > { %3199 = vmatprep.subr.bf16.mxu0 %v6631_v16  ;;  %1385 = vmatmul.mubr.bf16.gmra.mrb[44].mxu1 %v7816_v48  ;;  %v6655_v48 = vld [vmem:[#allocation8 + $0x164] ss:$16 sps:$4 sm:$0xff]  }
 0x15b   : > { %3650 = vmatpush1.bf16.msra.mxu1 %v6626_v41  ;;  %1394 = vmatprep.mubr.bf16.mxu1 %v7448_v0  ;;  %v6686_v41 = vld [vmem:[#allocation8 + $0x208] ss:$16 sps:$4 sm:$0xff]  }
 0x15c   : > { %3651 = vmatprep.subr.bf16.mxu1 %v6634_v43 }
 0x15d   : > { %3200 = vmatpush1.bf16.msra.mxu0 %v6629_v40  ;;  %v6683_v40 = vld [vmem:[#allocation8 + $0x200] ss:$16 sps:$4 sm:$0xff]  }
 0x15e   : > { %3201 = vmatprep.subr.bf16.mxu0 %v6637_v42 }
 0x15f   : > { %3652 = vmatpush1.bf16.msra.mxu1 %v6632_v45  ;;  %v6694_v45 = vld [vmem:[#allocation8 + $0x22c] ss:$16 sps:$4 sm:$0xff]  }
 0x160   : > { %1282 = vmatmul.mubr.bf16.gmra.mrb[48].mxu0 %v7823_v3  ;;  %3653 = vmatprep.subr.bf16.mxu1 %v6640_v46 }
 0x161   : > { %1291 = vmatprep.mubr.bf16.mxu0 %v7448_v0  ;;  %3202 = vmatpush1.bf16.msra.mxu0 %v6635_v44  ;;  %v6691_v44 = vld [vmem:[#allocation8 + $0x224] ss:$16 sps:$4 sm:$0xff]  }
 0x162   : > { %3203 = vmatprep.subr.bf16.mxu0 %v6643_v31  ;;  %1395 = vmatmul.mubr.bf16.gmra.mrb[48].mxu1 %v7823_v3  ;;  %v6673_v3 = vld [vmem:[#allocation8 + $0x1c4] ss:$16 sps:$4 sm:$0xff]  }
 0x163   : > { %3654 = vmatpush1.bf16.msra.mxu1 %v6638_v49  ;;  %1404 = vmatprep.mubr.bf16.mxu1 %v7448_v0 }
 0x164   : > { %3655 = vmatprep.subr.bf16.mxu1 %v6646_v51 }
 0x165   : > { %3204 = vmatpush1.bf16.msra.mxu0 %v6641_v47 }
 0x166   : > { %3205 = vmatprep.subr.bf16.mxu0 %v6649_v50 }
 0x167   : > { %3656 = vmatpush1.bf16.msra.mxu1 %v6644_v53  ;;  %v6689_v53 = vld [vmem:[#allocation8 + $0x220] ss:$16 sps:$4 sm:$0xff]  }
 0x168   : > { %1292 = vmatmul.mubr.bf16.gmra.mrb[52].mxu0 %v7829_v9  ;;  %3657 = vmatprep.subr.bf16.mxu1 %v6652_v54 }
 0x169   : > { %1301 = vmatprep.mubr.bf16.mxu0 %v7448_v0  ;;  %3206 = vmatpush1.bf16.msra.mxu0 %v6647_v52 }
 0x16a   : > { %3207 = vmatprep.subr.bf16.mxu0 %v6655_v48  ;;  %1405 = vmatmul.mubr.bf16.gmra.mrb[52].mxu1 %v7829_v9  ;;  %v6677_v9 = vld [vmem:[#allocation8 + $0x1e0] ss:$16 sps:$4 sm:$0xff]  }
 0x16b   : > { %3658 = vmatpush1.bf16.msra.mxu1 %v6650_v56  ;;  %1414 = vmatprep.mubr.bf16.mxu1 %v7448_v0  ;;  %v6692_v56 = vld [vmem:[#allocation8 + $0x228] ss:$16 sps:$4 sm:$0xff]  }
 0x16c   : > { %3659 = vmatprep.subr.bf16.mxu1 %v6658_v58 }
 0x16d   : > { %3208 = vmatpush1.bf16.msra.mxu0 %v6653_v55 }
 0x16e   : > { %3209 = vmatprep.subr.bf16.mxu0 %v6661_v57  ;;  %v6697_v57 = vld [vmem:[#allocation8 + $0x244] ss:$16 sps:$4 sm:$0xff]  }
 0x16f   : > { %3660 = vmatpush1.bf16.msra.mxu1 %v6656_v61 }
 0x170   : > { %1302 = vmatmul.mubr.bf16.gmra.mrb[56].mxu0 %v7836_v12  ;;  %3661 = vmatprep.subr.bf16.mxu1 %v6664_v63 }
 0x171   : > { %1311 = vmatprep.mubr.bf16.mxu0 %v7448_v0  ;;  %3210 = vmatpush1.bf16.msra.mxu0 %v6659_v59 }
 0x172   : > { %3211 = vmatprep.subr.bf16.mxu0 %v6667_v62  ;;  %1415 = vmatmul.mubr.bf16.gmra.mrb[56].mxu1 %v7836_v12  ;;  %v575_v12 = vlaneseq }
 0x173   : > { %3662 = vmatpush1.bf16.msra.mxu1 %v6662_v2  ;;  %1424 = vmatprep.mubr.bf16.mxu1 %v7448_v0 }
 0x174   : > { %3663 = vmatprep.subr.bf16.mxu1 %v6670_v4  ;;  %v7882_v0 = vshrl.u32 %v575_v12, 7 }
 0x175   : > { %3212 = vmatpush1.bf16.msra.mxu0 %v6665_v1  ;;  %v6700_v1 = vld [vmem:[#allocation8 + $0x24c] ss:$16 sps:$4 sm:$0xff]  }
 0x176   : > { %3213 = vmatprep.subr.bf16.mxu0 %v6673_v3  ;;  %v7885_v18 = vsub.s32 0, %v7882_v0  ;;  %v7890_v20 = vsub.s32 1, %v7882_v0  ;;  %v585_v27 = vsub.s32 2, %v7882_v0  ;;  %v589_v30 = vsub.s32 3, %v7882_v0 }
 0x177   : > { %3664 = vmatpush1.bf16.msra.mxu1 %v6668_v6 }
 0x178   : > { %1312 = vmatmul.mubr.bf16.gmra.mrb[60].mxu0 %v7843_v13  ;;  %3665 = vmatprep.subr.bf16.mxu1 %v6676_v8  ;;  %v7898_v21 = vrot.slane %v7887_v19, %v7890_v20  ;;  %v7909_v36 = vrot.slane %v7887_v19, %v585_v27  ;;  %v7914_v38 = vrot.slane %v7887_v19, %v589_v30 }
 0x179   : > { %3214 = vmatpush1.bf16.msra.mxu0 %v6671_v5 }
 0x17a   : > { %3215 = vmatprep.subr.bf16.mxu0 %v6679_v7  ;;  %1425 = vmatmul.mubr.bf16.gmra.mrb[60].mxu1 %v7843_v13  ;;  %v7894_v13 = vrot.slane %v7887_v19, %v7885_v18 }
 0x17b   : > { %3666 = vmatpush1.bf16.msra.mxu1 %v6674_v11  ;;  %v6695_v11 = vld [vmem:[#allocation8 + $0x240] ss:$16 sps:$4 sm:$0xff]  }
 0x17c   : > { %3667 = vmatprep.subr.bf16.mxu1 %v6682_v14  ;;  %v6698_v14 = vld [vmem:[#allocation8 + $0x248] ss:$16 sps:$4 sm:$0xff]  }
 0x17d   : > { %3216 = vmatpush1.bf16.msra.mxu0 %v6677_v9 }
 0x17e   : > { %3298 = vmatprep.subr.bf16.mxu0 %v6685_v10 }
 0x17f   : > { %3668 = vmatpush1.bf16.msra.mxu1 %v6680_v15 }
 0x180   : > { %3750 = vmatprep.subr.bf16.mxu1 %v6688_v17 }
 0x1d3   : > { %v1017_v22 = vpop.f32.mrb[0].mxu0  ;;  %v1130_v31 = vpop.f32.mrb[0].mxu1 }
 0x1d4   : > { %v1018_v23 = vadd.f32 %v1017_v22, %v7894_v13  ;;  %v1019_v24 = vpop.f32.mrb[1].mxu0  ;;  %v1131_v49 = vadd.f32 %v1130_v31, %v7909_v36  ;;  %v1132_v50 = vpop.f32.mrb[1].mxu1  ;;  %v6703_v22 = vld [vmem:[#allocation8 + $0x264] ss:$16 sps:$4 sm:$0xff]   ;;  %v6712_v31 = vld [vmem:[#allocation8 + $0x28c] ss:$16 sps:$4 sm:$0xff]  }
 0x1d5   : > { %v1020_v25 = vadd.f32 %v1019_v24, %v7898_v21  ;;  %v1021_v26 = vpop.f32.mrb[2].mxu0  ;;  %v1133_v48 = vadd.f32 %v1132_v50, %v7914_v38  ;;  %v1134_v54 = vpop.f32.mrb[2].mxu1 }
 0x1d6   : > { %v1022_v28 = vadd.f32 %v1021_v26, %v7894_v13  ;;  %v1023_v29 = vpop.f32.mrb[3].mxu0  ;;  %v1435_v60 = vmax.f32 %v1018_v23, 0.0  ;;  %v1437_v58 = vmax.f32 %v1131_v49, 0.0  ;;  %v1135_v59 = vadd.f32 %v1134_v54, %v7909_v36  ;;  %v1136_v61 = vpop.f32.mrb[3].mxu1  ;;  %v6706_v23 = vld [vmem:[#allocation8 + $0x26c] ss:$16 sps:$4 sm:$0xff]  }
 0x1d7   : > { %v1024_v32 = vadd.f32 %v1023_v29, %v7898_v21  ;;  %v1436_v34 = vmax.f32 %v1020_v25, 0.0  ;;  %v1438_v2 = vmax.f32 %v1133_v48, 0.0  ;;  %v1137_v3 = vadd.f32 %v1136_v61, %v7914_v38  ;;  %v6715_v61 = vld [vmem:[#allocation8 + $0x2a4] ss:$16 sps:$4 sm:$0xff]  }
 0x1d8   : > { %v1443_v33 = vmax.f32 %v1022_v28, 0.0  ;;  %v1445_v6 = vmax.f32 %v1135_v59, 0.0 }
 0x1d9   : > { %v1444_v35 = vmax.f32 %v1024_v32, 0.0  ;;  %v1446_v8 = vmax.f32 %v1137_v3, 0.0 }
 0x1da   : > { %v1563_v37 = vpack.c.bf16 %v1443_v33, %v1435_v60  ;;  %v7924_v15 = vpack.c.bf16 %v1445_v6, %v1437_v58 }
 0x1db   : > { %v1564_v16 = vpack.c.bf16 %v1444_v35, %v1436_v34  ;;  %v1027_v39 = vpop.f32.mrb[4].mxu0  ;;  %v7927_v24 = vpack.c.bf16 %v1446_v8, %v1438_v2  ;;  %v6701_v34 = vld [vmem:[#allocation8 + $0x260] ss:$16 sps:$4 sm:$0xff]  }
 0x1dc   : > { %v1028_v42 = vadd.f32 %v1027_v39, %v7894_v13  ;;  %v1029_v43 = vpop.f32.mrb[5].mxu0  ;;  %v6704_v39 = vld [vmem:[#allocation8 + $0x268] ss:$16 sps:$4 sm:$0xff]   ;;  %v6713_v8 = vld [vmem:[#allocation8 + $0x2a0] ss:$16 sps:$4 sm:$0xff]  }
 0x1dd   : > { %v1030_v46 = vadd.f32 %v1029_v43, %v7898_v21  ;;  %v1031_v47 = vpop.f32.mrb[6].mxu0  ;;  %3217 = vmatprep.mubr.bf16.mxu0 %v1564_v16  ;;  %3669 = vmatprep.mubr.bf16.mxu1 %v1564_v16  ;;  %v1140_v25 = vpop.f32.mrb[4].mxu1 }
 0x1de   : > { %v1032_v51 = vadd.f32 %v1031_v47, %v7894_v13  ;;  %v1033_v52 = vpop.f32.mrb[7].mxu0  ;;  %3218 = vmatmul.mubr.bf16.vlgmr.msra.gmra.mrb[64].mxu0 %v1563_v37  ;;  %3670 = vmatmul.mubr.bf16.vlgmr.msra.gmra.mrb[64].mxu1 %v1563_v37  ;;  %v1451_v62 = vmax.f32 %v1028_v42, 0.0  ;;  %v1141_v29 = vadd.f32 %v1140_v25, %v7909_v36  ;;  %v1142_v32 = vpop.f32.mrb[5].mxu1 }
 0x1df   : > { %v1034_v55 = vadd.f32 %v1033_v52, %v7898_v21  ;;  %3299 = vmatpush1.bf16.msra.mxu0 %v6683_v40  ;;  %3751 = vmatpush1.bf16.msra.mxu1 %v6686_v41  ;;  %v1452_v4 = vmax.f32 %v1030_v46, 0.0  ;;  %v1143_v35 = vadd.f32 %v1142_v32, %v7914_v38  ;;  %v1144_v37 = vpop.f32.mrb[6].mxu1  ;;  %v6709_v40 = vld [vmem:[#allocation8 + $0x284] ss:$16 sps:$4 sm:$0xff]  }
 0x1e0   : > { %v1459_v63 = vmax.f32 %v1032_v51, 0.0  ;;  %3300 = vmatprep.subr.bf16.mxu0 %v6691_v44  ;;  %3752 = vmatprep.subr.bf16.mxu1 %v6694_v45  ;;  %v1453_v41 = vmax.f32 %v1141_v29, 0.0  ;;  %v1145_v42 = vadd.f32 %v1144_v37, %v7909_v36  ;;  %v1146_v43 = vpop.f32.mrb[7].mxu1 }
 0x1e1   : > { %v1460_v5 = vmax.f32 %v1034_v55, 0.0  ;;  %v1454_v46 = vmax.f32 %v1143_v35, 0.0  ;;  %v1147_v47 = vadd.f32 %v1146_v43, %v7914_v38  ;;  %v6707_v55 = vld [vmem:[#allocation8 + $0x280] ss:$16 sps:$4 sm:$0xff]  }
 0x1e2   : > { %v1571_v7 = vpack.c.bf16 %v1459_v63, %v1451_v62  ;;  %v1461_v51 = vmax.f32 %v1145_v42, 0.0  ;;  %v6718_v62 = vld [vmem:[#allocation8 + $0x2ac] ss:$16 sps:$4 sm:$0xff]  }
 0x1e3   : > { %v1572_v9 = vpack.c.bf16 %v1460_v5, %v1452_v4  ;;  %3301 = vmatpush1.bf16.msra.mxu0 %v6689_v53  ;;  %v1037_v10 = vpop.f32.mrb[8].mxu0  ;;  %3753 = vmatpush1.bf16.msra.mxu1 %v6692_v56  ;;  %v1462_v53 = vmax.f32 %v1147_v47, 0.0  ;;  %v6710_v56 = vld [vmem:[#allocation8 + $0x288] ss:$16 sps:$4 sm:$0xff]  }
 0x1e4   : > { %v1038_v17 = vadd.f32 %v1037_v10, %v7894_v13  ;;  %v1039_v12 = vpop.f32.mrb[9].mxu0  ;;  %3302 = vmatprep.subr.bf16.mxu0 %v6697_v57  ;;  %3754 = vmatprep.subr.bf16.mxu1 %v6700_v1  ;;  %v7936_v57 = vpack.c.bf16 %v1461_v51, %v1453_v41  ;;  %v6722_v41 = vld [vmem:[#allocation8 + $0x2c8] ss:$16 sps:$4 sm:$0xff]  }
 0x1e5   : > { %v1040_v26 = vadd.f32 %v1039_v12, %v7898_v21  ;;  %v1041_v28 = vpop.f32.mrb[10].mxu0  ;;  %3227 = vmatprep.mubr.bf16.mxu0 %v1572_v9  ;;  %3679 = vmatprep.mubr.bf16.mxu1 %v1572_v9  ;;  %v7939_v63 = vpack.c.bf16 %v1462_v53, %v1454_v46  ;;  %v1150_v1 = vpop.f32.mrb[8].mxu1 }
 0x1e6   : > { %v1042_v60 = vadd.f32 %v1041_v28, %v7894_v13  ;;  %v1043_v33 = vpop.f32.mrb[11].mxu0  ;;  %3228 = vmatmul.mubr.bf16.gmra.mrb[68].mxu0 %v1571_v7  ;;  %3680 = vmatmul.mubr.bf16.gmra.mrb[68].mxu1 %v1571_v7  ;;  %v1467_v44 = vmax.f32 %v1038_v17, 0.0  ;;  %v1151_v4 = vadd.f32 %v1150_v1, %v7909_v36  ;;  %v1152_v5 = vpop.f32.mrb[9].mxu1  ;;  %v6721_v17 = vld [vmem:[#allocation8 + $0x2c4] ss:$16 sps:$4 sm:$0xff]  }
 0x1e7   : > { %v1044_v16 = vadd.f32 %v1043_v33, %v7898_v21  ;;  %3303 = vmatpush1.bf16.msra.mxu0 %v6695_v11  ;;  %3755 = vmatpush1.bf16.msra.mxu1 %v6698_v14  ;;  %v1468_v49 = vmax.f32 %v1040_v26, 0.0  ;;  %v1153_v9 = vadd.f32 %v1152_v5, %v7914_v38  ;;  %v1154_v10 = vpop.f32.mrb[10].mxu1  ;;  %v6716_v14 = vld [vmem:[#allocation8 + $0x2a8] ss:$16 sps:$4 sm:$0xff]   ;;  %v6724_v28 = vld [vmem:[#allocation8 + $0x2cc] ss:$16 sps:$4 sm:$0xff]  }
 0x1e8   : > { %v1475_v45 = vmax.f32 %v1042_v60, 0.0  ;;  %3304 = vmatprep.subr.bf16.mxu0 %v6703_v22  ;;  %3756 = vmatprep.subr.bf16.mxu1 %v6706_v23  ;;  %v1469_v12 = vmax.f32 %v1151_v4, 0.0  ;;  %v1155_v22 = vadd.f32 %v1154_v10, %v7909_v36  ;;  %v1156_v23 = vpop.f32.mrb[11].mxu1  ;;  %v6736_v5 = vld [vmem:[#allocation8 + $0x30c] ss:$16 sps:$4 sm:$0xff]  }
 0x1e9   : > { %v1476_v50 = vmax.f32 %v1044_v16, 0.0  ;;  %v1470_v29 = vmax.f32 %v1153_v9, 0.0  ;;  %v1157_v32 = vadd.f32 %v1156_v23, %v7914_v38  ;;  %v6734_v23 = vld [vmem:[#allocation8 + $0x308] ss:$16 sps:$4 sm:$0xff]  }
 0x1ea   : > { %v1579_v52 = vpack.c.bf16 %v1475_v45, %v1467_v44  ;;  %v6727_v45 = vld [vmem:[#allocation8 + $0x2e4] ss:$16 sps:$4 sm:$0xff]  }
 0x1eb   : > { %v1580_v48 = vpack.c.bf16 %v1476_v50, %v1468_v49  ;;  %3305 = vmatpush1.bf16.msra.mxu0 %v6701_v34  ;;  %v1047_v54 = vpop.f32.mrb[12].mxu0  ;;  %3757 = vmatpush1.bf16.msra.mxu1 %v6704_v39  ;;  %v1477_v34 = vmax.f32 %v1155_v22, 0.0  ;;  %v1478_v37 = vmax.f32 %v1157_v32, 0.0  ;;  %v6731_v22 = vld [vmem:[#allocation8 + $0x300] ss:$16 sps:$4 sm:$0xff]  }
 0x1ec   : > { %v1048_v58 = vadd.f32 %v1047_v54, %v7894_v13  ;;  %v1049_v59 = vpop.f32.mrb[13].mxu0  ;;  %3306 = vmatprep.subr.bf16.mxu0 %v6709_v40  ;;  %3758 = vmatprep.subr.bf16.mxu1 %v6712_v31  ;;  %v6719_v40 = vld [vmem:[#allocation8 + $0x2c0] ss:$16 sps:$4 sm:$0xff]   ;;  %v6730_v31 = vld [vmem:[#allocation8 + $0x2ec] ss:$16 sps:$4 sm:$0xff]  }
 0x1ed   : > { %v1050_v2 = vadd.f32 %v1049_v59, %v7898_v21  ;;  %v1051_v3 = vpop.f32.mrb[14].mxu0  ;;  %3237 = vmatprep.mubr.bf16.mxu0 %v1580_v48  ;;  %3689 = vmatprep.mubr.bf16.mxu1 %v1580_v48  ;;  %v7948_v42 = vpack.c.bf16 %v1477_v34, %v1469_v12  ;;  %v7951_v46 = vpack.c.bf16 %v1478_v37, %v1470_v29  ;;  %v1160_v47 = vpop.f32.mrb[12].mxu1  ;;  %v6725_v54 = vld [vmem:[#allocation8 + $0x2e0] ss:$16 sps:$4 sm:$0xff]   ;;  %v6728_v59 = vld [vmem:[#allocation8 + $0x2e8] ss:$16 sps:$4 sm:$0xff]  }
 0x1ee   : > { %v1052_v6 = vadd.f32 %v1051_v3, %v7894_v13  ;;  %v1053_v7 = vpop.f32.mrb[15].mxu0  ;;  %3238 = vmatmul.mubr.bf16.gmra.mrb[72].mxu0 %v1579_v52  ;;  %3690 = vmatmul.mubr.bf16.gmra.mrb[72].mxu1 %v1579_v52  ;;  %v1483_v25 = vmax.f32 %v1048_v58, 0.0  ;;  %v1161_v51 = vadd.f32 %v1160_v47, %v7909_v36  ;;  %v1162_v52 = vpop.f32.mrb[13].mxu1  ;;  %v6739_v29 = vld [vmem:[#allocation8 + $0x324] ss:$16 sps:$4 sm:$0xff]  }
 0x1ef   : > { %v1054_v11 = vadd.f32 %v1053_v7, %v7898_v21  ;;  %3307 = vmatpush1.bf16.msra.mxu0 %v6707_v55  ;;  %3759 = vmatpush1.bf16.msra.mxu1 %v6710_v56  ;;  %v1484_v60 = vmax.f32 %v1050_v2, 0.0  ;;  %v1163_v55 = vadd.f32 %v1162_v52, %v7914_v38  ;;  %v1164_v56 = vpop.f32.mrb[14].mxu1  ;;  %v6742_v32 = vld [vmem:[#allocation8 + $0x32c] ss:$16 sps:$4 sm:$0xff]   ;;  %v6745_v47 = vld [vmem:[#allocation8 + $0x344] ss:$16 sps:$4 sm:$0xff]  }
 0x1f0   : > { %v1491_v26 = vmax.f32 %v1052_v6, 0.0  ;;  %3308 = vmatprep.subr.bf16.mxu0 %v6715_v61  ;;  %3760 = vmatprep.subr.bf16.mxu1 %v6718_v62  ;;  %v6733_v61 = vld [vmem:[#allocation8 + $0x304] ss:$16 sps:$4 sm:$0xff]   ;;  %v1485_v62 = vmax.f32 %v1161_v51, 0.0  ;;  %v1165_v1 = vadd.f32 %v1164_v56, %v7909_v36  ;;  %v1166_v2 = vpop.f32.mrb[15].mxu1 }
 0x1f1   : > { %v1492_v33 = vmax.f32 %v1054_v11, 0.0  ;;  %v1486_v6 = vmax.f32 %v1163_v55, 0.0  ;;  %v1167_v7 = vadd.f32 %v1166_v2, %v7914_v38 }
 0x1f2   : > { %v1587_v35 = vpack.c.bf16 %v1491_v26, %v1483_v25  ;;  %v1493_v10 = vmax.f32 %v1165_v1, 0.0 }
 0x1f3   : > { %v1588_v16 = vpack.c.bf16 %v1492_v33, %v1484_v60  ;;  %3309 = vmatpush1.bf16.msra.mxu0 %v6713_v8  ;;  %v1057_v39 = vpop.f32.mrb[16].mxu0  ;;  %3761 = vmatpush1.bf16.msra.mxu1 %v6716_v14  ;;  %v1494_v14 = vmax.f32 %v1167_v7, 0.0 }
 0x1f4   : > { %v1058_v43 = vadd.f32 %v1057_v39, %v7894_v13  ;;  %v1059_v44 = vpop.f32.mrb[17].mxu0  ;;  %3310 = vmatprep.subr.bf16.mxu0 %v6721_v17  ;;  %3762 = vmatprep.subr.bf16.mxu1 %v6724_v28  ;;  %v7960_v25 = vpack.c.bf16 %v1493_v10, %v1485_v62 }
 0x1f5   : > { %v1060_v49 = vadd.f32 %v1059_v44, %v7898_v21  ;;  %v1061_v50 = vpop.f32.mrb[18].mxu0  ;;  %3247 = vmatprep.mubr.bf16.mxu0 %v1588_v16  ;;  %3699 = vmatprep.mubr.bf16.mxu1 %v1588_v16  ;;  %v7963_v60 = vpack.c.bf16 %v1494_v14, %v1486_v6  ;;  %v1170_v33 = vpop.f32.mrb[16].mxu1 }
 0x1f6   : > { %v1062_v53 = vadd.f32 %v1061_v50, %v7894_v13  ;;  %v1063_v48 = vpop.f32.mrb[19].mxu0  ;;  %3248 = vmatmul.mubr.bf16.gmra.mrb[76].mxu0 %v1587_v35  ;;  %3700 = vmatmul.mubr.bf16.gmra.mrb[76].mxu1 %v1587_v35  ;;  %v1499_v3 = vmax.f32 %v1058_v43, 0.0  ;;  %v1171_v37 = vadd.f32 %v1170_v33, %v7909_v36  ;;  %v1172_v16 = vpop.f32.mrb[17].mxu1 }
 0x1f7   : > { %v1064_v58 = vadd.f32 %v1063_v48, %v7898_v21  ;;  %3311 = vmatpush1.bf16.msra.mxu0 %v6719_v40  ;;  %3763 = vmatpush1.bf16.msra.mxu1 %v6722_v41  ;;  %v1500_v8 = vmax.f32 %v1060_v49, 0.0  ;;  %v6737_v41 = vld [vmem:[#allocation8 + $0x320] ss:$16 sps:$4 sm:$0xff]   ;;  %v1173_v43 = vadd.f32 %v1172_v16, %v7914_v38  ;;  %v1174_v44 = vpop.f32.mrb[18].mxu1  ;;  %v6748_v48 = vld [vmem:[#allocation8 + $0x34c] ss:$16 sps:$4 sm:$0xff]  }
 0x1f8   : > { %v1507_v4 = vmax.f32 %v1062_v53, 0.0  ;;  %3312 = vmatprep.subr.bf16.mxu0 %v6727_v45  ;;  %3764 = vmatprep.subr.bf16.mxu1 %v6730_v31  ;;  %v6740_v31 = vld [vmem:[#allocation8 + $0x328] ss:$16 sps:$4 sm:$0xff]   ;;  %v1501_v49 = vmax.f32 %v1171_v37, 0.0  ;;  %v1175_v50 = vadd.f32 %v1174_v44, %v7909_v36  ;;  %v1176_v51 = vpop.f32.mrb[19].mxu1 }
 0x1f9   : > { %v1508_v9 = vmax.f32 %v1064_v58, 0.0  ;;  %v1177_v55 = vadd.f32 %v1176_v51, %v7914_v38 }
 0x1fa   : > { %v1595_v11 = vpack.c.bf16 %v1507_v4, %v1499_v3  ;;  %v6743_v3 = vld [vmem:[#allocation8 + $0x340] ss:$16 sps:$4 sm:$0xff]   ;;  %v6746_v4 = vld [vmem:[#allocation8 + $0x348] ss:$16 sps:$4 sm:$0xff]  }
 0x1fb   : > { %v1596_v17 = vpack.c.bf16 %v1508_v9, %v1500_v8  ;;  %3313 = vmatpush1.bf16.msra.mxu0 %v6725_v54  ;;  %v1067_v12 = vpop.f32.mrb[20].mxu0  ;;  %3765 = vmatpush1.bf16.msra.mxu1 %v6728_v59  ;;  %v1502_v54 = vmax.f32 %v1173_v43, 0.0  ;;  %v1509_v59 = vmax.f32 %v1175_v50, 0.0  ;;  %v1510_v62 = vmax.f32 %v1177_v55, 0.0  ;;  %v6751_v8 = vld [vmem:[#allocation8 + $0x364] ss:$16 sps:$4 sm:$0xff]  }
 0x1fc   : > { %v1068_v26 = vadd.f32 %v1067_v12, %v7894_v13  ;;  %v1069_v28 = vpop.f32.mrb[21].mxu0  ;;  %3314 = vmatprep.subr.bf16.mxu0 %v6733_v61  ;;  %3766 = vmatprep.subr.bf16.mxu1 %v6736_v5  ;;  %v6754_v9 = vld [vmem:[#allocation8 + $0x36c] ss:$16 sps:$4 sm:$0xff]  }
 0x1fd   : > { %v1070_v34 = vadd.f32 %v1069_v28, %v7898_v21  ;;  %v1071_v35 = vpop.f32.mrb[22].mxu0  ;;  %3257 = vmatprep.mubr.bf16.mxu0 %v1596_v17  ;;  %3709 = vmatprep.mubr.bf16.mxu1 %v1596_v17  ;;  %v7972_v5 = vpack.c.bf16 %v1509_v59, %v1501_v49  ;;  %v7975_v10 = vpack.c.bf16 %v1510_v62, %v1502_v54  ;;  %v6749_v28 = vld [vmem:[#allocation8 + $0x360] ss:$16 sps:$4 sm:$0xff]   ;;  %v6760_v43 = vld [vmem:[#allocation8 + $0x38c] ss:$16 sps:$4 sm:$0xff]  }
 0x1fe   : > { %v1072_v39 = vadd.f32 %v1071_v35, %v7894_v13  ;;  %v1073_v40 = vpop.f32.mrb[23].mxu0  ;;  %3258 = vmatmul.mubr.bf16.gmra.mrb[80].mxu0 %v1595_v11  ;;  %3710 = vmatmul.mubr.bf16.gmra.mrb[80].mxu1 %v1595_v11  ;;  %v1515_v52 = vmax.f32 %v1068_v26, 0.0  ;;  %v1180_v11 = vpop.f32.mrb[20].mxu1  ;;  %v6757_v35 = vld [vmem:[#allocation8 + $0x384] ss:$16 sps:$4 sm:$0xff]  }
 0x1ff   : > { %v1074_v45 = vadd.f32 %v1073_v40, %v7898_v21  ;;  %3315 = vmatpush1.bf16.msra.mxu0 %v6731_v22  ;;  %3767 = vmatpush1.bf16.msra.mxu1 %v6734_v23  ;;  %v1516_v56 = vmax.f32 %v1070_v34, 0.0  ;;  %v1181_v12 = vadd.f32 %v1180_v11, %v7909_v36  ;;  %v1182_v22 = vpop.f32.mrb[21].mxu1  ;;  %v6752_v34 = vld [vmem:[#allocation8 + $0x368] ss:$16 sps:$4 sm:$0xff]   ;;  %v6766_v62 = vld [vmem:[#allocation8 + $0x3ac] ss:$16 sps:$4 sm:$0xff]  }
 0x200   : > { %v1523_v53 = vmax.f32 %v1072_v39, 0.0  ;;  %3316 = vmatprep.subr.bf16.mxu0 %v6739_v29  ;;  %3768 = vmatprep.subr.bf16.mxu1 %v6742_v32  ;;  %v1183_v29 = vadd.f32 %v1182_v22, %v7914_v38  ;;  %v1184_v32 = vpop.f32.mrb[22].mxu1  ;;  %v6758_v54 = vld [vmem:[#allocation8 + $0x388] ss:$16 sps:$4 sm:$0xff]  }
 0x201   : > { %v1524_v58 = vmax.f32 %v1074_v45, 0.0  ;;  %v1517_v37 = vmax.f32 %v1181_v12, 0.0  ;;  %v1185_v16 = vadd.f32 %v1184_v32, %v7909_v36  ;;  %v1186_v39 = vpop.f32.mrb[23].mxu1 }
 0x202   : > { %v1603_v61 = vpack.c.bf16 %v1523_v53, %v1515_v52  ;;  %v1518_v44 = vmax.f32 %v1183_v29, 0.0  ;;  %v1187_v45 = vadd.f32 %v1186_v39, %v7914_v38 }
 0x203   : > { %v1604_v1 = vpack.c.bf16 %v1524_v58, %v1516_v56  ;;  %3317 = vmatpush1.bf16.msra.mxu0 %v6737_v41  ;;  %v1077_v2 = vpop.f32.mrb[24].mxu0  ;;  %3769 = vmatpush1.bf16.msra.mxu1 %v6740_v31  ;;  %v1525_v49 = vmax.f32 %v1185_v16, 0.0  ;;  %v593_v56 = vsub.s32 4, %v7882_v0 }
 0x204   : > { %v1078_v6 = vadd.f32 %v1077_v2, %v7894_v13  ;;  %v1079_v7 = vpop.f32.mrb[25].mxu0  ;;  %3318 = vmatprep.subr.bf16.mxu0 %v6745_v47  ;;  %3770 = vmatprep.subr.bf16.mxu1 %v6748_v48  ;;  %v1526_v51 = vmax.f32 %v1187_v45, 0.0  ;;  %v6755_v48 = vld [vmem:[#allocation8 + $0x380] ss:$16 sps:$4 sm:$0xff]  }
 0x205   : > { %v1080_v14 = vadd.f32 %v1079_v7, %v7898_v21  ;;  %v1081_v17 = vpop.f32.mrb[26].mxu0  ;;  %3267 = vmatprep.mubr.bf16.mxu0 %v1604_v1  ;;  %3719 = vmatprep.mubr.bf16.mxu1 %v1604_v1  ;;  %v7984_v55 = vpack.c.bf16 %v1525_v49, %v1517_v37  ;;  %v1190_v2 = vpop.f32.mrb[24].mxu1 }
 0x206   : > { %v1082_v23 = vadd.f32 %v1081_v17, %v7894_v13  ;;  %v1083_v26 = vpop.f32.mrb[27].mxu0  ;;  %3268 = vmatmul.mubr.bf16.gmra.mrb[84].mxu0 %v1603_v61  ;;  %3720 = vmatmul.mubr.bf16.gmra.mrb[84].mxu1 %v1603_v61  ;;  %v1531_v40 = vmax.f32 %v1078_v6, 0.0  ;;  %v6763_v61 = vld [vmem:[#allocation8 + $0x3a4] ss:$16 sps:$4 sm:$0xff]   ;;  %v7988_v1 = vpack.c.bf16 %v1526_v51, %v1518_v44  ;;  %v1191_v6 = vadd.f32 %v1190_v2, %v7909_v36  ;;  %v1192_v7 = vpop.f32.mrb[25].mxu1 }
 0x207   : > { %v1084_v33 = vadd.f32 %v1083_v26, %v7898_v21  ;;  %3319 = vmatpush1.bf16.msra.mxu0 %v6743_v3  ;;  %3771 = vmatpush1.bf16.msra.mxu1 %v6746_v4  ;;  %v1532_v31 = vmax.f32 %v1080_v14, 0.0  ;;  %v6761_v14 = vld [vmem:[#allocation8 + $0x3a0] ss:$16 sps:$4 sm:$0xff]   ;;  %v1193_v17 = vadd.f32 %v1192_v7, %v7914_v38  ;;  %v1194_v12 = vpop.f32.mrb[26].mxu1  ;;  %v6769_v26 = vld [vmem:[#allocation8 + $0x3c4] ss:$16 sps:$4 sm:$0xff]  }
 0x208   : > { %v1539_v41 = vmax.f32 %v1082_v23, 0.0  ;;  %3320 = vmatprep.subr.bf16.mxu0 %v6751_v8  ;;  %3772 = vmatprep.subr.bf16.mxu1 %v6754_v9  ;;  %v597_v8 = vsub.s32 5, %v7882_v0  ;;  %v6764_v23 = vld [vmem:[#allocation8 + $0x3a8] ss:$16 sps:$4 sm:$0xff]   ;;  %v1195_v29 = vadd.f32 %v1194_v12, %v7909_v36  ;;  %v1196_v32 = vpop.f32.mrb[27].mxu1  ;;  %v601_v2 = vsub.s32 6, %v7882_v0 }
 0x209   : > { %v1540_v47 = vmax.f32 %v1084_v33, 0.0  ;;  %v7998_v33 = vrot.slane %v7887_v19, %v593_v56  ;;  %v1534_v37 = vmax.f32 %v1193_v17, 0.0  ;;  %v1197_v16 = vadd.f32 %v1196_v32, %v7914_v38  ;;  %v6775_v51 = vld [vmem:[#allocation8 + $0x3e4] ss:$16 sps:$4 sm:$0xff]   ;;  %v6778_v56 = vld [vmem:[#allocation8 + $0x3ec] ss:$16 sps:$4 sm:$0xff]  }
 0x20a   : > { %v1611_v50 = vpack.c.bf16 %v1539_v41, %v1531_v40  ;;  %v1541_v40 = vmax.f32 %v1195_v29, 0.0  ;;  %v8002_v41 = vrot.slane %v7887_v19, %v597_v8  ;;  %v6784_v29 = vld [vmem:[#allocation8 + $0x40c] ss:$16 sps:$4 sm:$0xff]  }
 0x20b   : > { %v1612_v52 = vpack.c.bf16 %v1540_v47, %v1532_v31  ;;  %3321 = vmatpush1.bf16.msra.mxu0 %v6749_v28  ;;  %v1087_v53 = vpop.f32.mrb[28].mxu0  ;;  %3773 = vmatpush1.bf16.msra.mxu1 %v6752_v34  ;;  %v1533_v28 = vmax.f32 %v1191_v6, 0.0  ;;  %v1542_v44 = vmax.f32 %v1197_v16, 0.0  ;;  %v6767_v31 = vld [vmem:[#allocation8 + $0x3c0] ss:$16 sps:$4 sm:$0xff]  }
 0x20c   : > { %v1088_v58 = vadd.f32 %v1087_v53, %v7894_v13  ;;  %v1089_v59 = vpop.f32.mrb[29].mxu0  ;;  %3322 = vmatprep.subr.bf16.mxu0 %v6757_v35  ;;  %3774 = vmatprep.subr.bf16.mxu1 %v6760_v43  ;;  %v6772_v35 = vld [vmem:[#allocation8 + $0x3cc] ss:$16 sps:$4 sm:$0xff]   ;;  %v6770_v47 = vld [vmem:[#allocation8 + $0x3c8] ss:$16 sps:$4 sm:$0xff]  }
 0x20d   : > { %v1090_v3 = vadd.f32 %v1089_v59, %v7898_v21  ;;  %v1091_v4 = vpop.f32.mrb[30].mxu0  ;;  %3277 = vmatprep.mubr.bf16.mxu0 %v1612_v52  ;;  %3729 = vmatprep.mubr.bf16.mxu1 %v1612_v52  ;;  %v8004_v49 = vpack.c.bf16 %v1541_v40, %v1533_v28  ;;  %v8006_v52 = vpack.c.bf16 %v1542_v44, %v1534_v37  ;;  %v1200_v53 = vpop.f32.mrb[28].mxu1  ;;  %v6781_v28 = vld [vmem:[#allocation8 + $0x404] ss:$16 sps:$4 sm:$0xff]   ;;  %v6779_v40 = vld [vmem:[#allocation8 + $0x400] ss:$16 sps:$4 sm:$0xff]  }
 0x20e   : > { %v1092_v9 = vadd.f32 %v1091_v4, %v7894_v13  ;;  %v1093_v11 = vpop.f32.mrb[31].mxu0  ;;  %3278 = vmatmul.mubr.bf16.gmra.mrb[88].mxu0 %v1611_v50  ;;  %3730 = vmatmul.mubr.bf16.gmra.mrb[88].mxu1 %v1611_v50  ;;  %v1547_v13 = vmax.f32 %v1088_v58, 0.0  ;;  %v1201_v58 = vadd.f32 %v1200_v53, %v7909_v36  ;;  %v1202_v59 = vpop.f32.mrb[29].mxu1 }
 0x20f   : > { %v1094_v22 = vadd.f32 %v1093_v11, %v7898_v21  ;;  %3323 = vmatpush1.bf16.msra.mxu0 %v6755_v48  ;;  %3775 = vmatpush1.bf16.msra.mxu1 %v6758_v54  ;;  %v1548_v21 = vmax.f32 %v1090_v3, 0.0  ;;  %v6773_v3 = vld [vmem:[#allocation8 + $0x3e0] ss:$16 sps:$4 sm:$0xff]   ;;  %v1203_v4 = vadd.f32 %v1202_v59, %v7914_v38  ;;  %v1204_v6 = vpop.f32.mrb[30].mxu1  ;;  %v605_v11 = vsub.s32 7, %v7882_v0 }
 0x210   : > { %v1555_v34 = vmax.f32 %v1092_v9, 0.0  ;;  %3324 = vmatprep.subr.bf16.mxu0 %v6763_v61  ;;  %3776 = vmatprep.subr.bf16.mxu1 %v6766_v62  ;;  %v1549_v17 = vmax.f32 %v1201_v58, 0.0  ;;  %v1205_v12 = vadd.f32 %v1204_v6, %v7909_v36  ;;  %v8021_v36 = vrot.slane %v7887_v19, %v601_v2  ;;  %v6785_v58 = vld [vmem:[#allocation8 + $0x420] ss:$16 sps:$4 sm:$0xff]  }
 0x211   : > { %v1556_v39 = vmax.f32 %v1094_v22, 0.0  ;;  %v1206_v22 = vpop.f32.mrb[31].mxu1  ;;  %v1550_v32 = vmax.f32 %v1203_v4, 0.0  ;;  %v6788_v4 = vld [vmem:[#allocation8 + $0x428] ss:$16 sps:$4 sm:$0xff]  }
 0x212   : > { %v1619_v43 = vpack.c.bf16 %v1555_v34, %v1547_v13  ;;  %v1207_v13 = vadd.f32 %v1206_v22, %v7914_v38 }
 0x213   : > { %v1620_v45 = vpack.c.bf16 %v1556_v39, %v1548_v21  ;;  %3325 = vmatpush1.bf16.msra.mxu0 %v6761_v14  ;;  %3777 = vmatpush1.bf16.msra.mxu1 %v6764_v23  ;;  %v1243_v50 = vpop.f32.mrb[32].mxu0  ;;  %v6776_v14 = vld [vmem:[#allocation8 + $0x3e8] ss:$16 sps:$4 sm:$0xff]   ;;  %v8026_v39 = vrot.slane %v7887_v19, %v605_v11  ;;  %v6790_v19 = vld [vmem:[#allocation8 + $0x42c] ss:$16 sps:$4 sm:$0xff]  }
 0x214   : > { %3326 = vmatprep.subr.bf16.mxu0 %v6769_v26  ;;  %3778 = vmatprep.subr.bf16.mxu1 %v6772_v35  ;;  %v1244_v48 = vadd.f32 %v1243_v50, %v7998_v33  ;;  %v1245_v54 = vpop.f32.mrb[33].mxu0  ;;  %v1557_v35 = vmax.f32 %v1205_v12, 0.0  ;;  %v1558_v16 = vmax.f32 %v1207_v13, 0.0  ;;  %v6794_v13 = vld [vmem:[#allocation8 + $0x448] ss:$16 sps:$4 sm:$0xff]  }
 0x215   : > { %3287 = vmatprep.mubr.bf16.mxu0 %v1620_v45  ;;  %3739 = vmatprep.mubr.bf16.mxu1 %v1620_v45  ;;  %v1246_v61 = vadd.f32 %v1245_v54, %v8002_v41  ;;  %v1247_v62 = vpop.f32.mrb[34].mxu0  ;;  %v6787_v45 = vld [vmem:[#allocation8 + $0x424] ss:$16 sps:$4 sm:$0xff]  }
 0x216   : > { %3288 = vmatmul.mubr.bf16.gmra.mrb[92].mxu0 %v1619_v43  ;;  %3740 = vmatmul.mubr.bf16.gmra.mrb[92].mxu1 %v1619_v43  ;;  %v1439_v7 = vmax.f32 %v1244_v48, 0.0  ;;  %v1248_v8 = vadd.f32 %v1247_v62, %v7998_v33  ;;  %v1249_v9 = vpop.f32.mrb[35].mxu0  ;;  %v6782_v43 = vld [vmem:[#allocation8 + $0x408] ss:$16 sps:$4 sm:$0xff]   ;;  %v8028_v38 = vpack.c.bf16 %v1557_v35, %v1549_v17 }
 0x217   : > { %3327 = vmatpush1.bf16.msra.mxu0 %v6767_v31  ;;  %3779 = vmatpush1.bf16.msra.mxu1 %v6770_v47  ;;  %v1440_v23 = vmax.f32 %v1246_v61, 0.0  ;;  %v1250_v26 = vadd.f32 %v1249_v9, %v8002_v41  ;;  %v8032_v31 = vpack.c.bf16 %v1558_v16, %v1550_v32  ;;  %v6791_v32 = vld [vmem:[#allocation8 + $0x440] ss:$16 sps:$4 sm:$0xff]   ;;  %v6799_v16 = vld [vmem:[#allocation8 + $0x464] ss:$16 sps:$4 sm:$0xff]  }
 0x218   : > { %3328 = vmatprep.subr.bf16.mxu0 %v6775_v51  ;;  %3330 = vmatprep.mubr.bf16.mxu0 %v7927_v24  ;;  %v1447_v34 = vmax.f32 %v1248_v8, 0.0  ;;  %v1356_v51 = vpop.f32.mrb[32].mxu1 }
 0x219   : > { %3780 = vmatprep.subr.bf16.mxu1 %v6778_v56  ;;  %3782 = vmatprep.mubr.bf16.mxu1 %v7927_v24  ;;  %v1448_v37 = vmax.f32 %v1250_v26, 0.0  ;;  %v1357_v54 = vadd.f32 %v1356_v51, %v8021_v36  ;;  %v1358_v56 = vpop.f32.mrb[33].mxu1 }
 0x21a   : > { %v8023_v21 = vpack.c.bf16 %v1447_v34, %v1439_v7  ;;  %v1359_v2 = vadd.f32 %v1358_v56, %v8026_v39 }
 0x21b   : > { %3329 = vmatpush1.bf16.msra.mxu0 %v6773_v3  ;;  %3781 = vmatpush1.bf16.msra.mxu1 %v6776_v14  ;;  %v8030_v44 = vpack.c.bf16 %v1448_v37, %v1440_v23  ;;  %v1253_v24 = vpop.f32.mrb[36].mxu0  ;;  %v1360_v3 = vpop.f32.mrb[34].mxu1  ;;  %v1441_v8 = vmax.f32 %v1357_v54, 0.0  ;;  %v6796_v14 = vld [vmem:[#allocation8 + $0x44c] ss:$16 sps:$4 sm:$0xff]  }
 0x21c   : > { %3411 = vmatprep.subr.bf16.mxu0 %v6781_v28  ;;  %3863 = vmatprep.subr.bf16.mxu1 %v6784_v29  ;;  %v1254_v47 = vadd.f32 %v1253_v24, %v7998_v33  ;;  %v1255_v50 = vpop.f32.mrb[37].mxu0  ;;  %v1361_v9 = vadd.f32 %v1360_v3, %v8021_v36  ;;  %v1362_v11 = vpop.f32.mrb[35].mxu1  ;;  %v1442_v12 = vmax.f32 %v1359_v2, 0.0 }
 0x21d   : > { %v1256_v53 = vadd.f32 %v1255_v50, %v8002_v41  ;;  %v1257_v48 = vpop.f32.mrb[38].mxu0  ;;  %v1363_v22 = vadd.f32 %v1362_v11, %v8026_v39  ;;  %v1366_v24 = vpop.f32.mrb[36].mxu1 }
 0x21e   : > { %3331 = vmatmul.mubr.bf16.vlgmr.msra.gmra.mrb[64].mxu0 %v7924_v15  ;;  %3783 = vmatmul.mubr.bf16.vlgmr.msra.gmra.mrb[64].mxu1 %v7924_v15  ;;  %v1455_v59 = vmax.f32 %v1254_v47, 0.0  ;;  %v1258_v61 = vadd.f32 %v1257_v48, %v7998_v33  ;;  %v1259_v62 = vpop.f32.mrb[39].mxu0  ;;  %v6793_v15 = vld [vmem:[#allocation8 + $0x444] ss:$16 sps:$4 sm:$0xff]   ;;  %v1449_v26 = vmax.f32 %v1361_v9, 0.0  ;;  %v1367_v51 = vadd.f32 %v1366_v24, %v8021_v36 }
 0x21f   : > { %3412 = vmatpush1.bf16.msra.mxu0 %v6779_v40  ;;  %3864 = vmatpush1.bf16.msra.mxu1 %v6782_v43  ;;  %v1456_v6 = vmax.f32 %v1256_v53, 0.0  ;;  %v1260_v7 = vadd.f32 %v1259_v62, %v8002_v41  ;;  %v1450_v29 = vmax.f32 %v1363_v22, 0.0  ;;  %v6797_v53 = vld [vmem:[#allocation8 + $0x460] ss:$16 sps:$4 sm:$0xff]  }
 0x220   : > { %3413 = vmatprep.subr.bf16.mxu0 %v6787_v45  ;;  %3340 = vmatprep.mubr.bf16.mxu0 %v7939_v63  ;;  %v1463_v17 = vmax.f32 %v1258_v61, 0.0  ;;  %v8050_v37 = vpack.c.bf16 %v1449_v26, %v1441_v8  ;;  %v6802_v45 = vld [vmem:[#allocation8 + $0x46c] ss:$16 sps:$4 sm:$0xff]   ;;  %v6800_v61 = vld [vmem:[#allocation8 + $0x468] ss:$16 sps:$4 sm:$0xff]   ;;  %v1457_v3 = vmax.f32 %v1367_v51, 0.0 }
 0x221   : > { %3792 = vmatprep.mubr.bf16.mxu1 %v7939_v63  ;;  %3865 = vmatprep.subr.bf16.mxu1 %v6790_v19  ;;  %v1464_v23 = vmax.f32 %v1260_v7, 0.0  ;;  %v8053_v43 = vpack.c.bf16 %v1450_v29, %v1442_v12  ;;  %v1368_v19 = vpop.f32.mrb[37].mxu1  ;;  %v6808_v7 = vld [vmem:[#allocation8 + $0x48c] ss:$16 sps:$4 sm:$0xff]   ;;  %v6803_v22 = vld [vmem:[#allocation8 + $0x480] ss:$16 sps:$4 sm:$0xff]  }
 0x222   : > { %v8046_v28 = vpack.c.bf16 %v1463_v17, %v1455_v59  ;;  %v1370_v59 = vpop.f32.mrb[38].mxu1  ;;  %v6809_v51 = vld [vmem:[#allocation8 + $0x4a0] ss:$16 sps:$4 sm:$0xff]  }
 0x223   : > { %3414 = vmatpush1.bf16.msra.mxu0 %v6785_v58  ;;  %3866 = vmatpush1.bf16.msra.mxu1 %v6788_v4  ;;  %v8048_v34 = vpack.c.bf16 %v1464_v23, %v1456_v6  ;;  %v1263_v35 = vpop.f32.mrb[40].mxu0  ;;  %v1369_v58 = vadd.f32 %v1368_v19, %v8026_v39  ;;  %v1371_v4 = vadd.f32 %v1370_v59, %v8021_v36  ;;  %v1372_v6 = vpop.f32.mrb[39].mxu1  ;;  %v6806_v23 = vld [vmem:[#allocation8 + $0x488] ss:$16 sps:$4 sm:$0xff]  }
 0x224   : > { %3415 = vmatprep.subr.bf16.mxu0 %v6793_v15  ;;  %3867 = vmatprep.subr.bf16.mxu1 %v6796_v14  ;;  %v1264_v63 = vadd.f32 %v1263_v35, %v7998_v33  ;;  %v1265_v40 = vpop.f32.mrb[41].mxu0  ;;  %v1373_v11 = vadd.f32 %v1372_v6, %v8026_v39 }
 0x225   : > { %v1266_v47 = vadd.f32 %v1265_v40, %v8002_v41  ;;  %v1267_v50 = vpop.f32.mrb[42].mxu0  ;;  %v1458_v9 = vmax.f32 %v1369_v58, 0.0  ;;  %v1465_v14 = vmax.f32 %v1371_v4, 0.0  ;;  %v6814_v40 = vld [vmem:[#allocation8 + $0x4ac] ss:$16 sps:$4 sm:$0xff]  }
 0x226   : > { %3341 = vmatmul.mubr.bf16.gmra.mrb[68].mxu0 %v7936_v57  ;;  %3793 = vmatmul.mubr.bf16.gmra.mrb[68].mxu1 %v7936_v57  ;;  %v1471_v48 = vmax.f32 %v1264_v63, 0.0  ;;  %v1268_v54 = vadd.f32 %v1267_v50, %v7998_v33  ;;  %v1269_v56 = vpop.f32.mrb[43].mxu0  ;;  %v6805_v57 = vld [vmem:[#allocation8 + $0x484] ss:$16 sps:$4 sm:$0xff]   ;;  %v1466_v12 = vmax.f32 %v1373_v11, 0.0  ;;  %v1376_v63 = vpop.f32.mrb[40].mxu1 }
 0x227   : > { %3416 = vmatpush1.bf16.msra.mxu0 %v6791_v32  ;;  %3868 = vmatpush1.bf16.msra.mxu1 %v6794_v13  ;;  %v1472_v62 = vmax.f32 %v1266_v47, 0.0  ;;  %v1270_v2 = vadd.f32 %v1269_v56, %v8002_v41  ;;  %v8070_v32 = vpack.c.bf16 %v1465_v14, %v1457_v3  ;;  %v6811_v13 = vld [vmem:[#allocation8 + $0x4a4] ss:$16 sps:$4 sm:$0xff]   ;;  %v1377_v47 = vadd.f32 %v1376_v63, %v8021_v36  ;;  %v1378_v50 = vpop.f32.mrb[41].mxu1  ;;  %v6812_v58 = vld [vmem:[#allocation8 + $0x4a8] ss:$16 sps:$4 sm:$0xff]  }
 0x228   : > { %3417 = vmatprep.subr.bf16.mxu0 %v6799_v16  ;;  %3350 = vmatprep.mubr.bf16.mxu0 %v7951_v46  ;;  %v1479_v8 = vmax.f32 %v1268_v54, 0.0  ;;  %v8073_v16 = vpack.c.bf16 %v1466_v12, %v1458_v9  ;;  %v1379_v54 = vadd.f32 %v1378_v50, %v8026_v39  ;;  %v1380_v56 = vpop.f32.mrb[42].mxu1  ;;  %v6820_v4 = vld [vmem:[#allocation8 + $0x4cc] ss:$16 sps:$4 sm:$0xff]   ;;  %v6815_v14 = vld [vmem:[#allocation8 + $0x4c0] ss:$16 sps:$4 sm:$0xff]  }
 0x229   : > { %3802 = vmatprep.mubr.bf16.mxu1 %v7951_v46  ;;  %3869 = vmatprep.subr.bf16.mxu1 %v6802_v45  ;;  %v1480_v15 = vmax.f32 %v1270_v2, 0.0  ;;  %v1381_v2 = vadd.f32 %v1380_v56, %v8021_v36  ;;  %v1382_v3 = vpop.f32.mrb[43].mxu1  ;;  %v6818_v12 = vld [vmem:[#allocation8 + $0x4c8] ss:$16 sps:$4 sm:$0xff]  }
 0x22a   : > { %v8066_v17 = vpack.c.bf16 %v1479_v8, %v1471_v48 }
 0x22b   : > { %3418 = vmatpush1.bf16.msra.mxu0 %v6797_v53  ;;  %3870 = vmatpush1.bf16.msra.mxu1 %v6800_v61  ;;  %v8068_v26 = vpack.c.bf16 %v1480_v15, %v1472_v62  ;;  %v1273_v29 = vpop.f32.mrb[44].mxu0  ;;  %v1473_v62 = vmax.f32 %v1377_v47, 0.0  ;;  %v1481_v9 = vmax.f32 %v1381_v2, 0.0 }
 0x22c   : > { %3419 = vmatprep.subr.bf16.mxu0 %v6805_v57  ;;  %3871 = vmatprep.subr.bf16.mxu1 %v6808_v7  ;;  %v1274_v46 = vadd.f32 %v1273_v29, %v7998_v33  ;;  %v1275_v35 = vpop.f32.mrb[45].mxu0  ;;  %v1474_v57 = vmax.f32 %v1379_v54, 0.0  ;;  %v1383_v7 = vadd.f32 %v1382_v3, %v8026_v39 }
 0x22d   : > { %v1276_v24 = vadd.f32 %v1275_v35, %v8002_v41  ;;  %v1277_v45 = vpop.f32.mrb[46].mxu0  ;;  %v8090_v29 = vpack.c.bf16 %v1481_v9, %v1473_v62  ;;  %v1386_v63 = vpop.f32.mrb[44].mxu1 }
 0x22e   : > { %3351 = vmatmul.mubr.bf16.gmra.mrb[72].mxu0 %v7948_v42  ;;  %3803 = vmatmul.mubr.bf16.gmra.mrb[72].mxu1 %v7948_v42  ;;  %v1487_v19 = vmax.f32 %v1274_v46, 0.0  ;;  %v1278_v53 = vadd.f32 %v1277_v45, %v7998_v33  ;;  %v1279_v48 = vpop.f32.mrb[47].mxu0  ;;  %v6817_v42 = vld [vmem:[#allocation8 + $0x4c4] ss:$16 sps:$4 sm:$0xff]   ;;  %v1482_v15 = vmax.f32 %v1383_v7, 0.0  ;;  %v1387_v47 = vadd.f32 %v1386_v63, %v8021_v36  ;;  %v1388_v50 = vpop.f32.mrb[45].mxu1 }
 0x22f   : > { %3420 = vmatpush1.bf16.msra.mxu0 %v6803_v22  ;;  %3872 = vmatpush1.bf16.msra.mxu1 %v6806_v23  ;;  %v1488_v59 = vmax.f32 %v1276_v24, 0.0  ;;  %v1280_v61 = vadd.f32 %v1279_v48, %v8002_v41  ;;  %v1389_v54 = vadd.f32 %v1388_v50, %v8026_v39  ;;  %v1390_v56 = vpop.f32.mrb[46].mxu1 }
 0x230   : > { %3421 = vmatprep.subr.bf16.mxu0 %v6811_v13  ;;  %3360 = vmatprep.mubr.bf16.mxu0 %v7963_v60  ;;  %v1495_v6 = vmax.f32 %v1278_v53, 0.0  ;;  %v6823_v13 = vld [vmem:[#allocation8 + $0x4e4] ss:$16 sps:$4 sm:$0xff]   ;;  %v8093_v35 = vpack.c.bf16 %v1482_v15, %v1474_v57  ;;  %v1489_v62 = vmax.f32 %v1387_v47, 0.0  ;;  %v1391_v2 = vadd.f32 %v1390_v56, %v8021_v36  ;;  %v1392_v3 = vpop.f32.mrb[47].mxu1 }
 0x231   : > { %3812 = vmatprep.mubr.bf16.mxu1 %v7963_v60  ;;  %3873 = vmatprep.subr.bf16.mxu1 %v6814_v40  ;;  %v1496_v8 = vmax.f32 %v1280_v61, 0.0  ;;  %v6826_v40 = vld [vmem:[#allocation8 + $0x4ec] ss:$16 sps:$4 sm:$0xff]   ;;  %v1393_v57 = vadd.f32 %v1392_v3, %v8026_v39 }
 0x232   : > { %v8086_v11 = vpack.c.bf16 %v1495_v6, %v1487_v19  ;;  %v1490_v6 = vmax.f32 %v1389_v54, 0.0 }
 0x233   : > { %3422 = vmatpush1.bf16.msra.mxu0 %v6809_v51  ;;  %3874 = vmatpush1.bf16.msra.mxu1 %v6812_v58  ;;  %v8088_v22 = vpack.c.bf16 %v1496_v8, %v1488_v59  ;;  %v1283_v23 = vpop.f32.mrb[48].mxu0  ;;  %v6821_v51 = vld [vmem:[#allocation8 + $0x4e0] ss:$16 sps:$4 sm:$0xff]   ;;  %v6824_v58 = vld [vmem:[#allocation8 + $0x4e8] ss:$16 sps:$4 sm:$0xff]   ;;  %v1497_v8 = vmax.f32 %v1391_v2, 0.0 }
 0x234   : > { %3423 = vmatprep.subr.bf16.mxu0 %v6817_v42  ;;  %3875 = vmatprep.subr.bf16.mxu1 %v6820_v4  ;;  %v1284_v60 = vadd.f32 %v1283_v23, %v7998_v33  ;;  %v1285_v46 = vpop.f32.mrb[49].mxu0  ;;  %v6832_v42 = vld [vmem:[#allocation8 + $0x50c] ss:$16 sps:$4 sm:$0xff]   ;;  %v1498_v15 = vmax.f32 %v1393_v57, 0.0 }
 0x235   : > { %v1286_v24 = vadd.f32 %v1285_v46, %v8002_v41  ;;  %v1287_v45 = vpop.f32.mrb[50].mxu0  ;;  %v6835_v46 = vld [vmem:[#allocation8 + $0x524] ss:$16 sps:$4 sm:$0xff]  }
 0x236   : > { %3361 = vmatmul.mubr.bf16.gmra.mrb[76].mxu0 %v7960_v25  ;;  %3813 = vmatmul.mubr.bf16.gmra.mrb[76].mxu1 %v7960_v25  ;;  %v1503_v19 = vmax.f32 %v1284_v60, 0.0  ;;  %v1288_v53 = vadd.f32 %v1287_v45, %v7998_v33  ;;  %v1289_v48 = vpop.f32.mrb[51].mxu0  ;;  %v6829_v25 = vld [vmem:[#allocation8 + $0x504] ss:$16 sps:$4 sm:$0xff]   ;;  %v8110_v60 = vpack.c.bf16 %v1497_v8, %v1489_v62  ;;  %v6838_v45 = vld [vmem:[#allocation8 + $0x52c] ss:$16 sps:$4 sm:$0xff]  }
 0x237   : > { %3424 = vmatpush1.bf16.msra.mxu0 %v6815_v14  ;;  %3876 = vmatpush1.bf16.msra.mxu1 %v6818_v12  ;;  %v1504_v59 = vmax.f32 %v1286_v24, 0.0  ;;  %v1290_v61 = vadd.f32 %v1289_v48, %v8002_v41  ;;  %v6827_v14 = vld [vmem:[#allocation8 + $0x500] ss:$16 sps:$4 sm:$0xff]   ;;  %v6830_v12 = vld [vmem:[#allocation8 + $0x508] ss:$16 sps:$4 sm:$0xff]   ;;  %v1396_v24 = vpop.f32.mrb[48].mxu1 }
 0x238   : > { %3425 = vmatprep.subr.bf16.mxu0 %v6823_v13  ;;  %3370 = vmatprep.mubr.bf16.mxu0 %v7975_v10  ;;  %v1511_v4 = vmax.f32 %v1288_v53, 0.0  ;;  %v6833_v53 = vld [vmem:[#allocation8 + $0x520] ss:$16 sps:$4 sm:$0xff]  }
 0x239   : > { %3822 = vmatprep.mubr.bf16.mxu1 %v7975_v10  ;;  %3877 = vmatprep.subr.bf16.mxu1 %v6826_v40  ;;  %v1512_v7 = vmax.f32 %v1290_v61, 0.0  ;;  %v8113_v40 = vpack.c.bf16 %v1498_v15, %v1490_v6  ;;  %v6836_v61 = vld [vmem:[#allocation8 + $0x528] ss:$16 sps:$4 sm:$0xff]  }
 0x23a   : > { %v8106_v9 = vpack.c.bf16 %v1511_v4, %v1503_v19  ;;  %v1398_v19 = vpop.f32.mrb[49].mxu1  ;;  %v6844_v4 = vld [vmem:[#allocation8 + $0x54c] ss:$16 sps:$4 sm:$0xff]  }
 0x23b   : > { %3426 = vmatpush1.bf16.msra.mxu0 %v6821_v51  ;;  %3878 = vmatpush1.bf16.msra.mxu1 %v6824_v58  ;;  %v8108_v23 = vpack.c.bf16 %v1512_v7, %v1504_v59  ;;  %v1293_v13 = vpop.f32.mrb[52].mxu0  ;;  %v1397_v51 = vadd.f32 %v1396_v24, %v8021_v36  ;;  %v1399_v58 = vadd.f32 %v1398_v19, %v8026_v39  ;;  %v1400_v59 = vpop.f32.mrb[50].mxu1  ;;  %v6850_v19 = vld [vmem:[#allocation8 + $0x56c] ss:$16 sps:$4 sm:$0xff]  }
 0x23c   : > { %3427 = vmatprep.subr.bf16.mxu0 %v6829_v25  ;;  %3879 = vmatprep.subr.bf16.mxu1 %v6832_v42  ;;  %v1294_v10 = vadd.f32 %v1293_v13, %v7998_v33  ;;  %v1295_v63 = vpop.f32.mrb[53].mxu0  ;;  %v1401_v25 = vadd.f32 %v1400_v59, %v8021_v36  ;;  %v1402_v42 = vpop.f32.mrb[51].mxu1  ;;  %v6839_v13 = vld [vmem:[#allocation8 + $0x540] ss:$16 sps:$4 sm:$0xff]  }
 0x23d   : > { %v1296_v47 = vadd.f32 %v1295_v63, %v8002_v41  ;;  %v1297_v50 = vpop.f32.mrb[54].mxu0  ;;  %v1505_v3 = vmax.f32 %v1397_v51, 0.0  ;;  %v1506_v57 = vmax.f32 %v1399_v58, 0.0  ;;  %v1403_v7 = vadd.f32 %v1402_v42, %v8026_v39  ;;  %v1406_v51 = vpop.f32.mrb[52].mxu1  ;;  %v6845_v58 = vld [vmem:[#allocation8 + $0x560] ss:$16 sps:$4 sm:$0xff]  }
 0x23e   : > { %3371 = vmatmul.mubr.bf16.gmra.mrb[80].mxu0 %v7972_v5  ;;  %3823 = vmatmul.mubr.bf16.gmra.mrb[80].mxu1 %v7972_v5  ;;  %v1519_v48 = vmax.f32 %v1294_v10, 0.0  ;;  %v1298_v54 = vadd.f32 %v1297_v50, %v7998_v33  ;;  %v1299_v56 = vpop.f32.mrb[55].mxu0  ;;  %v6841_v5 = vld [vmem:[#allocation8 + $0x544] ss:$16 sps:$4 sm:$0xff]   ;;  %v1513_v15 = vmax.f32 %v1401_v25, 0.0 }
 0x23f   : > { %3428 = vmatpush1.bf16.msra.mxu0 %v6827_v14  ;;  %3880 = vmatpush1.bf16.msra.mxu1 %v6830_v12  ;;  %v1520_v62 = vmax.f32 %v1296_v47, 0.0  ;;  %v1300_v2 = vadd.f32 %v1299_v56, %v8002_v41  ;;  %v1514_v12 = vmax.f32 %v1403_v7, 0.0  ;;  %v6847_v47 = vld [vmem:[#allocation8 + $0x564] ss:$16 sps:$4 sm:$0xff]   ;;  %v1408_v56 = vpop.f32.mrb[53].mxu1 }
 0x240   : > { %3429 = vmatprep.subr.bf16.mxu0 %v6835_v46  ;;  %3380 = vmatprep.mubr.bf16.mxu0 %v7988_v1  ;;  %v1527_v6 = vmax.f32 %v1298_v54, 0.0  ;;  %v6842_v46 = vld [vmem:[#allocation8 + $0x548] ss:$16 sps:$4 sm:$0xff]   ;;  %v8130_v24 = vpack.c.bf16 %v1513_v15, %v1505_v3  ;;  %v1407_v54 = vadd.f32 %v1406_v51, %v8021_v36  ;;  %v1410_v3 = vpop.f32.mrb[54].mxu1  ;;  %v6856_v7 = vld [vmem:[#allocation8 + $0x58c] ss:$16 sps:$4 sm:$0xff]  }
 0x241   : > { %3832 = vmatprep.mubr.bf16.mxu1 %v7988_v1  ;;  %3881 = vmatprep.subr.bf16.mxu1 %v6838_v45  ;;  %v1528_v8 = vmax.f32 %v1300_v2, 0.0  ;;  %v8133_v50 = vpack.c.bf16 %v1514_v12, %v1506_v57  ;;  %v1409_v2 = vadd.f32 %v1408_v56, %v8026_v39  ;;  %v6848_v25 = vld [vmem:[#allocation8 + $0x568] ss:$16 sps:$4 sm:$0xff]   ;;  %v1412_v57 = vpop.f32.mrb[55].mxu1 }
 0x242   : > { %v8126_v14 = vpack.c.bf16 %v1527_v6, %v1519_v48  ;;  %v1411_v6 = vadd.f32 %v1410_v3, %v8021_v36  ;;  %v1413_v12 = vadd.f32 %v1412_v57, %v8026_v39 }
 0x243   : > { %3430 = vmatpush1.bf16.msra.mxu0 %v6833_v53  ;;  %3882 = vmatpush1.bf16.msra.mxu1 %v6836_v61  ;;  %v8128_v10 = vpack.c.bf16 %v1528_v8, %v1520_v62  ;;  %v1303_v63 = vpop.f32.mrb[56].mxu0  ;;  %v1522_v15 = vmax.f32 %v1409_v2, 0.0 }
 0x244   : > { %3431 = vmatprep.subr.bf16.mxu0 %v6841_v5  ;;  %3883 = vmatprep.subr.bf16.mxu1 %v6844_v4  ;;  %v1304_v1 = vadd.f32 %v1303_v63, %v7998_v33  ;;  %v1305_v45 = vpop.f32.mrb[57].mxu0  ;;  %v1521_v4 = vmax.f32 %v1407_v54, 0.0  ;;  %v6859_v54 = vld [vmem:[#allocation8 + $0x5a4] ss:$16 sps:$4 sm:$0xff]  }
 0x245   : > { %v1306_v53 = vadd.f32 %v1305_v45, %v8002_v41  ;;  %v1307_v48 = vpop.f32.mrb[58].mxu0  ;;  %v6851_v45 = vld [vmem:[#allocation8 + $0x580] ss:$16 sps:$4 sm:$0xff]  }
 0x246   : > { %3381 = vmatmul.mubr.bf16.gmra.mrb[84].mxu0 %v7984_v55  ;;  %3833 = vmatmul.mubr.bf16.gmra.mrb[84].mxu1 %v7984_v55  ;;  %v1535_v59 = vmax.f32 %v1304_v1, 0.0  ;;  %v1308_v61 = vadd.f32 %v1307_v48, %v7998_v33  ;;  %v1309_v62 = vpop.f32.mrb[59].mxu0  ;;  %v6853_v55 = vld [vmem:[#allocation8 + $0x584] ss:$16 sps:$4 sm:$0xff]   ;;  %v1530_v1 = vmax.f32 %v1413_v12, 0.0 }
 0x247   : > { %3432 = vmatpush1.bf16.msra.mxu0 %v6839_v13  ;;  %3884 = vmatpush1.bf16.msra.mxu1 %v6842_v46  ;;  %v1536_v42 = vmax.f32 %v1306_v53, 0.0  ;;  %v1310_v5 = vadd.f32 %v1309_v62, %v8002_v41  ;;  %v1529_v46 = vmax.f32 %v1411_v6, 0.0 }
 0x248   : > { %3433 = vmatprep.subr.bf16.mxu0 %v6847_v47  ;;  %3390 = vmatprep.mubr.bf16.mxu0 %v8006_v52  ;;  %v1543_v8 = vmax.f32 %v1308_v61, 0.0  ;;  %v6854_v47 = vld [vmem:[#allocation8 + $0x588] ss:$16 sps:$4 sm:$0xff]   ;;  %v8153_v56 = vpack.c.bf16 %v1530_v1, %v1522_v15  ;;  %v6862_v61 = vld [vmem:[#allocation8 + $0x5ac] ss:$16 sps:$4 sm:$0xff]  }
 0x249   : > { %3842 = vmatprep.mubr.bf16.mxu1 %v8006_v52  ;;  %3885 = vmatprep.subr.bf16.mxu1 %v6850_v19  ;;  %v1544_v13 = vmax.f32 %v1310_v5, 0.0  ;;  %v8150_v48 = vpack.c.bf16 %v1529_v46, %v1521_v4  ;;  %v6868_v46 = vld [vmem:[#allocation8 + $0x5cc] ss:$16 sps:$4 sm:$0xff]  }
 0x24a   : > { %v8146_v63 = vpack.c.bf16 %v1543_v8, %v1535_v59  ;;  %v1416_v59 = vpop.f32.mrb[56].mxu1 }
 0x24b   : > { %3434 = vmatpush1.bf16.msra.mxu0 %v6845_v58  ;;  %3886 = vmatpush1.bf16.msra.mxu1 %v6848_v25  ;;  %v8148_v51 = vpack.c.bf16 %v1544_v13, %v1536_v42  ;;  %v1313_v53 = vpop.f32.mrb[60].mxu0  ;;  %v1417_v2 = vadd.f32 %v1416_v59, %v8021_v36  ;;  %v1418_v3 = vpop.f32.mrb[57].mxu1  ;;  %v6857_v25 = vld [vmem:[#allocation8 + $0x5a0] ss:$16 sps:$4 sm:$0xff]  }
 0x24c   : > { %3435 = vmatprep.subr.bf16.mxu0 %v6853_v55  ;;  %3887 = vmatprep.subr.bf16.mxu1 %v6856_v7  ;;  %v1314_v52 = vadd.f32 %v1313_v53, %v7998_v33  ;;  %v1315_v19 = vpop.f32.mrb[61].mxu0  ;;  %v1419_v6 = vadd.f32 %v1418_v3, %v8026_v39  ;;  %v1420_v57 = vpop.f32.mrb[58].mxu1  ;;  %v6860_v55 = vld [vmem:[#allocation8 + $0x5a8] ss:$16 sps:$4 sm:$0xff]  }
 0x24d   : > { %v1316_v58 = vadd.f32 %v1315_v19, %v8002_v41  ;;  %v1317_v62 = vpop.f32.mrb[62].mxu0  ;;  %v1537_v15 = vmax.f32 %v1417_v2, 0.0  ;;  %v1421_v12 = vadd.f32 %v1420_v57, %v8021_v36  ;;  %v1422_v13 = vpop.f32.mrb[59].mxu1  ;;  %v6863_v19 = vld [vmem:[#allocation8 + $0x5c0] ss:$16 sps:$4 sm:$0xff]  }
 0x24e   : > { %3391 = vmatmul.mubr.bf16.gmra.mrb[88].mxu0 %v8004_v49  ;;  %3843 = vmatmul.mubr.bf16.gmra.mrb[88].mxu1 %v8004_v49  ;;  %v1551_v42 = vmax.f32 %v1314_v52, 0.0  ;;  %v1318_v5 = vadd.f32 %v1317_v62, %v7998_v33  ;;  %v1319_v4 = vpop.f32.mrb[63].mxu0  ;;  %v6865_v49 = vld [vmem:[#allocation8 + $0x5c4] ss:$16 sps:$4 sm:$0xff]   ;;  %v1538_v1 = vmax.f32 %v1419_v6, 0.0  ;;  %v1423_v53 = vadd.f32 %v1422_v13, %v8026_v39 }
 0x24f   : > { %3436 = vmatpush1.bf16.msra.mxu0 %v6851_v45  ;;  %3888 = vmatpush1.bf16.msra.mxu1 %v6854_v47  ;;  %v1552_v7 = vmax.f32 %v1316_v58, 0.0  ;;  %v1320_v8 = vadd.f32 %v1319_v4, %v8002_v41  ;;  %v1545_v47 = vmax.f32 %v1421_v12, 0.0  ;;  %v6871_v62 = vld [vmem:[#allocation8 + $0x5e4] ss:$16 sps:$4 sm:$0xff]   ;;  %v6869_v4 = vld [vmem:[#allocation8 + $0x5e0] ss:$16 sps:$4 sm:$0xff]  }
 0x250   : > { %3437 = vmatprep.subr.bf16.mxu0 %v6859_v54  ;;  %3400 = vmatprep.mubr.bf16.mxu0 %v8032_v31  ;;  %v1559_v33 = vmax.f32 %v1318_v5, 0.0  ;;  %v1546_v41 = vmax.f32 %v1423_v53, 0.0  ;;  %v6866_v54 = vld [vmem:[#allocation8 + $0x5c8] ss:$16 sps:$4 sm:$0xff]  }
 0x251   : > { %3852 = vmatprep.mubr.bf16.mxu1 %v8032_v31  ;;  %3889 = vmatprep.subr.bf16.mxu1 %v6862_v61  ;;  %v1560_v45 = vmax.f32 %v1320_v8, 0.0  ;;  %v8170_v58 = vpack.c.bf16 %v1545_v47, %v1537_v15  ;;  %v1426_v31 = vpop.f32.mrb[60].mxu1  ;;  %v6874_v61 = vld [vmem:[#allocation8 + $0x5ec] ss:$16 sps:$4 sm:$0xff]   ;;  %v6872_v6 = vld [vmem:[#allocation8 + $0x5e8] ss:$16 sps:$4 sm:$0xff]  }
 0x252   : > { %v8166_v52 = vpack.c.bf16 %v1559_v33, %v1551_v42  ;;  %v8172_v2 = vpack.c.bf16 %v1546_v41, %v1538_v1  ;;  %v1427_v3 = vadd.f32 %v1426_v31, %v8021_v36  ;;  %v1428_v42 = vpop.f32.mrb[61].mxu1  ;;  %v6877_v8 = vld [vmem:[#allocation8 + $0x604] ss:$16 sps:$4 sm:$0xff]   ;;  %v6880_v15 = vld [vmem:[#allocation8 + $0x60c] ss:$16 sps:$4 sm:$0xff]  }
 0x253   : > { %3438 = vmatpush1.bf16.msra.mxu0 %v6857_v25  ;;  %3890 = vmatpush1.bf16.msra.mxu1 %v6860_v55  ;;  %v8168_v59 = vpack.c.bf16 %v1560_v45, %v1552_v7  ;;  %v1429_v25 = vadd.f32 %v1428_v42, %v8026_v39  ;;  %v1430_v5 = vpop.f32.mrb[62].mxu1  ;;  %v6878_v33 = vld [vmem:[#allocation8 + $0x608] ss:$16 sps:$4 sm:$0xff]   ;;  %v6886_v45 = vld [vmem:[#allocation8 + $0x62c] ss:$16 sps:$4 sm:$0xff]  }
 0x254   : > { %3439 = vmatprep.subr.bf16.mxu0 %v6865_v49  ;;  %3891 = vmatprep.subr.bf16.mxu1 %v6868_v46  ;;  %v1553_v57 = vmax.f32 %v1427_v3, 0.0  ;;  %v1431_v55 = vadd.f32 %v1430_v5, %v8021_v36  ;;  %v1432_v7 = vpop.f32.mrb[63].mxu1  ;;  %v6875_v46 = vld [vmem:[#allocation8 + $0x600] ss:$16 sps:$4 sm:$0xff]   ;;  %v6883_v36 = vld [vmem:[#allocation8 + $0x624] ss:$16 sps:$4 sm:$0xff]  }
 0x255   : > { %v1554_v12 = vmax.f32 %v1429_v25, 0.0  ;;  %v1433_v13 = vadd.f32 %v1432_v7, %v8026_v39  ;;  %v6881_v39 = vld [vmem:[#allocation8 + $0x620] ss:$16 sps:$4 sm:$0xff]   ;;  %v6889_v47 = vld [vmem:[#allocation8 + $0x644] ss:$16 sps:$4 sm:$0xff]  }
 0x256   : > { %3401 = vmatmul.mubr.bf16.gmra.mrb[92].mxu0 %v8028_v38  ;;  %3853 = vmatmul.mubr.bf16.gmra.mrb[92].mxu1 %v8028_v38  ;;  %v1561_v38 = vmax.f32 %v1431_v55, 0.0  ;;  %v6892_v41 = vld [vmem:[#allocation8 + $0x64c] ss:$16 sps:$4 sm:$0xff]   ;;  %v6893_v31 = vld [vmem:[#allocation8 + $0x660] ss:$16 sps:$4 sm:$0xff]  }
 0x257   : > { %3440 = vmatpush1.bf16.msra.mxu0 %v6863_v19  ;;  %3892 = vmatpush1.bf16.msra.mxu1 %v6866_v54  ;;  %v1562_v49 = vmax.f32 %v1433_v13, 0.0  ;;  %v6887_v19 = vld [vmem:[#allocation8 + $0x640] ss:$16 sps:$4 sm:$0xff]   ;;  %v6890_v54 = vld [vmem:[#allocation8 + $0x648] ss:$16 sps:$4 sm:$0xff]  }
 0x258   : > { %3441 = vmatprep.subr.bf16.mxu0 %v6871_v62  ;;  %3443 = vmatprep.mubr.bf16.mxu0 %v8030_v44  ;;  %v8182_v1 = vpack.c.bf16 %v1561_v38, %v1553_v57  ;;  %v6895_v62 = vld [vmem:[#allocation8 + $0x664] ss:$16 sps:$4 sm:$0xff]   ;;  %v6904_v3 = vld [vmem:[#allocation8 + $0x68c] ss:$16 sps:$4 sm:$0xff]   ;;  %v6899_v42 = vld [vmem:[#allocation8 + $0x680] ss:$16 sps:$4 sm:$0xff]  }
 0x259   : > { %3893 = vmatprep.subr.bf16.mxu1 %v6874_v61  ;;  %3895 = vmatprep.mubr.bf16.mxu1 %v8030_v44  ;;  %v8184_v53 = vpack.c.bf16 %v1562_v49, %v1554_v12  ;;  %v6884_v44 = vld [vmem:[#allocation8 + $0x628] ss:$16 sps:$4 sm:$0xff]   ;;  %v6907_v5 = vld [vmem:[#allocation8 + $0x6a4] ss:$16 sps:$4 sm:$0xff]   ;;  %v6916_v57 = vld [vmem:[#allocation8 + $0x6cc] ss:$16 sps:$4 sm:$0xff]  }
 0x25a   : > { %v6896_v61 = vld [vmem:[#allocation8 + $0x668] ss:$16 sps:$4 sm:$0xff]   ;;  %v6911_v55 = vld [vmem:[#allocation8 + $0x6c0] ss:$16 sps:$4 sm:$0xff]   ;;  %v6928_v13 = vld [vmem:[#allocation8 + $0x70c] ss:$16 sps:$4 sm:$0xff]  }
 0x25b   : > { %3442 = vmatpush1.bf16.msra.mxu0 %v6869_v4  ;;  %3894 = vmatpush1.bf16.msra.mxu1 %v6872_v6  ;;  %v6902_v25 = vld [vmem:[#allocation8 + $0x688] ss:$16 sps:$4 sm:$0xff]   ;;  %v6905_v4 = vld [vmem:[#allocation8 + $0x6a0] ss:$16 sps:$4 sm:$0xff]  }
 0x25c   : > { %3524 = vmatprep.subr.bf16.mxu0 %v6877_v8  ;;  %3976 = vmatprep.subr.bf16.mxu1 %v6880_v15  ;;  %v6908_v6 = vld [vmem:[#allocation8 + $0x6a8] ss:$16 sps:$4 sm:$0xff]   ;;  %v6919_v8 = vld [vmem:[#allocation8 + $0x6e4] ss:$16 sps:$4 sm:$0xff]   ;;  %v6917_v15 = vld [vmem:[#allocation8 + $0x6e0] ss:$16 sps:$4 sm:$0xff]  }
 0x25d   : > { %v6914_v7 = vld [vmem:[#allocation8 + $0x6c8] ss:$16 sps:$4 sm:$0xff]   ;;  %v6923_v38 = vld [vmem:[#allocation8 + $0x700] ss:$16 sps:$4 sm:$0xff]  }
 0x25e   : > { %3444 = vmatmul.mubr.bf16.vlgmr.msra.gmra.mrb[64].mxu0 %v8023_v21  ;;  %3896 = vmatmul.mubr.bf16.vlgmr.msra.gmra.mrb[64].mxu1 %v8023_v21  ;;  %v6898_v21 = vld [vmem:[#allocation8 + $0x66c] ss:$16 sps:$4 sm:$0xff]   ;;  %v6920_v12 = vld [vmem:[#allocation8 + $0x6e8] ss:$16 sps:$4 sm:$0xff]  }
 0x25f   : > { %3525 = vmatpush1.bf16.msra.mxu0 %v6875_v46  ;;  %3977 = vmatpush1.bf16.msra.mxu1 %v6878_v33  ;;  %v6926_v49 = vld [vmem:[#allocation8 + $0x708] ss:$16 sps:$4 sm:$0xff]   ;;  %v6931_v46 = vld [vmem:[#allocation8 + $0x724] ss:$16 sps:$4 sm:$0xff]   ;;  %v6929_v33 = vld [vmem:[#allocation8 + $0x720] ss:$16 sps:$4 sm:$0xff]  }
 0x260   : > { %3526 = vmatprep.subr.bf16.mxu0 %v6883_v36  ;;  %3453 = vmatprep.mubr.bf16.mxu0 %v8048_v34  ;;  %v6932_v36 = vld [vmem:[#allocation8 + $0x728] ss:$16 sps:$4 sm:$0xff]  }
 0x261   : > { %3905 = vmatprep.mubr.bf16.mxu1 %v8048_v34  ;;  %3978 = vmatprep.subr.bf16.mxu1 %v6886_v45  ;;  %v6901_v34 = vld [vmem:[#allocation8 + $0x684] ss:$16 sps:$4 sm:$0xff]   ;;  %v6940_v45 = vld [vmem:[#allocation8 + $0x74c] ss:$16 sps:$4 sm:$0xff]  }
 0x263   : > { %3527 = vmatpush1.bf16.msra.mxu0 %v6881_v39  ;;  %3979 = vmatpush1.bf16.msra.mxu1 %v6884_v44  ;;  %v6935_v39 = vld [vmem:[#allocation8 + $0x740] ss:$16 sps:$4 sm:$0xff]   ;;  %v6938_v44 = vld [vmem:[#allocation8 + $0x748] ss:$16 sps:$4 sm:$0xff]  }
 0x264   : > { %3528 = vmatprep.subr.bf16.mxu0 %v6889_v47  ;;  %3980 = vmatprep.subr.bf16.mxu1 %v6892_v41  ;;  %v6943_v47 = vld [vmem:[#allocation8 + $0x764] ss:$16 sps:$4 sm:$0xff]   ;;  %v6941_v41 = vld [vmem:[#allocation8 + $0x760] ss:$16 sps:$4 sm:$0xff]  }
 0x266   : > { %3454 = vmatmul.mubr.bf16.gmra.mrb[68].mxu0 %v8046_v28  ;;  %3906 = vmatmul.mubr.bf16.gmra.mrb[68].mxu1 %v8046_v28  ;;  %v6910_v28 = vld [vmem:[#allocation8 + $0x6ac] ss:$16 sps:$4 sm:$0xff]  }
 0x267   : > { %3529 = vmatpush1.bf16.msra.mxu0 %v6887_v19  ;;  %3981 = vmatpush1.bf16.msra.mxu1 %v6890_v54  ;;  %v6944_v19 = vld [vmem:[#allocation8 + $0x768] ss:$16 sps:$4 sm:$0xff]   ;;  %v6952_v54 = vld [vmem:[#allocation8 + $0x78c] ss:$16 sps:$4 sm:$0xff]  }
 0x268   : > { %3530 = vmatprep.subr.bf16.mxu0 %v6895_v62  ;;  %3463 = vmatprep.mubr.bf16.mxu0 %v8068_v26  ;;  %v6947_v62 = vld [vmem:[#allocation8 + $0x780] ss:$16 sps:$4 sm:$0xff]  }
 0x269   : > { %3915 = vmatprep.mubr.bf16.mxu1 %v8068_v26  ;;  %3982 = vmatprep.subr.bf16.mxu1 %v6898_v21  ;;  %v6913_v26 = vld [vmem:[#allocation8 + $0x6c4] ss:$16 sps:$4 sm:$0xff]   ;;  %v6950_v21 = vld [vmem:[#allocation8 + $0x788] ss:$16 sps:$4 sm:$0xff]  }
 0x26b   : > { %3531 = vmatpush1.bf16.msra.mxu0 %v6893_v31  ;;  %3983 = vmatpush1.bf16.msra.mxu1 %v6896_v61  ;;  %v6955_v31 = vld [vmem:[#allocation8 + $0x7a4] ss:$16 sps:$4 sm:$0xff]   ;;  %v6953_v61 = vld [vmem:[#allocation8 + $0x7a0] ss:$16 sps:$4 sm:$0xff]  }
 0x26c   : > { %3532 = vmatprep.subr.bf16.mxu0 %v6901_v34  ;;  %3984 = vmatprep.subr.bf16.mxu1 %v6904_v3  ;;  %v6956_v34 = vld [vmem:[#allocation8 + $0x7a8] ss:$16 sps:$4 sm:$0xff]   ;;  %v6964_v3 = vld [vmem:[#allocation8 + $0x7cc] ss:$16 sps:$4 sm:$0xff]  }
 0x26e   : > { %3464 = vmatmul.mubr.bf16.gmra.mrb[72].mxu0 %v8066_v17  ;;  %3916 = vmatmul.mubr.bf16.gmra.mrb[72].mxu1 %v8066_v17  ;;  %v6922_v17 = vld [vmem:[#allocation8 + $0x6ec] ss:$16 sps:$4 sm:$0xff]  }
 0x26f   : > { %3533 = vmatpush1.bf16.msra.mxu0 %v6899_v42  ;;  %3985 = vmatpush1.bf16.msra.mxu1 %v6902_v25  ;;  %v6959_v42 = vld [vmem:[#allocation8 + $0x7c0] ss:$16 sps:$4 sm:$0xff]   ;;  %v6962_v25 = vld [vmem:[#allocation8 + $0x7c8] ss:$16 sps:$4 sm:$0xff]  }
 0x270   : > { %3534 = vmatprep.subr.bf16.mxu0 %v6907_v5  ;;  %3473 = vmatprep.mubr.bf16.mxu0 %v8088_v22  ;;  %v6967_v5 = vld [vmem:[#allocation8 + $0x7e4] ss:$16 sps:$4 sm:$0xff]  }
 0x271   : > { %3925 = vmatprep.mubr.bf16.mxu1 %v8088_v22  ;;  %3986 = vmatprep.subr.bf16.mxu1 %v6910_v28  ;;  %v6925_v22 = vld [vmem:[#allocation8 + $0x704] ss:$16 sps:$4 sm:$0xff]   ;;  %v6965_v28 = vld [vmem:[#allocation8 + $0x7e0] ss:$16 sps:$4 sm:$0xff]  }
 0x273   : > { %3535 = vmatpush1.bf16.msra.mxu0 %v6905_v4  ;;  %3987 = vmatpush1.bf16.msra.mxu1 %v6908_v6  ;;  %v6968_v4 = vld [vmem:[#allocation8 + $0x7e8] ss:$16 sps:$4 sm:$0xff]  }
 0x274   : > { %3536 = vmatprep.subr.bf16.mxu0 %v6913_v26  ;;  %3988 = vmatprep.subr.bf16.mxu1 %v6916_v57  ;;  %v6971_v6 = vld [vmem:[#allocation10] ss:$8 sps:$4 sm:$0xff]   ;;  %v6976_v26 = vld [vmem:[#allocation10 + $0x14] ss:$8 sps:$4 sm:$0xff]   ;;  %v6979_v57 = vld [vmem:[#allocation10 + $0x24] ss:$8 sps:$4 sm:$0xff]  }
 0x276   : > { %3474 = vmatmul.mubr.bf16.gmra.mrb[76].mxu0 %v8086_v11  ;;  %3926 = vmatmul.mubr.bf16.gmra.mrb[76].mxu1 %v8086_v11  ;;  %v6934_v11 = vld [vmem:[#allocation8 + $0x72c] ss:$16 sps:$4 sm:$0xff]  }
 0x277   : > { %3537 = vmatpush1.bf16.msra.mxu0 %v6911_v55  ;;  %3989 = vmatpush1.bf16.msra.mxu1 %v6914_v7  ;;  %v6977_v55 = vld [vmem:[#allocation10 + $0x20] ss:$8 sps:$4 sm:$0xff]  }
 0x278   : > { %3538 = vmatprep.subr.bf16.mxu0 %v6919_v8  ;;  %3483 = vmatprep.mubr.bf16.mxu0 %v8108_v23  ;;  %v6983_v7 = vld [vmem:[#allocation10 + $0x40] ss:$8 sps:$4 sm:$0xff]   ;;  %v6988_v8 = vld [vmem:[#allocation10 + $0x54] ss:$8 sps:$4 sm:$0xff]  }
 0x279   : > { %3935 = vmatprep.mubr.bf16.mxu1 %v8108_v23  ;;  %3990 = vmatprep.subr.bf16.mxu1 %v6922_v17  ;;  %v6937_v23 = vld [vmem:[#allocation8 + $0x744] ss:$16 sps:$4 sm:$0xff]   ;;  %v6989_v17 = vld [vmem:[#allocation10 + $0x60] ss:$8 sps:$4 sm:$0xff]  }
 0x27b   : > { %3539 = vmatpush1.bf16.msra.mxu0 %v6917_v15  ;;  %3991 = vmatpush1.bf16.msra.mxu1 %v6920_v12  ;;  %v6994_v15 = vld [vmem:[#allocation10 + $0x74] ss:$8 sps:$4 sm:$0xff]   ;;  %v6995_v12 = vld [vmem:[#allocation10 + $0x80] ss:$8 sps:$4 sm:$0xff]  }
 0x27c   : > { %3540 = vmatprep.subr.bf16.mxu0 %v6925_v22  ;;  %3992 = vmatprep.subr.bf16.mxu1 %v6928_v13  ;;  %v7000_v22 = vld [vmem:[#allocation10 + $0x94] ss:$8 sps:$4 sm:$0xff]   ;;  %v7001_v13 = vld [vmem:[#allocation10 + $0xa0] ss:$8 sps:$4 sm:$0xff]  }
 0x27e   : > { %3484 = vmatmul.mubr.bf16.gmra.mrb[80].mxu0 %v8106_v9  ;;  %3936 = vmatmul.mubr.bf16.gmra.mrb[80].mxu1 %v8106_v9  ;;  %v6946_v9 = vld [vmem:[#allocation8 + $0x76c] ss:$16 sps:$4 sm:$0xff]  }
 0x27f   : > { %3541 = vmatpush1.bf16.msra.mxu0 %v6923_v38  ;;  %3993 = vmatpush1.bf16.msra.mxu1 %v6926_v49  ;;  %v7006_v38 = vld [vmem:[#allocation10 + $0xb4] ss:$8 sps:$4 sm:$0xff]   ;;  %v7007_v49 = vld [vmem:[#allocation10 + $0xc0] ss:$8 sps:$4 sm:$0xff]  }
 0x280   : > { %3542 = vmatprep.subr.bf16.mxu0 %v6931_v46  ;;  %3493 = vmatprep.mubr.bf16.mxu0 %v8128_v10  ;;  %v7012_v46 = vld [vmem:[#allocation10 + $0xd4] ss:$8 sps:$4 sm:$0xff]  }
 0x281   : > { %3945 = vmatprep.mubr.bf16.mxu1 %v8128_v10  ;;  %3994 = vmatprep.subr.bf16.mxu1 %v6934_v11  ;;  %v6949_v10 = vld [vmem:[#allocation8 + $0x784] ss:$16 sps:$4 sm:$0xff]   ;;  %v7013_v11 = vld [vmem:[#allocation10 + $0xe0] ss:$8 sps:$4 sm:$0xff]  }
 0x283   : > { %3543 = vmatpush1.bf16.msra.mxu0 %v6929_v33  ;;  %3995 = vmatpush1.bf16.msra.mxu1 %v6932_v36  ;;  %v7018_v33 = vld [vmem:[#allocation10 + $0xf4] ss:$8 sps:$4 sm:$0xff]   ;;  %v7016_v36 = vld [vmem:[#allocation10 + $0xf0] ss:$8 sps:$4 sm:$0xff]  }
 0x284   : > { %3544 = vmatprep.subr.bf16.mxu0 %v6937_v23  ;;  %3996 = vmatprep.subr.bf16.mxu1 %v6940_v45 }
 0x286   : > { %3494 = vmatmul.mubr.bf16.gmra.mrb[84].mxu0 %v8126_v14  ;;  %3946 = vmatmul.mubr.bf16.gmra.mrb[84].mxu1 %v8126_v14  ;;  %v6958_v14 = vld [vmem:[#allocation8 + $0x7ac] ss:$16 sps:$4 sm:$0xff]  }
 0x287   : > { %3545 = vmatpush1.bf16.msra.mxu0 %v6935_v39  ;;  %3997 = vmatpush1.bf16.msra.mxu1 %v6938_v44 }
 0x288   : > { %3546 = vmatprep.subr.bf16.mxu0 %v6943_v47  ;;  %3503 = vmatprep.mubr.bf16.mxu0 %v8148_v51 }
 0x289   : > { %3955 = vmatprep.mubr.bf16.mxu1 %v8148_v51  ;;  %3998 = vmatprep.subr.bf16.mxu1 %v6946_v9  ;;  %v6961_v51 = vld [vmem:[#allocation8 + $0x7c4] ss:$16 sps:$4 sm:$0xff]  }
 0x28b   : > { %3547 = vmatpush1.bf16.msra.mxu0 %v6941_v41  ;;  %3999 = vmatpush1.bf16.msra.mxu1 %v6944_v19 }
 0x28c   : > { %3548 = vmatprep.subr.bf16.mxu0 %v6949_v10  ;;  %4000 = vmatprep.subr.bf16.mxu1 %v6952_v54 }
 0x28e   : > { %3504 = vmatmul.mubr.bf16.gmra.mrb[88].mxu0 %v8146_v63  ;;  %3956 = vmatmul.mubr.bf16.gmra.mrb[88].mxu1 %v8146_v63  ;;  %v6970_v63 = vld [vmem:[#allocation8 + $0x7ec] ss:$16 sps:$4 sm:$0xff]  }
 0x28f   : > { %3549 = vmatpush1.bf16.msra.mxu0 %v6947_v62  ;;  %4001 = vmatpush1.bf16.msra.mxu1 %v6950_v21 }
 0x290   : > { %3550 = vmatprep.subr.bf16.mxu0 %v6955_v31  ;;  %3513 = vmatprep.mubr.bf16.mxu0 %v8168_v59 }
 0x291   : > { %3965 = vmatprep.mubr.bf16.mxu1 %v8168_v59  ;;  %4002 = vmatprep.subr.bf16.mxu1 %v6958_v14  ;;  %v6973_v59 = vld [vmem:[#allocation10 + $0x4] ss:$8 sps:$4 sm:$0xff]  }
 0x293   : > { %3551 = vmatpush1.bf16.msra.mxu0 %v6953_v61  ;;  %4003 = vmatpush1.bf16.msra.mxu1 %v6956_v34  ;;  %v7067_v61 = vld [vmem:[#allocation11 + $0x40] sm:$0xff]  }
 0x294   : > { %3552 = vmatprep.subr.bf16.mxu0 %v6961_v51  ;;  %4004 = vmatprep.subr.bf16.mxu1 %v6964_v3  ;;  %v7068_v34 = vld [vmem:[#allocation11] sm:$0xff]  }
 0x296   : > { %3514 = vmatmul.mubr.bf16.gmra.mrb[92].mxu0 %v8166_v52  ;;  %3966 = vmatmul.mubr.bf16.gmra.mrb[92].mxu1 %v8166_v52  ;;  %v6974_v52 = vld [vmem:[#allocation10 + $0x10] ss:$8 sps:$4 sm:$0xff]  }
 0x297   : > { %3553 = vmatpush1.bf16.msra.mxu0 %v6959_v42  ;;  %4005 = vmatpush1.bf16.msra.mxu1 %v6962_v25  ;;  %v7069_v42 = vld [vmem:[#allocation11 + $0x48] sm:$0xff]  }
 0x298   : > { %3554 = vmatprep.subr.bf16.mxu0 %v6967_v5  ;;  %3556 = vmatprep.mubr.bf16.mxu0 %v8053_v43 }
 0x299   : > { %4006 = vmatprep.subr.bf16.mxu1 %v6970_v63  ;;  %4008 = vmatprep.mubr.bf16.mxu1 %v8053_v43  ;;  %v6982_v43 = vld [vmem:[#allocation10 + $0x34] ss:$8 sps:$4 sm:$0xff]  }
 0x29b   : > { %3555 = vmatpush1.bf16.msra.mxu0 %v6965_v28  ;;  %4007 = vmatpush1.bf16.msra.mxu1 %v6968_v4 }
 0x29c   : > { %4581 = vmatprep.subr.bf16.mxu0 %v6973_v59  ;;  %6029 = vmatprep.subr.bf16.mxu1 %v7067_v61 }
 0x29e   : > { %3557 = vmatmul.mubr.bf16.vlgmr.msra.gmra.mrb[64].mxu0 %v8050_v37  ;;  %4009 = vmatmul.mubr.bf16.vlgmr.msra.gmra.mrb[64].mxu1 %v8050_v37  ;;  %v6980_v37 = vld [vmem:[#allocation10 + $0x30] ss:$8 sps:$4 sm:$0xff]  }
 0x29f   : > { %3566 = vmatprep.mubr.bf16.mxu0 %v8073_v16  ;;  %4018 = vmatprep.mubr.bf16.mxu1 %v8073_v16  ;;  %v6985_v16 = vld [vmem:[#allocation10 + $0x44] ss:$8 sps:$4 sm:$0xff]  }
 0x2a0   : > { %4582 = vmatpush1.bf16.msra.mxu0 %v6971_v6  ;;  %6030 = vmatpush3.bf16.msra.mxu1 %v7068_v34 }
 0x2a1   : > { %4583 = vmatprep.subr.bf16.mxu0 %v6976_v26  ;;  %6031 = vmatprep.subr.bf16.mxu1 %v7069_v42  ;;  %v7030_v42 = vld [vmem:[#allocation10 + $0x134] ss:$8 sps:$4 sm:$0xff]  }
 0x2a4   : > { %4584 = vmatpush1.bf16.msra.mxu0 %v6974_v52  ;;  %v7070_v52 = vld [vmem:[#allocation11 + $0x8] sm:$0xff]  }
 0x2a5   : > { %4585 = vmatprep.subr.bf16.mxu0 %v6979_v57  ;;  %6032 = vmatpush3.bf16.msra.mxu1 %v7070_v52 }
 0x2a6   : > { %3567 = vmatmul.mubr.bf16.gmra.mrb[68].mxu0 %v8070_v32  ;;  %4019 = vmatmul.mubr.bf16.gmra.mrb[68].mxu1 %v8070_v32  ;;  %v6986_v32 = vld [vmem:[#allocation10 + $0x50] ss:$8 sps:$4 sm:$0xff]  }
 0x2a7   : > { %3576 = vmatprep.mubr.bf16.mxu0 %v8093_v35  ;;  %4028 = vmatprep.mubr.bf16.mxu1 %v8093_v35  ;;  %v6991_v35 = vld [vmem:[#allocation10 + $0x64] ss:$8 sps:$4 sm:$0xff]  }
 0x2a8   : > { %4586 = vmatpush1.bf16.msra.mxu0 %v6977_v55 }
 0x2a9   : > { %4587 = vmatprep.subr.bf16.mxu0 %v6982_v43  ;;  %v7071_v43 = vld [vmem:[#allocation11 + $0x50] sm:$0xff]  }
 0x2aa   : > { %6033 = vmatprep.subr.bf16.mxu1 %v7071_v43 }
 0x2ac   : > { %4588 = vmatpush1.bf16.msra.mxu0 %v6980_v37 }
 0x2ad   : > { %4589 = vmatprep.subr.bf16.mxu0 %v6985_v16 }
 0x2ae   : > { %3577 = vmatmul.mubr.bf16.gmra.mrb[72].mxu0 %v8090_v29  ;;  %4029 = vmatmul.mubr.bf16.gmra.mrb[72].mxu1 %v8090_v29  ;;  %v6992_v29 = vld [vmem:[#allocation10 + $0x70] ss:$8 sps:$4 sm:$0xff]  }
 0x2af   : > { %3586 = vmatprep.mubr.bf16.mxu0 %v8113_v40  ;;  %4038 = vmatprep.mubr.bf16.mxu1 %v8113_v40  ;;  %v6997_v40 = vld [vmem:[#allocation10 + $0x84] ss:$8 sps:$4 sm:$0xff]  }
 0x2b0   : > { %4590 = vmatpush1.bf16.msra.mxu0 %v6983_v7 }
 0x2b1   : > { %4591 = vmatprep.subr.bf16.mxu0 %v6988_v8 }
 0x2b4   : > { %4592 = vmatpush1.bf16.msra.mxu0 %v6986_v32  ;;  %v7019_v32 = vld [vmem:[#allocation10 + $0x100] ss:$8 sps:$4 sm:$0xff]  }
 0x2b5   : > { %4593 = vmatprep.subr.bf16.mxu0 %v6991_v35 }
 0x2b6   : > { %3587 = vmatmul.mubr.bf16.gmra.mrb[76].mxu0 %v8110_v60  ;;  %4039 = vmatmul.mubr.bf16.gmra.mrb[76].mxu1 %v8110_v60  ;;  %v6998_v60 = vld [vmem:[#allocation10 + $0x90] ss:$8 sps:$4 sm:$0xff]  }
 0x2b7   : > { %3596 = vmatprep.mubr.bf16.mxu0 %v8133_v50  ;;  %4048 = vmatprep.mubr.bf16.mxu1 %v8133_v50  ;;  %v7003_v50 = vld [vmem:[#allocation10 + $0xa4] ss:$8 sps:$4 sm:$0xff]  }
 0x2b8   : > { %4594 = vmatpush1.bf16.msra.mxu0 %v6989_v17 }
 0x2b9   : > { %4595 = vmatprep.subr.bf16.mxu0 %v6994_v15 }
 0x2bc   : > { %4596 = vmatpush1.bf16.msra.mxu0 %v6992_v29 }
 0x2bd   : > { %4597 = vmatprep.subr.bf16.mxu0 %v6997_v40  ;;  %v7024_v40 = vld [vmem:[#allocation10 + $0x114] ss:$8 sps:$4 sm:$0xff]  }
 0x2be   : > { %3597 = vmatmul.mubr.bf16.gmra.mrb[80].mxu0 %v8130_v24  ;;  %4049 = vmatmul.mubr.bf16.gmra.mrb[80].mxu1 %v8130_v24  ;;  %v7004_v24 = vld [vmem:[#allocation10 + $0xb0] ss:$8 sps:$4 sm:$0xff]  }
 0x2bf   : > { %3606 = vmatprep.mubr.bf16.mxu0 %v8153_v56  ;;  %4058 = vmatprep.mubr.bf16.mxu1 %v8153_v56  ;;  %v7009_v56 = vld [vmem:[#allocation10 + $0xc4] ss:$8 sps:$4 sm:$0xff]  }
 0x2c0   : > { %4598 = vmatpush1.bf16.msra.mxu0 %v6995_v12 }
 0x2c1   : > { %4599 = vmatprep.subr.bf16.mxu0 %v7000_v22 }
 0x2c4   : > { %4600 = vmatpush1.bf16.msra.mxu0 %v6998_v60 }
 0x2c5   : > { %4601 = vmatprep.subr.bf16.mxu0 %v7003_v50 }
 0x2c6   : > { %3607 = vmatmul.mubr.bf16.gmra.mrb[84].mxu0 %v8150_v48  ;;  %4059 = vmatmul.mubr.bf16.gmra.mrb[84].mxu1 %v8150_v48  ;;  %v7010_v48 = vld [vmem:[#allocation10 + $0xd0] ss:$8 sps:$4 sm:$0xff]  }
 0x2c7   : > { %3616 = vmatprep.mubr.bf16.mxu0 %v8172_v2  ;;  %4068 = vmatprep.mubr.bf16.mxu1 %v8172_v2  ;;  %v7015_v2 = vld [vmem:[#allocation10 + $0xe4] ss:$8 sps:$4 sm:$0xff]  }
 0x2c8   : > { %4602 = vmatpush1.bf16.msra.mxu0 %v7001_v13  ;;  %v7072_v13 = vld [vmem:[#allocation11 + $0x10] sm:$0xff]  }
 0x2c9   : > { %4603 = vmatprep.subr.bf16.mxu0 %v7006_v38  ;;  %6034 = vmatpush3.bf16.msra.mxu1 %v7072_v13 }
 0x2cc   : > { %4604 = vmatpush1.bf16.msra.mxu0 %v7004_v24 }
 0x2cd   : > { %4605 = vmatprep.subr.bf16.mxu0 %v7009_v56 }
 0x2ce   : > { %3617 = vmatmul.mubr.bf16.gmra.mrb[88].mxu0 %v8170_v58  ;;  %4069 = vmatmul.mubr.bf16.gmra.mrb[88].mxu1 %v8170_v58  ;;  %v7021_v58 = vld [vmem:[#allocation10 + $0x104] ss:$8 sps:$4 sm:$0xff]  }
 0x2cf   : > { %3626 = vmatprep.mubr.bf16.mxu0 %v8184_v53  ;;  %4078 = vmatprep.mubr.bf16.mxu1 %v8184_v53  ;;  %v1883_v53 = vld [vmem:[%s8611_s4] sm:$0xf] }
 0x2d0   : > { %4606 = vmatpush1.bf16.msra.mxu0 %v7007_v49  ;;  %v8252_v23 = vrot.slane %v1883_v53, %v7885_v18  ;;  %v8259_v45 = vrot.slane %v1883_v53, %v7890_v20  ;;  %v8263_v39 = vrot.slane %v1883_v53, %v589_v30 }
 0x2d1   : > { %4607 = vmatprep.subr.bf16.mxu0 %v7012_v46  ;;  %v7073_v46 = vld [vmem:[#allocation11 + $0x58] sm:$0xff]  }
 0x2d2   : > { %6035 = vmatprep.subr.bf16.mxu1 %v7073_v46 }
 0x2d4   : > { %4608 = vmatpush1.bf16.msra.mxu0 %v7010_v48 }
 0x2d5   : > { %4609 = vmatprep.subr.bf16.mxu0 %v7015_v2 }
 0x2d6   : > { %3627 = vmatmul.mubr.bf16.gmra.mrb[92].mxu0 %v8182_v1  ;;  %4079 = vmatmul.mubr.bf16.gmra.mrb[92].mxu1 %v8182_v1  ;;  %v8256_v1 = vrot.slane %v1883_v53, %v585_v27 }
 0x2d8   : > { %4610 = vmatpush1.bf16.msra.mxu0 %v7013_v11  ;;  %v7022_v11 = vld [vmem:[#allocation10 + $0x110] ss:$8 sps:$4 sm:$0xff]  }
 0x2d9   : > { %4611 = vmatprep.subr.bf16.mxu0 %v7018_v33 }
 0x2dc   : > { %4612 = vmatpush1.bf16.msra.mxu0 %v7016_v36 }
 0x2dd   : > { %4694 = vmatprep.subr.bf16.mxu0 %v7021_v58 }
 0x371   : > { %v3558_v44 = vpop.f32.mrb[64].mxu0  ;;  %v4010_v47 = vpop.f32.mrb[64].mxu1 }
 0x372   : > { %v6141_v9 = vadd.f32 %v3558_v44, %v8252_v23  ;;  %v6173_v41 = vadd.f32 %v4010_v47, %v8256_v1  ;;  %v3560_v19 = vpop.f32.mrb[65].mxu0  ;;  %v4012_v10 = vpop.f32.mrb[65].mxu1  ;;  %v7027_v44 = vld [vmem:[#allocation10 + $0x124] ss:$8 sps:$4 sm:$0xff]  }
 0x373   : > { %v6142_v54 = vadd.f32 %v3560_v19, %v8259_v45  ;;  %v6174_v27 = vadd.f32 %v4012_v10, %v8263_v39  ;;  %v3562_v62 = vpop.f32.mrb[66].mxu0  ;;  %v4014_v21 = vpop.f32.mrb[66].mxu1  ;;  %v7074_v10 = vld [vmem:[#allocation11 + $0x18] sm:$0xff]  }
 0x374   : > { %v6143_v31 = vadd.f32 %v3562_v62, %v8252_v23  ;;  %v6175_v0 = vadd.f32 %v4014_v21, %v8256_v1  ;;  %v3564_v30 = vpop.f32.mrb[67].mxu0  ;;  %v4016_v14 = vpop.f32.mrb[67].mxu1  ;;  %v4089_v25 = vmax.f32 %v6141_v9, 0.0  ;;  %v4091_v5 = vmax.f32 %v6173_v41, 0.0  ;;  %v7075_v62 = vld [vmem:[#allocation11 + $0x60] sm:$0xff]   ;;  %6036 = vmatpush3.bf16.msra.mxu1 %v7074_v10 }
 0x375   : > { %v6144_v51 = vadd.f32 %v3564_v30, %v8259_v45  ;;  %v6176_v3 = vadd.f32 %v4016_v14, %v8263_v39  ;;  %v4090_v4 = vmax.f32 %v6142_v54, 0.0  ;;  %v4092_v59 = vmax.f32 %v6174_v27, 0.0  ;;  %v7025_v14 = vld [vmem:[#allocation10 + $0x120] ss:$8 sps:$4 sm:$0xff]   ;;  %6037 = vmatprep.subr.bf16.mxu1 %v7075_v62 }
 0x376   : > { %v4093_v63 = vmax.f32 %v6143_v31, 0.0  ;;  %v4095_v28 = vmax.f32 %v6175_v0, 0.0 }
 0x377   : > { %v4094_v6 = vmax.f32 %v6144_v51, 0.0  ;;  %v4096_v26 = vmax.f32 %v6176_v3, 0.0 }
 0x378   : > { %v4153_v57 = vpack.c.bf16 %v4093_v63, %v4089_v25  ;;  %v8273_v55 = vpack.c.bf16 %v4095_v28, %v4091_v5 }
 0x379   : > { %v4154_v37 = vpack.c.bf16 %v4094_v6, %v4090_v4  ;;  %v8275_v16 = vpack.c.bf16 %v4096_v26, %v4092_v59  ;;  %v3568_v7 = vpop.f32.mrb[68].mxu0  ;;  %v4020_v8 = vpop.f32.mrb[68].mxu1  ;;  %v7076_v4 = vld [vmem:[#allocation11 + $0x20] sm:$0xff]  }
 0x37a   : > { %v6145_v35 = vadd.f32 %v3568_v7, %v8252_v23  ;;  %v6177_v17 = vadd.f32 %v4020_v8, %v8256_v1  ;;  %v3570_v15 = vpop.f32.mrb[69].mxu0  ;;  %v4022_v29 = vpop.f32.mrb[69].mxu1  ;;  %v7028_v7 = vld [vmem:[#allocation10 + $0x130] ss:$8 sps:$4 sm:$0xff]   ;;  %6038 = vmatpush3.bf16.msra.mxu1 %v7076_v4 }
 0x37b   : > { %v6146_v12 = vadd.f32 %v3570_v15, %v8259_v45  ;;  %v6178_v22 = vadd.f32 %v4022_v29, %v8263_v39  ;;  %v3572_v60 = vpop.f32.mrb[70].mxu0  ;;  %v4024_v50 = vpop.f32.mrb[70].mxu1  ;;  %4613 = vmatprep.mubr.bf16.mxu0 %v4154_v37  ;;  %v7033_v15 = vld [vmem:[#allocation10 + $0x144] ss:$8 sps:$4 sm:$0xff]  }
 0x37c   : > { %v6147_v38 = vadd.f32 %v3572_v60, %v8252_v23  ;;  %v6179_v24 = vadd.f32 %v4024_v50, %v8256_v1  ;;  %v3574_v56 = vpop.f32.mrb[71].mxu0  ;;  %v4026_v49 = vpop.f32.mrb[71].mxu1  ;;  %4614 = vmatmul.mubr.bf16.vlgmr.msra.gmra.mrb[96].mxu0 %v4153_v57  ;;  %v4097_v33 = vmax.f32 %v6145_v35, 0.0  ;;  %v4099_v36 = vmax.f32 %v6177_v17, 0.0  ;;  %v7077_v57 = vld [vmem:[#allocation11 + $0x68] sm:$0xff]  }
 0x37d   : > { %v6148_v48 = vadd.f32 %v3574_v56, %v8259_v45  ;;  %v6180_v2 = vadd.f32 %v4026_v49, %v8263_v39  ;;  %4695 = vmatpush1.bf16.msra.mxu0 %v7019_v32  ;;  %v4098_v47 = vmax.f32 %v6146_v12, 0.0  ;;  %v4100_v9 = vmax.f32 %v6178_v22, 0.0  ;;  %v7078_v60 = vld [vmem:[#allocation11 + $0x28] sm:$0xff]   ;;  %6039 = vmatprep.subr.bf16.mxu1 %v7077_v57 }
 0x37e   : > { %v4101_v58 = vmax.f32 %v6147_v38, 0.0  ;;  %v4103_v53 = vmax.f32 %v6179_v24, 0.0  ;;  %4696 = vmatprep.subr.bf16.mxu0 %v7024_v40  ;;  %v7079_v38 = vld [vmem:[#allocation11 + $0x70] sm:$0xff]   ;;  %6040 = vmatpush3.bf16.msra.mxu1 %v7078_v60  ;;  %v7037_v57 = vld [vmem:[#allocation10 + $0x160] ss:$8 sps:$4 sm:$0xff]  }
 0x37f   : > { %v4102_v41 = vmax.f32 %v6148_v48, 0.0  ;;  %v4104_v19 = vmax.f32 %v6180_v2, 0.0  ;;  %v7031_v48 = vld [vmem:[#allocation10 + $0x140] ss:$8 sps:$4 sm:$0xff]   ;;  %6041 = vmatprep.subr.bf16.mxu1 %v7079_v38 }
 0x380   : > { %v4157_v54 = vpack.c.bf16 %v4101_v58, %v4097_v33  ;;  %v8285_v27 = vpack.c.bf16 %v4103_v53, %v4099_v36  ;;  %v7036_v58 = vld [vmem:[#allocation10 + $0x154] ss:$8 sps:$4 sm:$0xff]  }
 0x381   : > { %v4158_v21 = vpack.c.bf16 %v4102_v41, %v4098_v47  ;;  %v8287_v31 = vpack.c.bf16 %v4104_v19, %v4100_v9  ;;  %4697 = vmatpush1.bf16.msra.mxu0 %v7022_v11  ;;  %v3578_v0 = vpop.f32.mrb[72].mxu0  ;;  %v4030_v30 = vpop.f32.mrb[72].mxu1  ;;  %v7080_v41 = vld [vmem:[#allocation11 + $0x30] sm:$0xff]  }
 0x382   : > { %v6149_v61 = vadd.f32 %v3578_v0, %v8252_v23  ;;  %v6181_v34 = vadd.f32 %v4030_v30, %v8256_v1  ;;  %v3580_v51 = vpop.f32.mrb[73].mxu0  ;;  %v4032_v3 = vpop.f32.mrb[73].mxu1  ;;  %4698 = vmatprep.subr.bf16.mxu0 %v7027_v44  ;;  %v7034_v30 = vld [vmem:[#allocation10 + $0x150] ss:$8 sps:$4 sm:$0xff]   ;;  %6042 = vmatpush3.bf16.msra.mxu1 %v7080_v41 }
 0x383   : > { %v6150_v25 = vadd.f32 %v3580_v51, %v8259_v45  ;;  %v6182_v5 = vadd.f32 %v4032_v3, %v8263_v39  ;;  %v3582_v63 = vpop.f32.mrb[74].mxu0  ;;  %v4034_v28 = vpop.f32.mrb[74].mxu1  ;;  %4623 = vmatprep.mubr.bf16.mxu0 %v4158_v21  ;;  %v7039_v3 = vld [vmem:[#allocation10 + $0x164] ss:$8 sps:$4 sm:$0xff]  }
 0x384   : > { %v6151_v59 = vadd.f32 %v3582_v63, %v8252_v23  ;;  %v6183_v6 = vadd.f32 %v4034_v28, %v8256_v1  ;;  %v3584_v26 = vpop.f32.mrb[75].mxu0  ;;  %v4036_v52 = vpop.f32.mrb[75].mxu1  ;;  %4624 = vmatmul.mubr.bf16.gmra.mrb[100].mxu0 %v4157_v54  ;;  %v4105_v8 = vmax.f32 %v6149_v61, 0.0  ;;  %v4107_v32 = vmax.f32 %v6181_v34, 0.0 }
 0x385   : > { %v6152_v43 = vadd.f32 %v3584_v26, %v8259_v45  ;;  %v6184_v37 = vadd.f32 %v4036_v52, %v8263_v39  ;;  %4699 = vmatpush1.bf16.msra.mxu0 %v7025_v14  ;;  %v4106_v29 = vmax.f32 %v6150_v25, 0.0  ;;  %v4108_v40 = vmax.f32 %v6182_v5, 0.0 }
 0x386   : > { %v4109_v35 = vmax.f32 %v6151_v59, 0.0  ;;  %v4111_v17 = vmax.f32 %v6183_v6, 0.0  ;;  %4700 = vmatprep.subr.bf16.mxu0 %v7030_v42 }
 0x387   : > { %v4110_v12 = vmax.f32 %v6152_v43, 0.0  ;;  %v4112_v22 = vmax.f32 %v6184_v37, 0.0 }
 0x388   : > { %v4161_v50 = vpack.c.bf16 %v4109_v35, %v4105_v8  ;;  %v8297_v13 = vpack.c.bf16 %v4111_v17, %v4107_v32  ;;  %v7042_v32 = vld [vmem:[#allocation10 + $0x174] ss:$8 sps:$4 sm:$0xff]  }
 0x389   : > { %v4162_v24 = vpack.c.bf16 %v4110_v12, %v4106_v29  ;;  %v8299_v56 = vpack.c.bf16 %v4112_v22, %v4108_v40  ;;  %4701 = vmatpush1.bf16.msra.mxu0 %v7028_v7  ;;  %v3588_v49 = vpop.f32.mrb[76].mxu0  ;;  %v4040_v46 = vpop.f32.mrb[76].mxu1 }
 0x38a   : > { %v6153_v2 = vadd.f32 %v3588_v49, %v8252_v23  ;;  %v6185_v11 = vadd.f32 %v4040_v46, %v8256_v1  ;;  %v3590_v33 = vpop.f32.mrb[77].mxu0  ;;  %v4042_v36 = vpop.f32.mrb[77].mxu1  ;;  %4702 = vmatprep.subr.bf16.mxu0 %v7033_v15 }
 0x38b   : > { %v6154_v53 = vadd.f32 %v3590_v33, %v8259_v45  ;;  %v6186_v44 = vadd.f32 %v4042_v36, %v8263_v39  ;;  %v3592_v47 = vpop.f32.mrb[78].mxu0  ;;  %v4044_v9 = vpop.f32.mrb[78].mxu1  ;;  %4633 = vmatprep.mubr.bf16.mxu0 %v4162_v24  ;;  %v7040_v24 = vld [vmem:[#allocation10 + $0x170] ss:$8 sps:$4 sm:$0xff]  }
 0x38c   : > { %v6155_v19 = vadd.f32 %v3592_v47, %v8252_v23  ;;  %v6187_v10 = vadd.f32 %v4044_v9, %v8256_v1  ;;  %v3594_v54 = vpop.f32.mrb[79].mxu0  ;;  %v4046_v62 = vpop.f32.mrb[79].mxu1  ;;  %4634 = vmatmul.mubr.bf16.gmra.mrb[104].mxu0 %v4161_v50  ;;  %v4113_v14 = vmax.f32 %v6153_v2, 0.0  ;;  %v4115_v61 = vmax.f32 %v6185_v11, 0.0  ;;  %v7045_v11 = vld [vmem:[#allocation10 + $0x184] ss:$8 sps:$4 sm:$0xff]  }
 0x38d   : > { %v6156_v21 = vadd.f32 %v3594_v54, %v8259_v45  ;;  %v6188_v0 = vadd.f32 %v4046_v62, %v8263_v39  ;;  %4703 = vmatpush1.bf16.msra.mxu0 %v7031_v48  ;;  %v4114_v42 = vmax.f32 %v6154_v53, 0.0  ;;  %v4116_v25 = vmax.f32 %v6186_v44, 0.0  ;;  %v7043_v54 = vld [vmem:[#allocation10 + $0x180] ss:$8 sps:$4 sm:$0xff]  }
 0x38e   : > { %v4117_v34 = vmax.f32 %v6155_v19, 0.0  ;;  %v4119_v51 = vmax.f32 %v6187_v10, 0.0  ;;  %4704 = vmatprep.subr.bf16.mxu0 %v7036_v58 }
 0x38f   : > { %v4118_v5 = vmax.f32 %v6156_v21, 0.0  ;;  %v4120_v63 = vmax.f32 %v6188_v0, 0.0 }
 0x390   : > { %v4165_v28 = vpack.c.bf16 %v4117_v34, %v4113_v14  ;;  %v8309_v4 = vpack.c.bf16 %v4119_v51, %v4115_v61  ;;  %v7048_v14 = vld [vmem:[#allocation10 + $0x194] ss:$8 sps:$4 sm:$0xff]  }
 0x391   : > { %v4166_v59 = vpack.c.bf16 %v4118_v5, %v4114_v42  ;;  %v8311_v6 = vpack.c.bf16 %v4120_v63, %v4116_v25  ;;  %4705 = vmatpush1.bf16.msra.mxu0 %v7034_v30  ;;  %v3598_v26 = vpop.f32.mrb[80].mxu0  ;;  %v4050_v52 = vpop.f32.mrb[80].mxu1 }
 0x392   : > { %v6157_v43 = vadd.f32 %v3598_v26, %v8252_v23  ;;  %v6189_v37 = vadd.f32 %v4050_v52, %v8256_v1  ;;  %v3600_v7 = vpop.f32.mrb[81].mxu0  ;;  %v4052_v8 = vpop.f32.mrb[81].mxu1  ;;  %4706 = vmatprep.subr.bf16.mxu0 %v7039_v3  ;;  %v7046_v26 = vld [vmem:[#allocation10 + $0x190] ss:$8 sps:$4 sm:$0xff]  }
 0x393   : > { %v6158_v35 = vadd.f32 %v3600_v7, %v8259_v45  ;;  %v6190_v17 = vadd.f32 %v4052_v8, %v8263_v39  ;;  %v3602_v15 = vpop.f32.mrb[82].mxu0  ;;  %v4054_v29 = vpop.f32.mrb[82].mxu1  ;;  %4643 = vmatprep.mubr.bf16.mxu0 %v4166_v59  ;;  %v7051_v7 = vld [vmem:[#allocation10 + $0x1a4] ss:$8 sps:$4 sm:$0xff]  }
 0x394   : > { %v6159_v40 = vadd.f32 %v3602_v15, %v8252_v23  ;;  %v6191_v12 = vadd.f32 %v4054_v29, %v8256_v1  ;;  %v3604_v22 = vpop.f32.mrb[83].mxu0  ;;  %v4056_v60 = vpop.f32.mrb[83].mxu1  ;;  %4644 = vmatmul.mubr.bf16.gmra.mrb[108].mxu0 %v4165_v28  ;;  %v4121_v49 = vmax.f32 %v6157_v43, 0.0  ;;  %v4123_v46 = vmax.f32 %v6189_v37, 0.0 }
 0x395   : > { %v6160_v50 = vadd.f32 %v3604_v22, %v8259_v45  ;;  %v6192_v38 = vadd.f32 %v4056_v60, %v8263_v39  ;;  %4707 = vmatpush1.bf16.msra.mxu0 %v7037_v57  ;;  %v4122_v33 = vmax.f32 %v6158_v35, 0.0  ;;  %v4124_v36 = vmax.f32 %v6190_v17, 0.0 }
 0x396   : > { %v4125_v48 = vmax.f32 %v6159_v40, 0.0  ;;  %v4127_v2 = vmax.f32 %v6191_v12, 0.0  ;;  %4708 = vmatprep.subr.bf16.mxu0 %v7042_v32 }
 0x397   : > { %v4126_v58 = vmax.f32 %v6160_v50, 0.0  ;;  %v4128_v53 = vmax.f32 %v6192_v38, 0.0  ;;  %v7049_v50 = vld [vmem:[#allocation10 + $0x1a0] ss:$8 sps:$4 sm:$0xff]  }
 0x398   : > { %v4169_v44 = vpack.c.bf16 %v4125_v48, %v4121_v49  ;;  %v8321_v47 = vpack.c.bf16 %v4127_v2, %v4123_v46  ;;  %v7054_v48 = vld [vmem:[#allocation10 + $0x1b4] ss:$8 sps:$4 sm:$0xff]  }
 0x399   : > { %v4170_v9 = vpack.c.bf16 %v4126_v58, %v4122_v33  ;;  %v8323_v41 = vpack.c.bf16 %v4128_v53, %v4124_v36  ;;  %4709 = vmatpush1.bf16.msra.mxu0 %v7040_v24  ;;  %v3608_v19 = vpop.f32.mrb[84].mxu0  ;;  %v4060_v10 = vpop.f32.mrb[84].mxu1 }
 0x39a   : > { %v6161_v62 = vadd.f32 %v3608_v19, %v8252_v23  ;;  %v6193_v21 = vadd.f32 %v4060_v10, %v8256_v1  ;;  %v3610_v0 = vpop.f32.mrb[85].mxu0  ;;  %v4062_v30 = vpop.f32.mrb[85].mxu1  ;;  %4710 = vmatprep.subr.bf16.mxu0 %v7045_v11 }
 0x39b   : > { %v6162_v61 = vadd.f32 %v3610_v0, %v8259_v45  ;;  %v6194_v34 = vadd.f32 %v4062_v30, %v8263_v39  ;;  %v3612_v51 = vpop.f32.mrb[86].mxu0  ;;  %v4064_v3 = vpop.f32.mrb[86].mxu1  ;;  %4653 = vmatprep.mubr.bf16.mxu0 %v4170_v9 }
 0x39c   : > { %v6163_v42 = vadd.f32 %v3612_v51, %v8252_v23  ;;  %v6195_v25 = vadd.f32 %v4064_v3, %v8256_v1  ;;  %v3614_v5 = vpop.f32.mrb[87].mxu0  ;;  %v4066_v63 = vpop.f32.mrb[87].mxu1  ;;  %4654 = vmatmul.mubr.bf16.gmra.mrb[112].mxu0 %v4169_v44  ;;  %v4129_v52 = vmax.f32 %v6161_v62, 0.0  ;;  %v4131_v57 = vmax.f32 %v6193_v21, 0.0 }
 0x39d   : > { %v6164_v28 = vadd.f32 %v3614_v5, %v8259_v45  ;;  %v6196_v59 = vadd.f32 %v4066_v63, %v8263_v39  ;;  %4711 = vmatpush1.bf16.msra.mxu0 %v7043_v54  ;;  %v4130_v8 = vmax.f32 %v6162_v61, 0.0  ;;  %v4132_v32 = vmax.f32 %v6194_v34, 0.0  ;;  %v7052_v54 = vld [vmem:[#allocation10 + $0x1b0] ss:$8 sps:$4 sm:$0xff]  }
 0x39e   : > { %v4133_v43 = vmax.f32 %v6163_v42, 0.0  ;;  %v4135_v37 = vmax.f32 %v6195_v25, 0.0  ;;  %4712 = vmatprep.subr.bf16.mxu0 %v7048_v14  ;;  %v7057_v14 = vld [vmem:[#allocation10 + $0x1c4] ss:$8 sps:$4 sm:$0xff]  }
 0x39f   : > { %v4134_v35 = vmax.f32 %v6164_v28, 0.0  ;;  %v4136_v17 = vmax.f32 %v6196_v59, 0.0 }
 0x3a0   : > { %v4173_v15 = vpack.c.bf16 %v4133_v43, %v4129_v52  ;;  %v8333_v29 = vpack.c.bf16 %v4135_v37, %v4131_v57 }
 0x3a1   : > { %v4174_v40 = vpack.c.bf16 %v4134_v35, %v4130_v8  ;;  %v8335_v12 = vpack.c.bf16 %v4136_v17, %v4132_v32  ;;  %4713 = vmatpush1.bf16.msra.mxu0 %v7046_v26  ;;  %v3618_v22 = vpop.f32.mrb[88].mxu0  ;;  %v4070_v60 = vpop.f32.mrb[88].mxu1  ;;  %v7055_v26 = vld [vmem:[#allocation10 + $0x1c0] ss:$8 sps:$4 sm:$0xff]  }
 0x3a2   : > { %v6165_v38 = vadd.f32 %v3618_v22, %v8252_v23  ;;  %v6197_v24 = vadd.f32 %v4070_v60, %v8256_v1  ;;  %v3620_v49 = vpop.f32.mrb[89].mxu0  ;;  %v4072_v46 = vpop.f32.mrb[89].mxu1  ;;  %4714 = vmatprep.subr.bf16.mxu0 %v7051_v7  ;;  %v7060_v7 = vld [vmem:[#allocation10 + $0x1d4] ss:$8 sps:$4 sm:$0xff]  }
 0x3a3   : > { %v6166_v2 = vadd.f32 %v3620_v49, %v8259_v45  ;;  %v6198_v11 = vadd.f32 %v4072_v46, %v8263_v39  ;;  %v3622_v33 = vpop.f32.mrb[90].mxu0  ;;  %v4074_v36 = vpop.f32.mrb[90].mxu1  ;;  %4663 = vmatprep.mubr.bf16.mxu0 %v4174_v40 }
 0x3a4   : > { %v6167_v58 = vadd.f32 %v3622_v33, %v8252_v23  ;;  %v6199_v53 = vadd.f32 %v4074_v36, %v8256_v1  ;;  %v3624_v44 = vpop.f32.mrb[91].mxu0  ;;  %v4076_v9 = vpop.f32.mrb[91].mxu1  ;;  %4664 = vmatmul.mubr.bf16.gmra.mrb[116].mxu0 %v4173_v15  ;;  %v4137_v62 = vmax.f32 %v6165_v38, 0.0  ;;  %v4139_v21 = vmax.f32 %v6197_v24, 0.0  ;;  %v7058_v24 = vld [vmem:[#allocation10 + $0x1d0] ss:$8 sps:$4 sm:$0xff]  }
 0x3a5   : > { %v6168_v19 = vadd.f32 %v3624_v44, %v8259_v45  ;;  %v6200_v10 = vadd.f32 %v4076_v9, %v8263_v39  ;;  %4715 = vmatpush1.bf16.msra.mxu0 %v7049_v50  ;;  %v4138_v61 = vmax.f32 %v6166_v2, 0.0  ;;  %v4140_v34 = vmax.f32 %v6198_v11, 0.0  ;;  %v7063_v11 = vld [vmem:[#allocation10 + $0x1e4] ss:$8 sps:$4 sm:$0xff]  }
 0x3a6   : > { %v4141_v0 = vmax.f32 %v6167_v58, 0.0  ;;  %v4143_v30 = vmax.f32 %v6199_v53, 0.0  ;;  %4716 = vmatprep.subr.bf16.mxu0 %v7054_v48 }
 0x3a7   : > { %v4142_v51 = vmax.f32 %v6168_v19, 0.0  ;;  %v4144_v3 = vmax.f32 %v6200_v10, 0.0  ;;  %v7064_v19 = vld [vmem:[#allocation10 + $0x1f0] ss:$8 sps:$4 sm:$0xff]  }
 0x3a8   : > { %v4177_v42 = vpack.c.bf16 %v4141_v0, %v4137_v62  ;;  %v8345_v25 = vpack.c.bf16 %v4143_v30, %v4139_v21 }
 0x3a9   : > { %v4178_v5 = vpack.c.bf16 %v4142_v51, %v4138_v61  ;;  %v4180_v63 = vpack.c.bf16 %v4144_v3, %v4140_v34  ;;  %4717 = vmatpush1.bf16.msra.mxu0 %v7052_v54  ;;  %v3628_v28 = vpop.f32.mrb[92].mxu0  ;;  %v4080_v59 = vpop.f32.mrb[92].mxu1  ;;  %v7084_v51 = vld [vmem:[#allocation13 + $0x8] sm:$0xff]  }
 0x3aa   : > { %v6169_v52 = vadd.f32 %v3628_v28, %v8252_v23  ;;  %v6201_v57 = vadd.f32 %v4080_v59, %v8256_v1  ;;  %v3630_v43 = vpop.f32.mrb[93].mxu0  ;;  %v4082_v37 = vpop.f32.mrb[93].mxu1  ;;  %4718 = vmatprep.subr.bf16.mxu0 %v7057_v14 }
 0x3ab   : > { %v6170_v8 = vadd.f32 %v3630_v43, %v8259_v45  ;;  %v6202_v32 = vadd.f32 %v4082_v37, %v8263_v39  ;;  %v3632_v35 = vpop.f32.mrb[94].mxu0  ;;  %v4084_v17 = vpop.f32.mrb[94].mxu1  ;;  %4673 = vmatprep.mubr.bf16.mxu0 %v4178_v5 }
 0x3ac   : > { %v6171_v15 = vadd.f32 %v3632_v35, %v8252_v23  ;;  %v6203_v40 = vadd.f32 %v4084_v17, %v8256_v1  ;;  %v3634_v22 = vpop.f32.mrb[95].mxu0  ;;  %v4086_v60 = vpop.f32.mrb[95].mxu1  ;;  %4674 = vmatmul.mubr.bf16.gmra.mrb[120].mxu0 %v4177_v42  ;;  %v4145_v49 = vmax.f32 %v6169_v52, 0.0  ;;  %v4147_v46 = vmax.f32 %v6201_v57, 0.0 }
 0x3ad   : > { %v6172_v50 = vadd.f32 %v3634_v22, %v8259_v45  ;;  %v6204_v38 = vadd.f32 %v4086_v60, %v8263_v39  ;;  %4719 = vmatpush1.bf16.msra.mxu0 %v7055_v26  ;;  %v4146_v33 = vmax.f32 %v6170_v8, 0.0  ;;  %v4148_v36 = vmax.f32 %v6202_v32, 0.0  ;;  %v7061_v45 = vld [vmem:[#allocation10 + $0x1e0] ss:$8 sps:$4 sm:$0xff]   ;;  %v7066_v39 = vld [vmem:[#allocation10 + $0x1f4] ss:$8 sps:$4 sm:$0xff]  }
 0x3ae   : > { %v4149_v48 = vmax.f32 %v6171_v15, 0.0  ;;  %v4151_v2 = vmax.f32 %v6203_v40, 0.0  ;;  %4720 = vmatprep.subr.bf16.mxu0 %v7060_v7  ;;  %v7085_v26 = vld [vmem:[#allocation13 + $0x10] sm:$0xff]  }
 0x3af   : > { %v4150_v23 = vmax.f32 %v6172_v50, 0.0  ;;  %v4152_v58 = vmax.f32 %v6204_v38, 0.0 }
 0x3b0   : > { %v4181_v1 = vpack.c.bf16 %v4149_v48, %v4145_v49  ;;  %v4183_v53 = vpack.c.bf16 %v4151_v2, %v4147_v46 }
 0x3b1   : > { %v4182_v44 = vpack.c.bf16 %v4150_v23, %v4146_v33  ;;  %v4184_v9 = vpack.c.bf16 %v4152_v58, %v4148_v36  ;;  %4721 = vmatpush1.bf16.msra.mxu0 %v7058_v24 }
 0x3b2   : > { %4722 = vmatprep.subr.bf16.mxu0 %v7063_v11 }
 0x3b3   : > { %4683 = vmatprep.mubr.bf16.mxu0 %v4182_v44 }
 0x3b4   : > { %4684 = vmatmul.mubr.bf16.gmra.mrb[124].mxu0 %v4181_v1 }
 0x3b5   : > { %4723 = vmatpush1.bf16.msra.mxu0 %v7061_v45  ;;  %4726 = vmatprep.mubr.bf16.mxu0 %v8275_v16  ;;  %v7082_v16 = vld [vmem:[#allocation11 + $0x38] sm:$0xff]  }
 0x3b6   : > { %4724 = vmatprep.subr.bf16.mxu0 %v7066_v39 }
 0x3b9   : > { %4725 = vmatpush1.bf16.msra.mxu0 %v7064_v19 }
 0x3bc   : > { %4727 = vmatmul.mubr.bf16.vlgmr.msra.gmra.mrb[96].mxu0 %v8273_v55  ;;  %v7081_v55 = vld [vmem:[#allocation11 + $0x78] sm:$0xff]  }
 0x3bd   : > { %4736 = vmatprep.mubr.bf16.mxu0 %v8287_v31  ;;  %6043 = vmatprep.subr.bf16.mxu1 %v7081_v55  ;;  %v4249_v31 = vld [vmem:[%s8613_s6] sm:$0x3] }
 0x3be   : > { %6044 = vmatpush3.bf16.msra.mxu1 %v7082_v16 }
 0x3c4   : > { %4737 = vmatmul.mubr.bf16.gmra.mrb[100].mxu0 %v8285_v27  ;;  %v7083_v27 = vld [vmem:[#allocation13] sm:$0xff]  }
 0x3c5   : > { %4746 = vmatprep.mubr.bf16.mxu0 %v8299_v56  ;;  %6109 = vmatprep.subr.bf16.mxu1 %v7083_v27  ;;  %v8375_v56 = vrot.slane %v4249_v31, %v7890_v20 }
 0x3cc   : > { %4747 = vmatmul.mubr.bf16.gmra.mrb[104].mxu0 %v8297_v13  ;;  %v8372_v13 = vrot.slane %v4249_v31, %v7885_v18 }
 0x3cd   : > { %4756 = vmatprep.mubr.bf16.mxu0 %v8311_v6 }
 0x3d4   : > { %4757 = vmatmul.mubr.bf16.gmra.mrb[108].mxu0 %v8309_v4 }
 0x3d5   : > { %4766 = vmatprep.mubr.bf16.mxu0 %v8323_v41 }
 0x3dc   : > { %4767 = vmatmul.mubr.bf16.gmra.mrb[112].mxu0 %v8321_v47 }
 0x3dd   : > { %4776 = vmatprep.mubr.bf16.mxu0 %v8335_v12 }
 0x3e4   : > { %4777 = vmatmul.mubr.bf16.gmra.mrb[116].mxu0 %v8333_v29 }
 0x3e5   : > { %4786 = vmatprep.mubr.bf16.mxu0 %v4180_v63 }
 0x3ec   : > { %4787 = vmatmul.mubr.bf16.gmra.mrb[120].mxu0 %v8345_v25 }
 0x3ed   : > { %4796 = vmatprep.mubr.bf16.mxu0 %v4184_v9 }
 0x3f4   : > { %4797 = vmatmul.mubr.bf16.gmra.mrb[124].mxu0 %v4183_v53 }
 0x48f   : > { %v4728_v4 = vpop.f32.mrb[96].mxu0 }
 0x490   : > { %v6205_v6 = vadd.f32 %v4728_v4, %v8372_v13  ;;  %v4730_v47 = vpop.f32.mrb[97].mxu0 }
 0x491   : > { %v6206_v41 = vadd.f32 %v4730_v47, %v8375_v56  ;;  %v4732_v29 = vpop.f32.mrb[98].mxu0 }
 0x492   : > { %v6207_v12 = vadd.f32 %v4732_v29, %v8372_v13  ;;  %v4734_v10 = vpop.f32.mrb[99].mxu0  ;;  %v4807_v62 = vmax.f32 %v6205_v6, 0.0 }
 0x493   : > { %v6208_v54 = vadd.f32 %v4734_v10, %v8375_v56  ;;  %v4808_v0 = vmax.f32 %v6206_v41, 0.0 }
 0x494   : > { %v4809_v21 = vmax.f32 %v6207_v12, 0.0 }
 0x495   : > { %v4810_v18 = vmax.f32 %v6208_v54, 0.0 }
 0x496   : > { %v4839_v30 = vpack.c.bf16 %v4809_v21, %v4807_v62 }
 0x497   : > { %v4840_v14 = vpack.c.bf16 %v4810_v18, %v4808_v0  ;;  %v4738_v20 = vpop.f32.mrb[100].mxu0 }
 0x498   : > { %v6209_v61 = vadd.f32 %v4738_v20, %v8372_v13  ;;  %v4740_v34 = vpop.f32.mrb[101].mxu0 }
 0x499   : > { %v6210_v3 = vadd.f32 %v4740_v34, %v8375_v56  ;;  %v4742_v42 = vpop.f32.mrb[102].mxu0  ;;  %5022 = vmatprep.mubr.bf16.mxu1 %v4840_v14 }
 0x49a   : > { %v6211_v25 = vadd.f32 %v4742_v42, %v8372_v13  ;;  %v4744_v5 = vpop.f32.mrb[103].mxu0  ;;  %5023 = vmatmul.mubr.bf16.vlgmr.msra.gmra.mrb[96].mxu1 %v4839_v30  ;;  %v4811_v28 = vmax.f32 %v6209_v61, 0.0 }
 0x49b   : > { %v6212_v63 = vadd.f32 %v4744_v5, %v8375_v56  ;;  %6110 = vmatpush3.bf16.msra.mxu1 %v7083_v27  ;;  %v4812_v52 = vmax.f32 %v6210_v3, 0.0 }
 0x49c   : > { %v4813_v59 = vmax.f32 %v6211_v25, 0.0  ;;  %6111 = vmatprep.subr.bf16.mxu1 %v7084_v51 }
 0x49d   : > { %v4814_v57 = vmax.f32 %v6212_v63, 0.0 }
 0x49e   : > { %v4841_v43 = vpack.c.bf16 %v4813_v59, %v4811_v28 }
 0x49f   : > { %v4842_v37 = vpack.c.bf16 %v4814_v57, %v4812_v52  ;;  %v4748_v7 = vpop.f32.mrb[104].mxu0  ;;  %6112 = vmatpush3.bf16.msra.mxu1 %v7084_v51 }
 0x4a0   : > { %v6213_v8 = vadd.f32 %v4748_v7, %v8372_v13  ;;  %v4750_v32 = vpop.f32.mrb[105].mxu0  ;;  %6113 = vmatprep.subr.bf16.mxu1 %v7085_v26 }
 0x4a1   : > { %v6214_v35 = vadd.f32 %v4750_v32, %v8375_v56  ;;  %v4752_v17 = vpop.f32.mrb[106].mxu0  ;;  %5030 = vmatprep.mubr.bf16.mxu1 %v4842_v37 }
 0x4a2   : > { %v6215_v15 = vadd.f32 %v4752_v17, %v8372_v13  ;;  %v4754_v40 = vpop.f32.mrb[107].mxu0  ;;  %5031 = vmatmul.mubr.bf16.gmra.mrb[100].mxu1 %v4841_v43  ;;  %v4815_v60 = vmax.f32 %v6213_v8, 0.0 }
 0x4a3   : > { %v6216_v22 = vadd.f32 %v4754_v40, %v8375_v56  ;;  %6114 = vmatpush3.bf16.msra.mxu1 %v7085_v26  ;;  %v4816_v38 = vmax.f32 %v6214_v35, 0.0 }
 0x4a4   : > { %v4817_v50 = vmax.f32 %v6215_v15, 0.0 }
 0x4a5   : > { %v4818_v24 = vmax.f32 %v6216_v22, 0.0 }
 0x4a6   : > { %v4843_v49 = vpack.c.bf16 %v4817_v50, %v4815_v60 }
 0x4a7   : > { %v4844_v46 = vpack.c.bf16 %v4818_v24, %v4816_v38  ;;  %v4758_v48 = vpop.f32.mrb[108].mxu0 }
 0x4a8   : > { %v6217_v2 = vadd.f32 %v4758_v48, %v8372_v13  ;;  %v4760_v11 = vpop.f32.mrb[109].mxu0 }
 0x4a9   : > { %v6218_v33 = vadd.f32 %v4760_v11, %v8375_v56  ;;  %v4762_v36 = vpop.f32.mrb[110].mxu0  ;;  %5038 = vmatprep.mubr.bf16.mxu1 %v4844_v46 }
 0x4aa   : > { %v6219_v23 = vadd.f32 %v4762_v36, %v8372_v13  ;;  %v4764_v58 = vpop.f32.mrb[111].mxu0  ;;  %5039 = vmatmul.mubr.bf16.gmra.mrb[104].mxu1 %v4843_v49  ;;  %v4819_v53 = vmax.f32 %v6217_v2, 0.0 }
 0x4ab   : > { %v6220_v1 = vadd.f32 %v4764_v58, %v8375_v56  ;;  %v4820_v9 = vmax.f32 %v6218_v33, 0.0 }
 0x4ac   : > { %v4821_v44 = vmax.f32 %v6219_v23, 0.0 }
 0x4ad   : > { %v4822_v45 = vmax.f32 %v6220_v1, 0.0 }
 0x4ae   : > { %v4845_v39 = vpack.c.bf16 %v4821_v44, %v4819_v53  ;;  %v7086_v53 = vld [vmem:[#allocation13 + $0x18] sm:$0xff]   ;;  %v7087_v44 = vld [vmem:[#allocation13 + $0x20] sm:$0xff]  }
 0x4af   : > { %v4846_v19 = vpack.c.bf16 %v4822_v45, %v4820_v9  ;;  %v4768_v55 = vpop.f32.mrb[112].mxu0  ;;  %6115 = vmatprep.subr.bf16.mxu1 %v7086_v53  ;;  %v7088_v9 = vld [vmem:[#allocation13 + $0x28] sm:$0xff]  }
 0x4b0   : > { %v6221_v16 = vadd.f32 %v4768_v55, %v8372_v13  ;;  %v4770_v27 = vpop.f32.mrb[113].mxu0  ;;  %6116 = vmatpush3.bf16.msra.mxu1 %v7086_v53 }
 0x4b1   : > { %v6222_v31 = vadd.f32 %v4770_v27, %v8375_v56  ;;  %v4772_v4 = vpop.f32.mrb[114].mxu0  ;;  %5046 = vmatprep.mubr.bf16.mxu1 %v4846_v19  ;;  %6117 = vmatprep.subr.bf16.mxu1 %v7087_v44 }
 0x4b2   : > { %v6223_v6 = vadd.f32 %v4772_v4, %v8372_v13  ;;  %v4774_v47 = vpop.f32.mrb[115].mxu0  ;;  %5047 = vmatmul.mubr.bf16.gmra.mrb[108].mxu1 %v4845_v39  ;;  %v4823_v29 = vmax.f32 %v6221_v16, 0.0  ;;  %v8412_v39 = vld [vmem:[%s8646_s29] ss:$0 sm:$0xff]  ;;  %s7357_s29 = sshll.u32 %s7449_s27, 4  ;;  %s7358_s29 = int_to_ptr.vmem [resolvable:$false] %s7357_s29 }
 0x4b3   : > { %v6224_v41 = vadd.f32 %v4774_v47, %v8375_v56  ;;  %v4824_v10 = vmax.f32 %v6222_v31, 0.0  ;;  %s7359_s8 = scalar_lea.vmem %s7358_s29, 4096  ;;  %p7360_p11 = scmp.lt.s32.totalorder %s8560_s30, %s7358_s29 }
 0x4b4   : > { %v4825_v12 = vmax.f32 %v6223_v6, 0.0  ;;  %6118 = vmatpush3.bf16.msra.mxu1 %v7087_v44  ;;  %p7361_p12 = scmp.lt.s32.totalorder %s7359_s8, %s7353_s12 }
 0x4b5   : > { %v4826_v54 = vmax.f32 %v6224_v41, 0.0  ;;  %6119 = vmatprep.subr.bf16.mxu1 %v7088_v9 }
 0x4b6   : > { %v4847_v62 = vpack.c.bf16 %v4825_v12, %v4823_v29  ;;  %p7362_p13 = por %p7361_p12, %p7360_p11 }
 0x4b7   : > { %v4848_v21 = vpack.c.bf16 %v4826_v54, %v4824_v10  ;;  %v4778_v0 = vpop.f32.mrb[116].mxu0 }
 0x4b8   : > { %v6225_v18 = vadd.f32 %v4778_v0, %v8372_v13  ;;  %v4780_v30 = vpop.f32.mrb[117].mxu0  ;;  %6120 = vmatpush3.bf16.msra.mxu1 %v7088_v9  ;;  %p7363_p8 = pnand %p7362_p13, %p7356_p1 }
 0x4b9   : > { %v6226_v14 = vadd.f32 %v4780_v30, %v8375_v56  ;;  %v4782_v20 = vpop.f32.mrb[118].mxu0  ;;  %5054 = vmatprep.mubr.bf16.mxu1 %v4848_v21 }
 0x4ba   : > { %v6227_v61 = vadd.f32 %v4782_v20, %v8372_v13  ;;  %v4784_v34 = vpop.f32.mrb[119].mxu0  ;;  %5055 = vmatmul.mubr.bf16.gmra.mrb[112].mxu1 %v4847_v62  ;;  %v4827_v3 = vmax.f32 %v6225_v18, 0.0 }
 0x4bb   : > { %v6228_v51 = vadd.f32 %v4784_v34, %v8375_v56  ;;  %v4828_v25 = vmax.f32 %v6226_v14, 0.0 }
 0x4bc   : > { %v4829_v42 = vmax.f32 %v6227_v61, 0.0 }
 0x4bd   : > { %v4830_v5 = vmax.f32 %v6228_v51, 0.0 }
 0x4be   : > { %v4849_v63 = vpack.c.bf16 %v4829_v42, %v4827_v3 }
 0x4bf   : > { %v4850_v28 = vpack.c.bf16 %v4830_v5, %v4828_v25  ;;  %v4788_v59 = vpop.f32.mrb[120].mxu0 }
 0x4c0   : > { %v6229_v26 = vadd.f32 %v4788_v59, %v8372_v13  ;;  %v4790_v52 = vpop.f32.mrb[121].mxu0 }
 0x4c1   : > { %v6230_v57 = vadd.f32 %v4790_v52, %v8375_v56  ;;  %v4792_v43 = vpop.f32.mrb[122].mxu0  ;;  %5062 = vmatprep.mubr.bf16.mxu1 %v4850_v28 }
 0x4c2   : > { %v6231_v37 = vadd.f32 %v4792_v43, %v8372_v13  ;;  %v4794_v7 = vpop.f32.mrb[123].mxu0  ;;  %5063 = vmatmul.mubr.bf16.gmra.mrb[116].mxu1 %v4849_v63  ;;  %v4831_v32 = vmax.f32 %v6229_v26, 0.0 }
 0x4c3   : > { %v6232_v8 = vadd.f32 %v4794_v7, %v8375_v56  ;;  %v4832_v17 = vmax.f32 %v6230_v57, 0.0 }
 0x4c4   : > { %v4833_v35 = vmax.f32 %v6231_v37, 0.0 }
 0x4c5   : > { %v4834_v15 = vmax.f32 %v6232_v8, 0.0 }
 0x4c6   : > { %v4851_v40 = vpack.c.bf16 %v4833_v35, %v4831_v32 }
 0x4c7   : > { %v4852_v22 = vpack.c.bf16 %v4834_v15, %v4832_v17  ;;  %v4798_v60 = vpop.f32.mrb[124].mxu0 }
 0x4c8   : > { %v6233_v50 = vadd.f32 %v4798_v60, %v8372_v13  ;;  %v4800_v38 = vpop.f32.mrb[125].mxu0 }
 0x4c9   : > { %v6234_v24 = vadd.f32 %v4800_v38, %v8375_v56  ;;  %v4802_v49 = vpop.f32.mrb[126].mxu0  ;;  %5070 = vmatprep.mubr.bf16.mxu1 %v4852_v22 }
 0x4ca   : > { %v6235_v46 = vadd.f32 %v4802_v49, %v8372_v13  ;;  %v4804_v48 = vpop.f32.mrb[127].mxu0  ;;  %5071 = vmatmul.mubr.bf16.gmra.mrb[120].mxu1 %v4851_v40  ;;  %v4835_v11 = vmax.f32 %v6233_v50, 0.0  ;;  %v7089_v13 = vld [vmem:[#allocation13 + $0x30] sm:$0xff]  }
 0x4cb   : > { %v6236_v2 = vadd.f32 %v4804_v48, %v8375_v56  ;;  %v4836_v36 = vmax.f32 %v6234_v24, 0.0  ;;  %6121 = vmatprep.subr.bf16.mxu1 %v7089_v13  ;;  %v7090_v56 = vld [vmem:[#allocation13 + $0x38] sm:$0xff]  }
 0x4cc   : > { %v4837_v33 = vmax.f32 %v6235_v46, 0.0  ;;  %6122 = vmatpush3.bf16.msra.mxu1 %v7089_v13 }
 0x4cd   : > { %v4838_v23 = vmax.f32 %v6236_v2, 0.0  ;;  %6123 = vmatprep.subr.bf16.mxu1 %v7090_v56 }
 0x4ce   : > { %v4853_v58 = vpack.c.bf16 %v4837_v33, %v4835_v11 }
 0x4cf   : > { %v4854_v1 = vpack.c.bf16 %v4838_v23, %v4836_v36 }
 0x4d0   : > { %6124 = vmatpush3.bf16.msra.mxu1 %v7090_v56 }
 0x4d1   : > { %5078 = vmatprep.mubr.bf16.mxu1 %v4854_v1 }
 0x4d2   : > { %5079 = vmatmul.mubr.bf16.gmra.mrb[124].mxu1 %v4853_v58 }
 0x56d   : > { %v6045_v45 = vpop.f32.mrb[96].mxu1 }
 0x56e   : > { %v6046_v19 = vpop.f32.mrb[97].mxu1 }
 0x56f   : > { %v6047_v55 = vadd.f32 %v6046_v19, %v6045_v45  ;;  %v6048_v16 = vpop.f32.mrb[98].mxu1 }
 0x570   : > { %v6049_v27 = vpop.f32.mrb[99].mxu1 }
 0x571   : > { %v5025_v31 = vadd.f32 %v6047_v55, %v8412_v39  ;;  %v6050_v4 = vadd.f32 %v6049_v27, %v6048_v16 }
 0x573   : > { %v5028_v6 = vadd.f32 %v6050_v4, %v8412_v39  ;;  %v5087_v47 = vmax.f32 %v5025_v31, 0.0 }
 0x575   : > { %v5088_v41 = vmax.f32 %v5028_v6, 0.0  ;;  %v6051_v29 = vpop.f32.mrb[100].mxu1 }
 0x576   : > { %v6052_v12 = vpop.f32.mrb[101].mxu1 }
 0x577   : > { %v6053_v10 = vadd.f32 %v6052_v12, %v6051_v29  ;;  %v6054_v54 = vpop.f32.mrb[102].mxu1  ;;  %v5103_v62 = vpack.c.bf16 %v5088_v41, %v5087_v47 }
 0x578   : > { %v6055_v21 = vpop.f32.mrb[103].mxu1 }
 0x579   : > { %v5033_v0 = vadd.f32 %v6053_v10, %v8412_v39  ;;  %v6056_v18 = vadd.f32 %v6055_v21, %v6054_v54  ;;  %6125 = vmatprep.mubr.bf16.mxu1 %v5103_v62 }
 0x57b   : > { %v5036_v30 = vadd.f32 %v6056_v18, %v8412_v39  ;;  %v5089_v14 = vmax.f32 %v5033_v0, 0.0 }
 0x57d   : > { %v5090_v20 = vmax.f32 %v5036_v30, 0.0  ;;  %v6057_v61 = vpop.f32.mrb[104].mxu1 }
 0x57e   : > { %v6058_v34 = vpop.f32.mrb[105].mxu1 }
 0x57f   : > { %v5104_v51 = vpack.c.bf16 %v5090_v20, %v5089_v14  ;;  %v6059_v3 = vadd.f32 %v6058_v34, %v6057_v61  ;;  %v6060_v42 = vpop.f32.mrb[106].mxu1 }
 0x580   : > { %v6061_v25 = vpop.f32.mrb[107].mxu1 }
 0x581   : > { %v5041_v5 = vadd.f32 %v6059_v3, %v8412_v39  ;;  %v6062_v63 = vadd.f32 %v6061_v25, %v6060_v42  ;;  %6126 = vmatmul.mubr.bf16.vlgmr.msra.gmra.mrb[128].mxu1 %v5104_v51  ;;  %v6013_v42 = vld [vmem:[%s8647_s25] ss:$0 sm:$0xff] }
 0x583   : > { %v5044_v28 = vadd.f32 %v6062_v63, %v8412_v39  ;;  %v5091_v59 = vmax.f32 %v5041_v5, 0.0 }
 0x585   : > { %v5092_v26 = vmax.f32 %v5044_v28, 0.0  ;;  %v6063_v52 = vpop.f32.mrb[108].mxu1 }
 0x586   : > { %v6064_v57 = vpop.f32.mrb[109].mxu1 }
 0x587   : > { %v6065_v43 = vadd.f32 %v6064_v57, %v6063_v52  ;;  %v6066_v37 = vpop.f32.mrb[110].mxu1  ;;  %v5105_v7 = vpack.c.bf16 %v5092_v26, %v5091_v59 }
 0x588   : > { %v6067_v8 = vpop.f32.mrb[111].mxu1 }
 0x589   : > { %v5049_v32 = vadd.f32 %v6065_v43, %v8412_v39  ;;  %v6068_v35 = vadd.f32 %v6067_v8, %v6066_v37  ;;  %6129 = vmatprep.mubr.bf16.mxu1 %v5105_v7 }
 0x58b   : > { %v5052_v17 = vadd.f32 %v6068_v35, %v8412_v39  ;;  %v5093_v15 = vmax.f32 %v5049_v32, 0.0 }
 0x58d   : > { %v5094_v40 = vmax.f32 %v5052_v17, 0.0  ;;  %v6069_v22 = vpop.f32.mrb[112].mxu1 }
 0x58e   : > { %v6070_v60 = vpop.f32.mrb[113].mxu1 }
 0x58f   : > { %v6071_v50 = vadd.f32 %v6070_v60, %v6069_v22  ;;  %v6072_v38 = vpop.f32.mrb[114].mxu1  ;;  %v5106_v24 = vpack.c.bf16 %v5094_v40, %v5093_v15 }
 0x590   : > { %v6073_v49 = vpop.f32.mrb[115].mxu1 }
 0x591   : > { %v5057_v46 = vadd.f32 %v6071_v50, %v8412_v39  ;;  %v6074_v48 = vadd.f32 %v6073_v49, %v6072_v38  ;;  %6130 = vmatmul.mubr.bf16.gmra.mrb[132].mxu1 %v5106_v24 }
 0x593   : > { %v5060_v2 = vadd.f32 %v6074_v48, %v8412_v39  ;;  %v5095_v11 = vmax.f32 %v5057_v46, 0.0 }
 0x595   : > { %v5096_v33 = vmax.f32 %v5060_v2, 0.0  ;;  %v6075_v36 = vpop.f32.mrb[116].mxu1 }
 0x596   : > { %v6076_v23 = vpop.f32.mrb[117].mxu1 }
 0x597   : > { %v6077_v58 = vadd.f32 %v6076_v23, %v6075_v36  ;;  %v6078_v1 = vpop.f32.mrb[118].mxu1  ;;  %v5107_v53 = vpack.c.bf16 %v5096_v33, %v5095_v11 }
 0x598   : > { %v6079_v44 = vpop.f32.mrb[119].mxu1 }
 0x599   : > { %v5065_v9 = vadd.f32 %v6077_v58, %v8412_v39  ;;  %v6080_v13 = vadd.f32 %v6079_v44, %v6078_v1  ;;  %6133 = vmatprep.mubr.bf16.mxu1 %v5107_v53 }
 0x59b   : > { %v5068_v56 = vadd.f32 %v6080_v13, %v8412_v39  ;;  %v5097_v45 = vmax.f32 %v5065_v9, 0.0 }
 0x59d   : > { %v5098_v19 = vmax.f32 %v5068_v56, 0.0  ;;  %v6081_v55 = vpop.f32.mrb[120].mxu1 }
 0x59e   : > { %v6082_v16 = vpop.f32.mrb[121].mxu1 }
 0x59f   : > { %v6083_v27 = vadd.f32 %v6082_v16, %v6081_v55  ;;  %v6084_v31 = vpop.f32.mrb[122].mxu1  ;;  %v5108_v4 = vpack.c.bf16 %v5098_v19, %v5097_v45 }
 0x5a0   : > { %v6085_v6 = vpop.f32.mrb[123].mxu1 }
 0x5a1   : > { %v5073_v47 = vadd.f32 %v6083_v27, %v8412_v39  ;;  %v6086_v41 = vadd.f32 %v6085_v6, %v6084_v31  ;;  %6134 = vmatmul.mubr.bf16.gmra.mrb[136].mxu1 %v5108_v4 }
 0x5a3   : > { %v5076_v29 = vadd.f32 %v6086_v41, %v8412_v39  ;;  %v5099_v12 = vmax.f32 %v5073_v47, 0.0 }
 0x5a5   : > { %v5100_v10 = vmax.f32 %v5076_v29, 0.0  ;;  %v6087_v54 = vpop.f32.mrb[124].mxu1 }
 0x5a6   : > { %v6088_v62 = vpop.f32.mrb[125].mxu1 }
 0x5a7   : > { %v6089_v21 = vadd.f32 %v6088_v62, %v6087_v54  ;;  %v6090_v0 = vpop.f32.mrb[126].mxu1  ;;  %v5109_v18 = vpack.c.bf16 %v5100_v10, %v5099_v12 }
 0x5a8   : > { %v6091_v30 = vpop.f32.mrb[127].mxu1 }
 0x5a9   : > { %v5081_v14 = vadd.f32 %v6089_v21, %v8412_v39  ;;  %v6092_v20 = vadd.f32 %v6091_v30, %v6090_v0  ;;  %6137 = vmatprep.mubr.bf16.mxu1 %v5109_v18 }
 0x5ab   : > { %v5084_v61 = vadd.f32 %v6092_v20, %v8412_v39  ;;  %v5101_v34 = vmax.f32 %v5081_v14, 0.0 }
 0x5ad   : > { %v5102_v51 = vmax.f32 %v5084_v61, 0.0 }
 0x5af   : > { %v5110_v3 = vpack.c.bf16 %v5102_v51, %v5101_v34 }
 0x5b1   : > { %6138 = vmatmul.mubr.bf16.gmra.mrb[140].mxu1 %v5110_v3 }
 0x654   : > { %v6127_v25 = vpop.f32.mrb[128].mxu1 }
 0x655   : > { %v5225_v5 = vadd.f32 %v6127_v25, %v6013_v42  ;;  %v5216_v63 = vpop.f32.mrb[129].mxu1 }
 0x656   : > { %v5217_v28 = vadd.f32 %v6013_v42, %v5216_v63  ;;  %v6128_v59 = vpop.f32.mrb[130].mxu1 }
 0x657   : > { %5283 = vmax.xlane.f32.xlu1 %v5225_v5  ;;  %v5219_v26 = vpop.f32.mrb[131].mxu1  ;;  %v5228_v52 = vadd.f32 %v6128_v59, %v6013_v42 }
 0x658   : > { %5279 = vmax.xlane.f32.xlu0 %v5217_v28  ;;  %v5220_v57 = vadd.f32 %v6013_v42, %v5219_v26 }
 0x65b   : > { %5285 = vmax.xlane.f32.xlu1 %v5228_v52 }
 0x65c   : > { %5281 = vmax.xlane.f32.xlu0 %v5220_v57 }
 0x664   : > { %v6131_v39 = vpop.f32.mrb[132].mxu1 }
 0x665   : > { %v5241_v43 = vadd.f32 %v6131_v39, %v6013_v42  ;;  %v5232_v37 = vpop.f32.mrb[133].mxu1 }
 0x666   : > { %v6132_v7 = vpop.f32.mrb[134].mxu1  ;;  %v8433_v35 = vadd.f32 %v6013_v42, %v5232_v37 }
 0x667   : > { %v5244_v8 = vadd.f32 %v6132_v7, %v6013_v42  ;;  %v5235_v32 = vpop.f32.mrb[135].mxu1  ;;  %5291 = vmax.xlane.f32.xlu0 %v5241_v43 }
 0x668   : > { %v8435_v17 = vadd.f32 %v6013_v42, %v5235_v32 }
 0x669   : > { %5293 = vmax.xlane.f32.xlu1 %v5244_v8 }
 0x66b   : > { %5287 = vmax.xlane.f32.xlu0 %v8433_v35 }
 0x66d   : > { %5289 = vmax.xlane.f32.xlu1 %v8435_v17 }
 0x674   : > { %v6135_v15 = vpop.f32.mrb[136].mxu1 }
 0x675   : > { %v8439_v40 = vadd.f32 %v6135_v15, %v6013_v42  ;;  %v5248_v22 = vpop.f32.mrb[137].mxu1 }
 0x676   : > { %v6136_v60 = vpop.f32.mrb[138].mxu1  ;;  %v8444_v24 = vadd.f32 %v6013_v42, %v5248_v22 }
 0x677   : > { %v8441_v50 = vadd.f32 %v6136_v60, %v6013_v42  ;;  %v5251_v38 = vpop.f32.mrb[139].mxu1  ;;  %5299 = vmax.xlane.f32.xlu0 %v8439_v40 }
 0x678   : > { %v8447_v49 = vadd.f32 %v6013_v42, %v5251_v38 }
 0x679   : > { %5301 = vmax.xlane.f32.xlu1 %v8441_v50 }
 0x67b   : > { %5295 = vmax.xlane.f32.xlu0 %v8444_v24 }
 0x67d   : > { %5297 = vmax.xlane.f32.xlu1 %v8447_v49 }
 0x684   : > { %v6139_v46 = vpop.f32.mrb[140].mxu1 }
 0x685   : > { %v5264_v48 = vpop.f32.mrb[141].mxu1  ;;  %v8456_v23 = vadd.f32 %v6139_v46, %v6013_v42 }
 0x686   : > { %v8451_v2 = vadd.f32 %v6013_v42, %v5264_v48  ;;  %v6140_v11 = vpop.f32.mrb[142].mxu1 }
 0x687   : > { %v5267_v33 = vpop.f32.mrb[143].mxu1  ;;  %v8459_v58 = vadd.f32 %v6140_v11, %v6013_v42 }
 0x688   : > { %v8453_v36 = vadd.f32 %v6013_v42, %v5267_v33  ;;  %5303 = vmax.xlane.f32.xlu0 %v8451_v2 }
 0x68a   : > { %5305 = vmax.xlane.f32.xlu1 %v8453_v36 }
 0x68c   : > { %5307 = vmax.xlane.f32.xlu0 %v8456_v23 }
 0x68e   : > { %5309 = vmax.xlane.f32.xlu1 %v8459_v58 }
 0x6e4   : > { %v5284_v1 = vpop.xlane.xlu1 %5283 }
 0x6e5   : > { %v5313_v53 = vsub.f32 %v5225_v5, %v5284_v1  ;;  %v5280_v44 = vpop.xlane.xlu0 %5279 }
 0x6e6   : > { %v5311_v9 = vsub.f32 %v5217_v28, %v5280_v44 }
 0x6e7   : > { %v5331_v13 = vmul.f32 1.442695, %v5313_v53 }
 0x6e8   : > { %v5327_v56 = vmul.f32 1.442695, %v5311_v9  ;;  %v5286_v45 = vpop.xlane.xlu1 %5285 }
 0x6e9   : > { %7091 = vpow2.f32 %v5331_v13  ;;  %v5314_v19 = vsub.f32 %v5228_v52, %v5286_v45  ;;  %v5282_v55 = vpop.xlane.xlu0 %5281 }
 0x6ea   : > { %v5312_v16 = vsub.f32 %v5220_v57, %v5282_v55  ;;  %7093 = vpow2.f32 %v5327_v56 }
 0x6eb   : > { %v5333_v27 = vmul.f32 1.442695, %v5314_v19 }
 0x6ec   : > { %v5329_v31 = vmul.f32 1.442695, %v5312_v16 }
 0x6ed   : > { %7095 = vpow2.f32 %v5333_v27 }
 0x6ee   : > { %7097 = vpow2.f32 %v5329_v31 }
 0x6f3   : > { %v8463_v4 = vpop.eup %7091 }
 0x6f4   : > { %5363 = vadd.xlane.f32.xlu0 %v8463_v4  ;;  %v5292_v6 = vpop.xlane.xlu0 %5291  ;;  %v8466_v41 = vpop.eup %7093 }
 0x6f5   : > { %v5317_v47 = vsub.f32 %v5241_v43, %v5292_v6 }
 0x6f6   : > { %v5294_v29 = vpop.xlane.xlu1 %5293 }
 0x6f7   : > { %v8468_v12 = vpop.eup %7095  ;;  %v5339_v10 = vmul.f32 1.442695, %v5317_v47  ;;  %v5318_v54 = vsub.f32 %v5244_v8, %v5294_v29 }
 0x6f8   : > { %5365 = vadd.xlane.f32.xlu1 %v8468_v12  ;;  %5359 = vadd.xlane.f32.xlu0 %v8466_v41  ;;  %v5288_v62 = vpop.xlane.xlu0 %5287  ;;  %v8473_v30 = vpop.eup %7097 }
 0x6f9   : > { %7099 = vpow2.f32 %v5339_v10  ;;  %v5341_v21 = vmul.f32 1.442695, %v5318_v54  ;;  %v5315_v0 = vsub.f32 %v8433_v35, %v5288_v62 }
 0x6fa   : > { %v5290_v18 = vpop.xlane.xlu1 %5289 }
 0x6fb   : > { %7101 = vpow2.f32 %v5341_v21  ;;  %v5335_v14 = vmul.f32 1.442695, %v5315_v0  ;;  %v5316_v20 = vsub.f32 %v8435_v17, %v5290_v18 }
 0x6fc   : > { %5361 = vadd.xlane.f32.xlu1 %v8473_v30 }
 0x6fd   : > { %7103 = vpow2.f32 %v5335_v14  ;;  %v5337_v61 = vmul.f32 1.442695, %v5316_v20 }
 0x6ff   : > { %7105 = vpow2.f32 %v5337_v61 }
 0x703   : > { %v8477_v34 = vpop.eup %7099 }
 0x704   : > { %5371 = vadd.xlane.f32.xlu0 %v8477_v34  ;;  %v5300_v51 = vpop.xlane.xlu0 %5299 }
 0x705   : > { %v8480_v3 = vpop.eup %7101  ;;  %v5321_v42 = vsub.f32 %v8439_v40, %v5300_v51 }
 0x706   : > { %v5302_v25 = vpop.xlane.xlu1 %5301  ;;  %5373 = vadd.xlane.f32.xlu1 %v8480_v3 }
 0x707   : > { %v8484_v5 = vpop.eup %7103  ;;  %v5347_v63 = vmul.f32 1.442695, %v5321_v42  ;;  %v5322_v28 = vsub.f32 %v8441_v50, %v5302_v25 }
 0x708   : > { %5367 = vadd.xlane.f32.xlu0 %v8484_v5  ;;  %v5296_v59 = vpop.xlane.xlu0 %5295 }
 0x709   : > { %v8488_v26 = vpop.eup %7105  ;;  %7107 = vpow2.f32 %v5347_v63  ;;  %v5349_v52 = vmul.f32 1.442695, %v5322_v28  ;;  %v5319_v57 = vsub.f32 %v8444_v24, %v5296_v59 }
 0x70a   : > { %v5298_v39 = vpop.xlane.xlu1 %5297  ;;  %5369 = vadd.xlane.f32.xlu1 %v8488_v26 }
 0x70b   : > { %7109 = vpow2.f32 %v5349_v52  ;;  %v5343_v43 = vmul.f32 1.442695, %v5319_v57  ;;  %v5320_v37 = vsub.f32 %v8447_v49, %v5298_v39 }
 0x70d   : > { %7111 = vpow2.f32 %v5343_v43  ;;  %v5345_v7 = vmul.f32 1.442695, %v5320_v37 }
 0x70f   : > { %7113 = vpow2.f32 %v5345_v7 }
 0x713   : > { %v8493_v8 = vpop.eup %7107 }
 0x714   : > { %5379 = vadd.xlane.f32.xlu0 %v8493_v8 }
 0x715   : > { %v8496_v32 = vpop.eup %7109  ;;  %v5304_v35 = vpop.xlane.xlu0 %5303 }
 0x716   : > { %v5323_v17 = vsub.f32 %v8451_v2, %v5304_v35  ;;  %5381 = vadd.xlane.f32.xlu1 %v8496_v32 }
 0x717   : > { %v8500_v15 = vpop.eup %7111  ;;  %v5306_v40 = vpop.xlane.xlu1 %5305 }
 0x718   : > { %v5351_v22 = vmul.f32 1.442695, %v5323_v17  ;;  %v5324_v60 = vsub.f32 %v8453_v36, %v5306_v40  ;;  %5375 = vadd.xlane.f32.xlu0 %v8500_v15 }
 0x719   : > { %v8504_v50 = vpop.eup %7113  ;;  %v5308_v38 = vpop.xlane.xlu0 %5307 }
 0x71a   : > { %7115 = vpow2.f32 %v5351_v22  ;;  %v5353_v24 = vmul.f32 1.442695, %v5324_v60  ;;  %v5325_v49 = vsub.f32 %v8456_v23, %v5308_v38  ;;  %5377 = vadd.xlane.f32.xlu1 %v8504_v50 }
 0x71b   : > { %v5310_v46 = vpop.xlane.xlu1 %5309 }
 0x71c   : > { %7117 = vpow2.f32 %v5353_v24  ;;  %v5355_v48 = vmul.f32 1.442695, %v5325_v49  ;;  %v5326_v2 = vsub.f32 %v8459_v58, %v5310_v46 }
 0x71e   : > { %7119 = vpow2.f32 %v5355_v48  ;;  %v5357_v11 = vmul.f32 1.442695, %v5326_v2 }
 0x720   : > { %7121 = vpow2.f32 %v5357_v11 }
 0x724   : > { %v8509_v33 = vpop.eup %7115 }
 0x725   : > { %5383 = vadd.xlane.f32.xlu0 %v8509_v33 }
 0x726   : > { %v8512_v36 = vpop.eup %7117 }
 0x727   : > { %5385 = vadd.xlane.f32.xlu1 %v8512_v36 }
 0x728   : > { %v8515_v23 = vpop.eup %7119 }
 0x729   : > { %5387 = vadd.xlane.f32.xlu0 %v8515_v23 }
 0x72a   : > { %v8518_v1 = vpop.eup %7121 }
 0x72b   : > { %5389 = vadd.xlane.f32.xlu1 %v8518_v1 }
 0x781   : > { %v5364_v58 = vpop.xlane.xlu0 %5363 }
 0x782   : > { %7123 = vrcp.f32 %v5364_v58 }
 0x785   : > { %v5366_v53 = vpop.xlane.xlu1 %5365  ;;  %v5360_v44 = vpop.xlane.xlu0 %5359 }
 0x786   : > { %7125 = vrcp.f32 %v5366_v53 }
 0x787   : > { %7127 = vrcp.f32 %v5360_v44 }
 0x789   : > { %v5362_v9 = vpop.xlane.xlu1 %5361 }
 0x78a   : > { %7129 = vrcp.f32 %v5362_v9 }
 0x78c   : > { %v7124_v13 = vpop.eup %7123 }
 0x78d   : > { %v5409_v56 = vmul.f32 %v7124_v13, %v8463_v4 }
 0x78f   : > { %5425 = vst [vmem:[%s8523_s3 + $0x10] sm:$0xff] %v5409_v56 }
 0x790   : > { %v7126_v45 = vpop.eup %7125 }
 0x791   : > { %v7128_v19 = vpop.eup %7127  ;;  %v5410_v55 = vmul.f32 %v7126_v45, %v8468_v12  ;;  %v5372_v16 = vpop.xlane.xlu0 %5371 }
 0x792   : > { %v5407_v27 = vmul.f32 %v7128_v19, %v8466_v41  ;;  %7131 = vrcp.f32 %v5372_v16 }
 0x793   : > { %5426 = vst [vmem:[%s8523_s3 + $0x18] sm:$0xff] %v5410_v55  ;;  %v5374_v31 = vpop.xlane.xlu1 %5373 }
 0x794   : > { %v7130_v4 = vpop.eup %7129  ;;  %5423 = vst [vmem:[%s8523_s3] sm:$0xff] %v5407_v27  ;;  %7133 = vrcp.f32 %v5374_v31 }
 0x795   : > { %v5408_v6 = vmul.f32 %v7130_v4, %v8473_v30  ;;  %v5368_v47 = vpop.xlane.xlu0 %5367 }
 0x796   : > { %7135 = vrcp.f32 %v5368_v47 }
 0x797   : > { %5424 = vst [vmem:[%s8523_s3 + $0x8] sm:$0xff] %v5408_v6  ;;  %v5370_v29 = vpop.xlane.xlu1 %5369 }
 0x798   : > { %7137 = vrcp.f32 %v5370_v29 }
 0x79c   : > { %v7132_v12 = vpop.eup %7131 }
 0x79d   : > { %v5413_v41 = vmul.f32 %v7132_v12, %v8477_v34 }
 0x79e   : > { %v7134_v10 = vpop.eup %7133 }
 0x79f   : > { %5429 = vst [vmem:[%s8523_s3 + $0x30] sm:$0xff] %v5413_v41  ;;  %v5414_v54 = vmul.f32 %v7134_v10, %v8480_v3 }
 0x7a0   : > { %v7136_v62 = vpop.eup %7135 }
 0x7a1   : > { %5430 = vst [vmem:[%s8523_s3 + $0x38] sm:$0xff] %v5414_v54  ;;  %v5411_v21 = vmul.f32 %v7136_v62, %v8484_v5  ;;  %v5380_v0 = vpop.xlane.xlu0 %5379 }
 0x7a2   : > { %v7138_v18 = vpop.eup %7137  ;;  %7139 = vrcp.f32 %v5380_v0 }
 0x7a3   : > { %5427 = vst [vmem:[%s8523_s3 + $0x20] sm:$0xff] %v5411_v21  ;;  %v5412_v30 = vmul.f32 %v7138_v18, %v8488_v26  ;;  %v5382_v14 = vpop.xlane.xlu1 %5381 }
 0x7a4   : > { %7141 = vrcp.f32 %v5382_v14 }
 0x7a5   : > { %5428 = vst [vmem:[%s8523_s3 + $0x28] sm:$0xff] %v5412_v30  ;;  %v5376_v20 = vpop.xlane.xlu0 %5375 }
 0x7a6   : > { %7143 = vrcp.f32 %v5376_v20 }
 0x7a7   : > { %v5378_v61 = vpop.xlane.xlu1 %5377 }
 0x7a8   : > { %7145 = vrcp.f32 %v5378_v61 }
 0x7ac   : > { %v7140_v34 = vpop.eup %7139 }
 0x7ad   : > { %v5417_v51 = vmul.f32 %v7140_v34, %v8493_v8 }
 0x7ae   : > { %v7142_v3 = vpop.eup %7141 }
 0x7af   : > { %5433 = vst [vmem:[%s8523_s3 + $0x50] sm:$0xff] %v5417_v51  ;;  %v5418_v42 = vmul.f32 %v7142_v3, %v8496_v32 }
 0x7b0   : > { %v7144_v25 = vpop.eup %7143 }
 0x7b1   : > { %5434 = vst [vmem:[%s8523_s3 + $0x58] sm:$0xff] %v5418_v42  ;;  %v5415_v5 = vmul.f32 %v7144_v25, %v8500_v15 }
 0x7b2   : > { %v7146_v63 = vpop.eup %7145  ;;  %v5384_v28 = vpop.xlane.xlu0 %5383 }
 0x7b3   : > { %5431 = vst [vmem:[%s8523_s3 + $0x40] sm:$0xff] %v5415_v5  ;;  %v5416_v59 = vmul.f32 %v7146_v63, %v8504_v50  ;;  %7147 = vrcp.f32 %v5384_v28 }
 0x7b4   : > { %v5386_v26 = vpop.xlane.xlu1 %5385 }
 0x7b5   : > { %5432 = vst [vmem:[%s8523_s3 + $0x48] sm:$0xff] %v5416_v59  ;;  %7149 = vrcp.f32 %v5386_v26 }
 0x7b6   : > { %v5388_v52 = vpop.xlane.xlu0 %5387 }
 0x7b7   : > { %7151 = vrcp.f32 %v5388_v52 }
 0x7b8   : > { %v5390_v57 = vpop.xlane.xlu1 %5389 }
 0x7b9   : > { %7153 = vrcp.f32 %v5390_v57 }
 0x7bd   : > { %v7148_v39 = vpop.eup %7147 }
 0x7be   : > { %v5419_v43 = vmul.f32 %v7148_v39, %v8509_v33 }
 0x7bf   : > { %v7150_v37 = vpop.eup %7149 }
 0x7c0   : > { %5435 = vst [vmem:[%s8523_s3 + $0x60] sm:$0xff] %v5419_v43  ;;  %v5420_v7 = vmul.f32 %v7150_v37, %v8512_v36 }
 0x7c1   : > { %v7152_v8 = vpop.eup %7151 }
 0x7c2   : > { %5436 = vst [vmem:[%s8523_s3 + $0x68] sm:$0xff] %v5420_v7  ;;  %v5421_v32 = vmul.f32 %v7152_v8, %v8515_v23 }
 0x7c3   : > { %v7154_v35 = vpop.eup %7153 }
 0x7c4   : > { %5437 = vst [vmem:[%s8523_s3 + $0x70] sm:$0xff] %v5421_v32  ;;  %v5422_v17 = vmul.f32 %v7154_v35, %v8518_v1 }
 0x7c6   : > { %5438 = vst [vmem:[%s8523_s3 + $0x78] sm:$0xff] %v5422_v17 }
 0x7c7   : > { %7366 = shalt.err (!%p7363_p8)
}
 0x7c8   : > { %s7367_s21 = scalar_lea.hbm %s8558_s1, 2048  ;;  %s7371_s3 = scalar_lea.hbm %s8648_s10, 4096 }
 0x7c9   : > { %p7368_p7 = scmp.ne.s32.totalorder %s8558_s1, %s7367_s21  ;;  %p7372_p3 = scmp.lt.u32.totalorder %s8558_s1, %s8648_s10 }
 0x7ca   : > { %p7373_p0 = scmp.lt.u32.totalorder %s7371_s3, %s7367_s21  ;;  %p7375_p6 = scmp.lt.u32.totalorder %s7367_s21, %s8558_s1 }
 0x7cb   : > { %p7369_p9 = pnand %p7368_p7, %p8649_p5 }
 0x7cc   : > { %p7374_p2 = por %p7373_p0, %p7372_p3 }
 0x7cd   : > { %p7370_p4 = pneg %p7369_p9 }
 0x7ce   : > { %p7376_p10 = por %p7375_p6, %p7374_p2 }
 0x7d0   : > { %p7377_p1 = pnand %p7376_p10, %p7370_p4 }
 0x7d2   : > { %7380 = shalt.err (!%p7377_p1)
}
 0x7d3   : > { %s7450_s26 = smov 128   ;;  %s7451_s12 = smov 8  }
 0x7d4   : > { %6487 = dma.vmem_to_hbm [thread:$0]  (%p8649_p5), %s8560_s30, 2048, %s8558_s1, %s5440_s23, %s7450_s26, %s7450_s26, %s7451_s12  }
 0x7d5 PF: > { %s5468_s27 = sand.u32 1, %s7419_s17   ;;  %p8650_p11 = scmp.ne.s32.totalorder %s8637_s15, 0 }
 0x7d6   : > { %p8651_p12 = scmp.ge.s32.totalorder %s7431_s20, 2  ;;  %s5469_s29 = scalar_lea.sflag [#allocation4], %s5468_s27 }
 0x7d8   : > { %p6513_p13 = pnand %p8651_p12, %p8650_p11 }
 0x7da   : > { %7414 = dma.done.wait (!%p6513_p13), %s5469_s29, 2048  }
 0x7db   : > { %7416 = vsyncadd (!%p6513_p13), %s5469_s29, 4294965248  ;;  %p27_p8 = scmp.ge.s32.totalorder %s7690_s16, 4   ;;  %s8652_s17 = smov %s7423_s18 }
 0x7dc   : > { %s8653_s18 = smov %s7427_s19  ;;  %s8654_s19 = smov %s7701_s11 }
 0x7dd   : > { %s8655_s20 = smov %s7690_s16  ;;  %29 = sbr.rel (!%p27_p8) target bundleno = 14 (0xe), region = 133 }
 0x7e4   :  { %5474 = vsyncpa [#allocation3], 1 }
 0x7e5   :  { %5476 = vsyncpa [#allocation3 + $0x1], 1 }
 0x7e6   :  { %5477 = vsyncpa [#allocation6], 1 }
 0x7e7   :  { %5478 = vsyncpa [#allocation9], 1 }
 0x7e8   :  { %5479 = vsyncpa [#allocation12], 1 }
 0x7e9   :  { %5480 = vsyncpa [#allocation4], 1 }
 0x7ea   :  { %5482 = vsyncpa [#allocation4 + $0x1], 1 }

</bundles_post_ra>
